<compile_context>
chip_gen: v7x
topology: tpu7x:2x2x1
jax: 0.10.0
libtpu: 0.0.40
codegen_flags: <defaults>
</compile_context>

<pallas_src>
import functools
import math

import jax
import jax.numpy as jnp
from jax.experimental import pallas as pl
from jax.experimental.pallas import tpu as pltpu


# ---------------------------------------------------------------------------
# Fused IDB kernel: conv1(+ReLU) -> 2x2/2 ceil max-pool -> [conv(+ReLU)]* -> conv
# ---------------------------------------------------------------------------
def _fused_idb_kernel(*args, fs, pad, wl, do_pool, n_extra,
                      h_in, w_in, conv1_out, pool_out, extra_sizes):
    n_in = 3 + 2 * n_extra
    x_ref, w1_ref, b1_ref = args[0], args[1], args[2]
    extra_wb = [(args[3 + 2 * i], args[4 + 2 * i]) for i in range(n_extra)]
    o_ref = args[n_in]
    scr = list(args[n_in + 1:])

    si = 0
    pad1 = scr[si]; si += 1
    pool_a = None
    if do_pool:
        pool_a = scr[si]; si += 1
    pads = []
    for _ in range(n_extra):
        pads.append(scr[si]); si += 1

    dtype = o_ref.dtype
    RB = 8                      # output-row block: keeps live vregs small
    ho1, wo1 = conv1_out
    hq, wq = pool_out

    # --- destination writers: stage outputs stream row-block-by-row-block ---
    def out_writer(h0, blk):
        o_ref[0, h0:h0 + blk.shape[0], :, :] = blk

    def pool_writer(h0, blk):
        pool_a[h0:h0 + blk.shape[0], 0:blk.shape[1], :] = blk

    def pad_writer(pref):
        def w(h0, blk):
            # interior sits at sublane-aligned W offset `wl` -> dense store.
            pref[pad + h0:pad + h0 + blk.shape[0], wl:wl + blk.shape[1], :] = blk
        return w

    # --- halo-only zeroing of a padded scratch (4 thin stripes) -------------
    def zero_halo(pref, hc, wc):
        if pad == 0:
            return
        hp, wp, c = pref.shape
        zrow = jnp.zeros((pad, wp, c), pref.dtype)
        pref[0:pad, :, :] = zrow
        pref[pad + hc:2 * pad + hc, :, :] = zrow
        zcol = jnp.zeros((hp, pad, c), pref.dtype)
        pref[:, wl - pad:wl, :] = zcol
        pref[:, wl + wc:wl + wc + pad, :] = zcol

    # --- one conv: fs*fs shifted-window dots accumulated in f32 registers ---
    def conv_stage(src_pad, hc, wc, w_ref, b_ref, relu, write_blk):
        ho = hc + 2 * pad - fs + 1
        wo = wc + 2 * pad - fs + 1
        bias = b_ref[0].astype(jnp.float32)
        for h0 in range(0, ho, RB):
            rb = min(RB, ho - h0)
            acc = jnp.zeros((rb, wo, bias.shape[0]), jnp.float32)
            for kh in range(fs):
                for kw in range(fs):
                    # misaligned-in-W *reads* (load/XLU slack), never stores
                    win = src_pad[h0 + kh:h0 + kh + rb,
                                  wl - pad + kw:wl - pad + kw + wo, :]
                    acc = acc + jnp.dot(win, w_ref[kh * fs + kw],
                                        preferred_element_type=jnp.float32)
            acc = acc + bias[None, None, :]
            if relu:
                acc = jnp.maximum(acc, 0.0)
            write_blk(h0, acc.astype(dtype))

    # --- 2x2 / stride-2 ceil-mode max pool (no second scratch round trip) ---
    def pool_stage(write_blk):
        he, we, c = pool_a.shape
        # ceil-mode halo: fill only the extra row / column.  Pool input is
        # post-ReLU (>= 0), so 0 is neutral for this max (dtype agnostic).
        if he > ho1:
            pool_a[ho1:he, :, :] = jnp.zeros((he - ho1, we, c), pool_a.dtype)
        if we > wo1:
            pool_a[:, wo1:we, :] = jnp.zeros((he, we - wo1, c), pool_a.dtype)
        for h0 in range(0, hq, RB):
            rb = min(RB, hq - h0)
            a = pool_a[pl.ds(2 * h0, 2 * rb), pl.ds(0, wq, stride=2), :]
            b = pool_a[pl.ds(2 * h0, 2 * rb), pl.ds(1, wq, stride=2), :]
            m = jnp.maximum(a, b)                             # (2*rb, wq, c)
            blk = jnp.max(m.reshape(rb, 2, wq, c), axis=1)    # leading-dim pair max
            write_blk(h0, blk)

    # ------------------------------------------------------------------ run
    # conv1 padded input: halo-only zeroing + aligned interior write.
    zero_halo(pad1, h_in, w_in)
    pad1[pad:pad + h_in, wl:wl + w_in, :] = x_ref[0]
    for i in range(n_extra):
        zero_halo(pads[i], extra_sizes[i][0], extra_sizes[i][1])

    # conv1 + ReLU
    if do_pool:
        conv1_dst = pool_writer
    elif n_extra:
        conv1_dst = pad_writer(pads[0])
    else:
        conv1_dst = out_writer
    conv_stage(pad1, h_in, w_in, w1_ref, b1_ref, relu=True, write_blk=conv1_dst)

    # max pool
    if do_pool:
        pool_stage(pad_writer(pads[0]) if n_extra else out_writer)

    # additional convs: ReLU after each except the last
    for i in range(n_extra):
        last = (i == n_extra - 1)
        w_ref, b_ref = extra_wb[i]
        dst = out_writer if last else pad_writer(pads[i + 1])
        conv_stage(pads[i], extra_sizes[i][0], extra_sizes[i][1],
                   w_ref, b_ref, relu=not last, write_blk=dst)


# ---------------------------------------------------------------------------
# Static per-stage spatial sizes
# ---------------------------------------------------------------------------
def _idb_sizes(H, W, fs, pad, do_pool, n_extra):
    ho1, wo1 = H + 2 * pad - fs + 1, W + 2 * pad - fs + 1
    if do_pool:
        hq, wq = -(-ho1 // 2), -(-wo1 // 2)          # ceil
    else:
        hq, wq = ho1, wo1
    extra, hc, wc = [], hq, wq
    for _ in range(n_extra):
        ho, wo = hc + 2 * pad - fs + 1, wc + 2 * pad - fs + 1
        extra.append((hc, wc, ho, wo))
        hc, wc = ho, wo
    return (ho1, wo1), (hq, wq), tuple(extra), (hc, wc)


# ---------------------------------------------------------------------------
# InitialConv forward (NCHW in / NCHW out, matching the PyTorch module)
# ---------------------------------------------------------------------------
def initial_conv_forward(x_nchw, params, n_init_conv, subsample):
    N, Cin, H, W = x_nchw.shape
    w1, b1 = params[0]                               # (fs, fs, Cin, Cout), (Cout,)
    fs, Cout = w1.shape[0], w1.shape[3]
    pad = (fs - 1) // 2
    n_extra = n_init_conv - 1
    do_pool = subsample[0] > 1 or subsample[1] > 1
    if do_pool:
        # TODO(synk): general pooling strides != (2, 2) (module kernel fixed to 2).
        assert tuple(subsample) == (2, 2), "only subsample=(2,2) supported"
    dtype = x_nchw.dtype

    conv1_out, pool_out, extra_sizes, (Hf, Wf) = _idb_sizes(
        H, W, fs, pad, do_pool, n_extra)

    WL = 8                                           # sublane-aligned left W pad
    assert pad <= WL, "filter too large for the aligned-interior trick"

    # TODO(synk): fold this input layout change into the kernel (review item 6).
    x = jnp.transpose(x_nchw, (0, 2, 3, 1))          # NCHW -> NHWC

    inputs = [x, w1.reshape(fs * fs, Cin, Cout), b1.reshape(1, Cout)]
    in_specs = [
        pl.BlockSpec((1, H, W, Cin), lambda n: (n, 0, 0, 0)),
        pl.BlockSpec((fs * fs, Cin, Cout), lambda n: (0, 0, 0)),
        pl.BlockSpec((1, Cout), lambda n: (0, 0)),
    ]
    for i in range(n_extra):
        wi, bi = params[1 + i]
        inputs += [wi.reshape(fs * fs, Cout, Cout), bi.reshape(1, Cout)]
        in_specs += [pl.BlockSpec((fs * fs, Cout, Cout), lambda n: (0, 0, 0)),
                     pl.BlockSpec((1, Cout), lambda n: (0, 0))]

    scratch_shapes = [
        pltpu.VMEM((H + 2 * pad, WL + W + pad, Cin), dtype),      # conv1 padded in
    ]
    if do_pool:
        scratch_shapes.append(
            pltpu.VMEM((2 * pool_out[0], 2 * pool_out[1], Cout), dtype))  # pool in
    for (hc, wc, _, _) in extra_sizes:
        scratch_shapes.append(
            pltpu.VMEM((hc + 2 * pad, WL + wc + pad, Cout), dtype))       # padded in

    kernel = functools.partial(
        _fused_idb_kernel, fs=fs, pad=pad, wl=WL, do_pool=do_pool,
        n_extra=n_extra, h_in=H, w_in=W, conv1_out=conv1_out,
        pool_out=pool_out, extra_sizes=extra_sizes)

    out = pl.pallas_call(
        kernel,
        out_shape=jax.ShapeDtypeStruct((N, Hf, Wf, Cout), dtype),
        grid=(N,),
        in_specs=in_specs,
        out_specs=pl.BlockSpec((1, Hf, Wf, Cout), lambda n: (n, 0, 0, 0)),
        scratch_shapes=scratch_shapes,
        # No vmem_limit_bytes override: default scoped limit is ample at these
        # sizes, and 64 MiB would be all of v7x's per-core VMEM.
        compiler_params=pltpu.CompilerParams(
            dimension_semantics=("parallel",)),      # batch across cores
    )(*inputs)

    # TODO(synk): drop this HBM pass by storing NCHW directly from the kernel
    # (review item 5, lane-dense output) once the row-tile axis lands.
    return jnp.transpose(out, (0, 3, 1, 2))          # NHWC -> NCHW


# ---------------------------------------------------------------------------
# Deterministic parameter init (kaiming_uniform, relu gain; zero bias)
# ---------------------------------------------------------------------------
def init_params(key, in_channels, n_filters, filter_size, n_init_conv):
    params = []
    cin = in_channels
    for _ in range(n_init_conv):
        key, sub = jax.random.split(key)
        fan_in = cin * filter_size * filter_size
        bound = math.sqrt(3.0) * math.sqrt(2.0 / fan_in)
        w_oihw = jax.random.uniform(sub, (n_filters, cin, filter_size, filter_size),
                                    jnp.float32, minval=-bound, maxval=bound)
        w_hwio = jnp.transpose(w_oihw, (2, 3, 1, 0))
        b = jnp.zeros((n_filters,), jnp.float32)
        params.append((w_hwio, b))
        cin = n_filters
    return params


# ---------------------------------------------------------------------------
# Pure-JAX reference (correctness check only)
# ---------------------------------------------------------------------------
def _ref_forward(x_nchw, params, n_init_conv, subsample, filter_size):
    x = jnp.transpose(x_nchw, (0, 2, 3, 1))
    pad = (filter_size - 1) // 2
    dn = ("NHWC", "HWIO", "NHWC")

    def conv(x, w, b):
        y = jax.lax.conv_general_dilated(x, w, (1, 1),
                                         [(pad, pad), (pad, pad)],
                                         dimension_numbers=dn)
        return y + b[None, None, None, :]

    w, b = params[0]
    out = jax.nn.relu(conv(x, w, b))
    if subsample[0] > 1 or subsample[1] > 1:
        out = jax.lax.reduce_window(out, -jnp.inf, jax.lax.max,
                                    (1, 2, 2, 1),
                                    (1, subsample[0], subsample[1], 1),
                                    "VALID")
    for idx in range(1, n_init_conv):
        w, b = params[idx]
        out = conv(out, w, b)
        if idx < n_init_conv - 1:
            out = jax.nn.relu(out)
    return jnp.transpose(out, (0, 3, 1, 2))


if __name__ == "__main__":
    key = jax.random.PRNGKey(0)
    kx, kp = jax.random.split(key)

    # small shapes consistent with the module
    N, in_channels, Hs, Ws = 2, 3, 16, 16
    n_filters, filter_size, n_init_conv = 8, 3, 3
    subsample = (2, 2)

    x = jax.random.normal(kx, (N, in_channels, Hs, Ws), jnp.float32)
    params = init_params(kp, in_channels, n_filters, filter_size, n_init_conv)

    out = initial_conv_forward(x, params, n_init_conv, subsample)
    out = jax.block_until_ready(out)

    ref = _ref_forward(x, params, n_init_conv, subsample, filter_size)
    assert out.shape == (N, n_filters, Hs // 2, Ws // 2), out.shape
    assert jnp.allclose(out, ref, rtol=1e-4, atol=1e-4), "mismatch vs JAX reference"

    print("KERNEL_OK")
</pallas_src>

<mosaic_0001>
module attributes {stable_mosaic.version = 11 : i64} {
  func.func @_fused_idb_kernel(%arg0: i32, %arg1: memref<1x16x16x3xf32, #tpu.memory_space<vmem>>, %arg2: memref<9x3x8xf32, #tpu.memory_space<vmem>>, %arg3: memref<1x8xf32, #tpu.memory_space<vmem>>, %arg4: memref<9x8x8xf32, #tpu.memory_space<vmem>>, %arg5: memref<1x8xf32, #tpu.memory_space<vmem>>, %arg6: memref<9x8x8xf32, #tpu.memory_space<vmem>>, %arg7: memref<1x8xf32, #tpu.memory_space<vmem>>, %arg8: memref<1x8x8x8xf32, #tpu.memory_space<vmem>>, %arg9: memref<18x25x3xf32, #tpu.memory_space<vmem>>, %arg10: memref<16x16x8xf32, #tpu.memory_space<vmem>>, %arg11: memref<10x17x8xf32, #tpu.memory_space<vmem>>, %arg12: memref<10x17x8xf32, #tpu.memory_space<vmem>>) attributes {dimension_semantics = [#tpu.dimension_semantics<parallel>], iteration_bounds = array<i64: 2>, scalar_prefetch = 0 : i64, scratch_operands = 4 : i64, tpu.core_type = #tpu.core_type<tc>, window_params = [{transform_indices = @transform_0, window_bounds = array<i64: 1, 16, 16, 3>}, {pipeline_mode = #tpu.pipeline_mode<synchronous>, transform_indices = @transform_1, window_bounds = array<i64: 9, 3, 8>}, {pipeline_mode = #tpu.pipeline_mode<synchronous>, transform_indices = @transform_2, window_bounds = array<i64: 1, 8>}, {pipeline_mode = #tpu.pipeline_mode<synchronous>, transform_indices = @transform_3, window_bounds = array<i64: 9, 8, 8>}, {pipeline_mode = #tpu.pipeline_mode<synchronous>, transform_indices = @transform_4, window_bounds = array<i64: 1, 8>}, {pipeline_mode = #tpu.pipeline_mode<synchronous>, transform_indices = @transform_5, window_bounds = array<i64: 9, 8, 8>}, {pipeline_mode = #tpu.pipeline_mode<synchronous>, transform_indices = @transform_6, window_bounds = array<i64: 1, 8>}, {transform_indices = @transform_7, window_bounds = array<i64: 1, 8, 8, 8>}]} {
    %cst = arith.constant 0.000000e+00 : f32
    %0 = vector.broadcast %cst : f32 to vector<1x25x3xf32>
    %c0 = arith.constant 0 : index
    %c0_0 = arith.constant 0 : index
    %c0_1 = arith.constant 0 : index
    %1 = vector.load %arg9[%c0, %c0_0, %c0_1] : memref<18x25x3xf32, #tpu.memory_space<vmem>>, vector<1x25x3xf32>
    tpu.vector_store %arg9[%c0, %c0_0, %c0_1], %0 {strides = array<i32>} : memref<18x25x3xf32, #tpu.memory_space<vmem>>, vector<1x25x3xf32>,
    %c17 = arith.constant 17 : index
    %c0_2 = arith.constant 0 : index
    %c0_3 = arith.constant 0 : index
    %2 = vector.load %arg9[%c17, %c0_2, %c0_3] : memref<18x25x3xf32, #tpu.memory_space<vmem>>, vector<1x25x3xf32>
    tpu.vector_store %arg9[%c17, %c0_2, %c0_3], %0 {strides = array<i32>} : memref<18x25x3xf32, #tpu.memory_space<vmem>>, vector<1x25x3xf32>,
    %cst_4 = arith.constant 0.000000e+00 : f32
    %3 = vector.broadcast %cst_4 : f32 to vector<18x1x3xf32>
    %c0_5 = arith.constant 0 : index
    %c7 = arith.constant 7 : index
    %c0_6 = arith.constant 0 : index
    %4 = vector.load %arg9[%c0_5, %c7, %c0_6] : memref<18x25x3xf32, #tpu.memory_space<vmem>>, vector<18x1x3xf32>
    tpu.vector_store %arg9[%c0_5, %c7, %c0_6], %3 {strides = array<i32>} : memref<18x25x3xf32, #tpu.memory_space<vmem>>, vector<18x1x3xf32>,
    %c0_7 = arith.constant 0 : index
    %c24 = arith.constant 24 : index
    %c0_8 = arith.constant 0 : index
    %5 = vector.load %arg9[%c0_7, %c24, %c0_8] : memref<18x25x3xf32, #tpu.memory_space<vmem>>, vector<18x1x3xf32>
    tpu.vector_store %arg9[%c0_7, %c24, %c0_8], %3 {strides = array<i32>} : memref<18x25x3xf32, #tpu.memory_space<vmem>>, vector<18x1x3xf32>,
    %c0_9 = arith.constant 0 : index
    %c0_10 = arith.constant 0 : index
    %c0_11 = arith.constant 0 : index
    %c0_12 = arith.constant 0 : index
    %6 = vector.load %arg1[%c0_9, %c0_10, %c0_11, %c0_12] : memref<1x16x16x3xf32, #tpu.memory_space<vmem>>, vector<1x16x16x3xf32>
    %7 = vector.shape_cast %6 : vector<1x16x16x3xf32> to vector<16x16x3xf32>
    %c1 = arith.constant 1 : index
    %c8 = arith.constant 8 : index
    %c0_13 = arith.constant 0 : index
    %8 = vector.load %arg9[%c1, %c8, %c0_13] : memref<18x25x3xf32, #tpu.memory_space<vmem>>, vector<16x16x3xf32>
    tpu.vector_store %arg9[%c1, %c8, %c0_13], %7 {strides = array<i32>} : memref<18x25x3xf32, #tpu.memory_space<vmem>>, vector<16x16x3xf32>,
    %cst_14 = arith.constant 0.000000e+00 : f32
    %9 = vector.broadcast %cst_14 : f32 to vector<1x17x8xf32>
    %c0_15 = arith.constant 0 : index
    %c0_16 = arith.constant 0 : index
    %c0_17 = arith.constant 0 : index
    %10 = vector.load %arg11[%c0_15, %c0_16, %c0_17] : memref<10x17x8xf32, #tpu.memory_space<vmem>>, vector<1x17x8xf32>
    tpu.vector_store %arg11[%c0_15, %c0_16, %c0_17], %9 {strides = array<i32>} : memref<10x17x8xf32, #tpu.memory_space<vmem>>, vector<1x17x8xf32>,
    %c9 = arith.constant 9 : index
    %c0_18 = arith.constant 0 : index
    %c0_19 = arith.constant 0 : index
    %11 = vector.load %arg11[%c9, %c0_18, %c0_19] : memref<10x17x8xf32, #tpu.memory_space<vmem>>, vector<1x17x8xf32>
    tpu.vector_store %arg11[%c9, %c0_18, %c0_19], %9 {strides = array<i32>} : memref<10x17x8xf32, #tpu.memory_space<vmem>>, vector<1x17x8xf32>,
    %cst_20 = arith.constant 0.000000e+00 : f32
    %12 = vector.broadcast %cst_20 : f32 to vector<10x1x8xf32>
    %c0_21 = arith.constant 0 : index
    %c7_22 = arith.constant 7 : index
    %c0_23 = arith.constant 0 : index
    %13 = vector.load %arg11[%c0_21, %c7_22, %c0_23] : memref<10x17x8xf32, #tpu.memory_space<vmem>>, vector<10x1x8xf32>
    tpu.vector_store %arg11[%c0_21, %c7_22, %c0_23], %12 {strides = array<i32>} : memref<10x17x8xf32, #tpu.memory_space<vmem>>, vector<10x1x8xf32>,
    %c0_24 = arith.constant 0 : index
    %c16 = arith.constant 16 : index
    %c0_25 = arith.constant 0 : index
    %14 = vector.load %arg11[%c0_24, %c16, %c0_25] : memref<10x17x8xf32, #tpu.memory_space<vmem>>, vector<10x1x8xf32>
    tpu.vector_store %arg11[%c0_24, %c16, %c0_25], %12 {strides = array<i32>} : memref<10x17x8xf32, #tpu.memory_space<vmem>>, vector<10x1x8xf32>,
    %cst_26 = arith.constant 0.000000e+00 : f32
    %15 = vector.broadcast %cst_26 : f32 to vector<1x17x8xf32>
    %c0_27 = arith.constant 0 : index
    %c0_28 = arith.constant 0 : index
    %c0_29 = arith.constant 0 : index
    %16 = vector.load %arg12[%c0_27, %c0_28, %c0_29] : memref<10x17x8xf32, #tpu.memory_space<vmem>>, vector<1x17x8xf32>
    tpu.vector_store %arg12[%c0_27, %c0_28, %c0_29], %15 {strides = array<i32>} : memref<10x17x8xf32, #tpu.memory_space<vmem>>, vector<1x17x8xf32>,
    %c9_30 = arith.constant 9 : index
    %c0_31 = arith.constant 0 : index
    %c0_32 = arith.constant 0 : index
    %17 = vector.load %arg12[%c9_30, %c0_31, %c0_32] : memref<10x17x8xf32, #tpu.memory_space<vmem>>, vector<1x17x8xf32>
    tpu.vector_store %arg12[%c9_30, %c0_31, %c0_32], %15 {strides = array<i32>} : memref<10x17x8xf32, #tpu.memory_space<vmem>>, vector<1x17x8xf32>,
    %cst_33 = arith.constant 0.000000e+00 : f32
    %18 = vector.broadcast %cst_33 : f32 to vector<10x1x8xf32>
    %c0_34 = arith.constant 0 : index
    %c7_35 = arith.constant 7 : index
    %c0_36 = arith.constant 0 : index
    %19 = vector.load %arg12[%c0_34, %c7_35, %c0_36] : memref<10x17x8xf32, #tpu.memory_space<vmem>>, vector<10x1x8xf32>
    tpu.vector_store %arg12[%c0_34, %c7_35, %c0_36], %18 {strides = array<i32>} : memref<10x17x8xf32, #tpu.memory_space<vmem>>, vector<10x1x8xf32>,
    %c0_37 = arith.constant 0 : index
    %c16_38 = arith.constant 16 : index
    %c0_39 = arith.constant 0 : index
    %20 = vector.load %arg12[%c0_37, %c16_38, %c0_39] : memref<10x17x8xf32, #tpu.memory_space<vmem>>, vector<10x1x8xf32>
    tpu.vector_store %arg12[%c0_37, %c16_38, %c0_39], %18 {strides = array<i32>} : memref<10x17x8xf32, #tpu.memory_space<vmem>>, vector<10x1x8xf32>,
    %c0_40 = arith.constant 0 : index
    %c0_41 = arith.constant 0 : index
    %21 = vector.load %arg3[%c0_40, %c0_41] : memref<1x8xf32, #tpu.memory_space<vmem>>, vector<1x8xf32>
    %22 = vector.shape_cast %21 : vector<1x8xf32> to vector<8xf32>
    %cst_42 = arith.constant 0.000000e+00 : f32
    %23 = vector.broadcast %cst_42 : f32 to vector<8x16x8xf32>
    %c0_43 = arith.constant 0 : index
    %c7_44 = arith.constant 7 : index
    %c0_45 = arith.constant 0 : index
    %24 = vector.load %arg9[%c0_43, %c7_44, %c0_45] : memref<18x25x3xf32, #tpu.memory_space<vmem>>, vector<8x16x3xf32>
    %c0_46 = arith.constant 0 : index
    %c0_47 = arith.constant 0 : index
    %c0_48 = arith.constant 0 : index
    %25 = vector.load %arg2[%c0_46, %c0_47, %c0_48] : memref<9x3x8xf32, #tpu.memory_space<vmem>>, vector<1x3x8xf32>
    %26 = vector.shape_cast %25 : vector<1x3x8xf32> to vector<3x8xf32>
    %cst_49 = arith.constant dense<0.000000e+00> : vector<8x16x8xf32>
    %27 = tpu.matmul %24, %26, %cst_49 {dimension_numbers = #tpu.dot_dimension_numbers<[2], [0], [0, 1], [1], [0, 0, 0, 1, 1, 1], [], []>} : vector<8x16x3xf32>, vector<3x8xf32>, vector<8x16x8xf32> -> vector<8x16x8xf32>
    %28 = arith.addf %23, %27 : vector<8x16x8xf32>
    %c0_50 = arith.constant 0 : index
    %c8_51 = arith.constant 8 : index
    %c0_52 = arith.constant 0 : index
    %29 = vector.load %arg9[%c0_50, %c8_51, %c0_52] : memref<18x25x3xf32, #tpu.memory_space<vmem>>, vector<8x16x3xf32>
    %c1_53 = arith.constant 1 : index
    %c0_54 = arith.constant 0 : index
    %c0_55 = arith.constant 0 : index
    %30 = vector.load %arg2[%c1_53, %c0_54, %c0_55] : memref<9x3x8xf32, #tpu.memory_space<vmem>>, vector<1x3x8xf32>
    %31 = vector.shape_cast %30 : vector<1x3x8xf32> to vector<3x8xf32>
    %cst_56 = arith.constant dense<0.000000e+00> : vector<8x16x8xf32>
    %32 = tpu.matmul %29, %31, %cst_56 {dimension_numbers = #tpu.dot_dimension_numbers<[2], [0], [0, 1], [1], [0, 0, 0, 1, 1, 1], [], []>} : vector<8x16x3xf32>, vector<3x8xf32>, vector<8x16x8xf32> -> vector<8x16x8xf32>
    %33 = arith.addf %28, %32 : vector<8x16x8xf32>
    %c0_57 = arith.constant 0 : index
    %c9_58 = arith.constant 9 : index
    %c0_59 = arith.constant 0 : index
    %34 = vector.load %arg9[%c0_57, %c9_58, %c0_59] : memref<18x25x3xf32, #tpu.memory_space<vmem>>, vector<8x16x3xf32>
    %c2 = arith.constant 2 : index
    %c0_60 = arith.constant 0 : index
    %c0_61 = arith.constant 0 : index
    %35 = vector.load %arg2[%c2, %c0_60, %c0_61] : memref<9x3x8xf32, #tpu.memory_space<vmem>>, vector<1x3x8xf32>
    %36 = vector.shape_cast %35 : vector<1x3x8xf32> to vector<3x8xf32>
    %cst_62 = arith.constant dense<0.000000e+00> : vector<8x16x8xf32>
    %37 = tpu.matmul %34, %36, %cst_62 {dimension_numbers = #tpu.dot_dimension_numbers<[2], [0], [0, 1], [1], [0, 0, 0, 1, 1, 1], [], []>} : vector<8x16x3xf32>, vector<3x8xf32>, vector<8x16x8xf32> -> vector<8x16x8xf32>
    %38 = arith.addf %33, %37 : vector<8x16x8xf32>
    %c1_63 = arith.constant 1 : index
    %c7_64 = arith.constant 7 : index
    %c0_65 = arith.constant 0 : index
    %39 = vector.load %arg9[%c1_63, %c7_64, %c0_65] : memref<18x25x3xf32, #tpu.memory_space<vmem>>, vector<8x16x3xf32>
    %c3 = arith.constant 3 : index
    %c0_66 = arith.constant 0 : index
    %c0_67 = arith.constant 0 : index
    %40 = vector.load %arg2[%c3, %c0_66, %c0_67] : memref<9x3x8xf32, #tpu.memory_space<vmem>>, vector<1x3x8xf32>
    %41 = vector.shape_cast %40 : vector<1x3x8xf32> to vector<3x8xf32>
    %cst_68 = arith.constant dense<0.000000e+00> : vector<8x16x8xf32>
    %42 = tpu.matmul %39, %41, %cst_68 {dimension_numbers = #tpu.dot_dimension_numbers<[2], [0], [0, 1], [1], [0, 0, 0, 1, 1, 1], [], []>} : vector<8x16x3xf32>, vector<3x8xf32>, vector<8x16x8xf32> -> vector<8x16x8xf32>
    %43 = arith.addf %38, %42 : vector<8x16x8xf32>
    %c1_69 = arith.constant 1 : index
    %c8_70 = arith.constant 8 : index
    %c0_71 = arith.constant 0 : index
    %44 = vector.load %arg9[%c1_69, %c8_70, %c0_71] : memref<18x25x3xf32, #tpu.memory_space<vmem>>, vector<8x16x3xf32>
    %c4 = arith.constant 4 : index
    %c0_72 = arith.constant 0 : index
    %c0_73 = arith.constant 0 : index
    %45 = vector.load %arg2[%c4, %c0_72, %c0_73] : memref<9x3x8xf32, #tpu.memory_space<vmem>>, vector<1x3x8xf32>
    %46 = vector.shape_cast %45 : vector<1x3x8xf32> to vector<3x8xf32>
    %cst_74 = arith.constant dense<0.000000e+00> : vector<8x16x8xf32>
    %47 = tpu.matmul %44, %46, %cst_74 {dimension_numbers = #tpu.dot_dimension_numbers<[2], [0], [0, 1], [1], [0, 0, 0, 1, 1, 1], [], []>} : vector<8x16x3xf32>, vector<3x8xf32>, vector<8x16x8xf32> -> vector<8x16x8xf32>
    %48 = arith.addf %43, %47 : vector<8x16x8xf32>
    %c1_75 = arith.constant 1 : index
    %c9_76 = arith.constant 9 : index
    %c0_77 = arith.constant 0 : index
    %49 = vector.load %arg9[%c1_75, %c9_76, %c0_77] : memref<18x25x3xf32, #tpu.memory_space<vmem>>, vector<8x16x3xf32>
    %c5 = arith.constant 5 : index
    %c0_78 = arith.constant 0 : index
    %c0_79 = arith.constant 0 : index
    %50 = vector.load %arg2[%c5, %c0_78, %c0_79] : memref<9x3x8xf32, #tpu.memory_space<vmem>>, vector<1x3x8xf32>
    %51 = vector.shape_cast %50 : vector<1x3x8xf32> to vector<3x8xf32>
    %cst_80 = arith.constant dense<0.000000e+00> : vector<8x16x8xf32>
    %52 = tpu.matmul %49, %51, %cst_80 {dimension_numbers = #tpu.dot_dimension_numbers<[2], [0], [0, 1], [1], [0, 0, 0, 1, 1, 1], [], []>} : vector<8x16x3xf32>, vector<3x8xf32>, vector<8x16x8xf32> -> vector<8x16x8xf32>
    %53 = arith.addf %48, %52 : vector<8x16x8xf32>
    %c2_81 = arith.constant 2 : index
    %c7_82 = arith.constant 7 : index
    %c0_83 = arith.constant 0 : index
    %54 = vector.load %arg9[%c2_81, %c7_82, %c0_83] : memref<18x25x3xf32, #tpu.memory_space<vmem>>, vector<8x16x3xf32>
    %c6 = arith.constant 6 : index
    %c0_84 = arith.constant 0 : index
    %c0_85 = arith.constant 0 : index
    %55 = vector.load %arg2[%c6, %c0_84, %c0_85] : memref<9x3x8xf32, #tpu.memory_space<vmem>>, vector<1x3x8xf32>
    %56 = vector.shape_cast %55 : vector<1x3x8xf32> to vector<3x8xf32>
    %cst_86 = arith.constant dense<0.000000e+00> : vector<8x16x8xf32>
    %57 = tpu.matmul %54, %56, %cst_86 {dimension_numbers = #tpu.dot_dimension_numbers<[2], [0], [0, 1], [1], [0, 0, 0, 1, 1, 1], [], []>} : vector<8x16x3xf32>, vector<3x8xf32>, vector<8x16x8xf32> -> vector<8x16x8xf32>
    %58 = arith.addf %53, %57 : vector<8x16x8xf32>
    %c2_87 = arith.constant 2 : index
    %c8_88 = arith.constant 8 : index
    %c0_89 = arith.constant 0 : index
    %59 = vector.load %arg9[%c2_87, %c8_88, %c0_89] : memref<18x25x3xf32, #tpu.memory_space<vmem>>, vector<8x16x3xf32>
    %c7_90 = arith.constant 7 : index
    %c0_91 = arith.constant 0 : index
    %c0_92 = arith.constant 0 : index
    %60 = vector.load %arg2[%c7_90, %c0_91, %c0_92] : memref<9x3x8xf32, #tpu.memory_space<vmem>>, vector<1x3x8xf32>
    %61 = vector.shape_cast %60 : vector<1x3x8xf32> to vector<3x8xf32>
    %cst_93 = arith.constant dense<0.000000e+00> : vector<8x16x8xf32>
    %62 = tpu.matmul %59, %61, %cst_93 {dimension_numbers = #tpu.dot_dimension_numbers<[2], [0], [0, 1], [1], [0, 0, 0, 1, 1, 1], [], []>} : vector<8x16x3xf32>, vector<3x8xf32>, vector<8x16x8xf32> -> vector<8x16x8xf32>
    %63 = arith.addf %58, %62 : vector<8x16x8xf32>
    %c2_94 = arith.constant 2 : index
    %c9_95 = arith.constant 9 : index
    %c0_96 = arith.constant 0 : index
    %64 = vector.load %arg9[%c2_94, %c9_95, %c0_96] : memref<18x25x3xf32, #tpu.memory_space<vmem>>, vector<8x16x3xf32>
    %c8_97 = arith.constant 8 : index
    %c0_98 = arith.constant 0 : index
    %c0_99 = arith.constant 0 : index
    %65 = vector.load %arg2[%c8_97, %c0_98, %c0_99] : memref<9x3x8xf32, #tpu.memory_space<vmem>>, vector<1x3x8xf32>
    %66 = vector.shape_cast %65 : vector<1x3x8xf32> to vector<3x8xf32>
    %cst_100 = arith.constant dense<0.000000e+00> : vector<8x16x8xf32>
    %67 = tpu.matmul %64, %66, %cst_100 {dimension_numbers = #tpu.dot_dimension_numbers<[2], [0], [0, 1], [1], [0, 0, 0, 1, 1, 1], [], []>} : vector<8x16x3xf32>, vector<3x8xf32>, vector<8x16x8xf32> -> vector<8x16x8xf32>
    %68 = arith.addf %63, %67 : vector<8x16x8xf32>
    %69 = vector.shape_cast %22 : vector<8xf32> to vector<1x1x8xf32>
    %70 = vector.broadcast %69 : vector<1x1x8xf32> to vector<8x16x8xf32>
    %71 = arith.addf %68, %70 : vector<8x16x8xf32>
    %cst_101 = arith.constant 0.000000e+00 : f32
    %72 = vector.broadcast %cst_101 : f32 to vector<8x16x8xf32>
    %73 = arith.maximumf %71, %72 : vector<8x16x8xf32>
    %c0_102 = arith.constant 0 : index
    %c0_103 = arith.constant 0 : index
    %c0_104 = arith.constant 0 : index
    %74 = vector.load %arg10[%c0_102, %c0_103, %c0_104] : memref<16x16x8xf32, #tpu.memory_space<vmem>>, vector<8x16x8xf32>
    tpu.vector_store %arg10[%c0_102, %c0_103, %c0_104], %73 {strides = array<i32>} : memref<16x16x8xf32, #tpu.memory_space<vmem>>, vector<8x16x8xf32>,
    %cst_105 = arith.constant 0.000000e+00 : f32
    %75 = vector.broadcast %cst_105 : f32 to vector<8x16x8xf32>
    %c8_106 = arith.constant 8 : index
    %c7_107 = arith.constant 7 : index
    %c0_108 = arith.constant 0 : index
    %76 = vector.load %arg9[%c8_106, %c7_107, %c0_108] : memref<18x25x3xf32, #tpu.memory_space<vmem>>, vector<8x16x3xf32>
    %c0_109 = arith.constant 0 : index
    %c0_110 = arith.constant 0 : index
    %c0_111 = arith.constant 0 : index
    %77 = vector.load %arg2[%c0_109, %c0_110, %c0_111] : memref<9x3x8xf32, #tpu.memory_space<vmem>>, vector<1x3x8xf32>
    %78 = vector.shape_cast %77 : vector<1x3x8xf32> to vector<3x8xf32>
    %cst_112 = arith.constant dense<0.000000e+00> : vector<8x16x8xf32>
    %79 = tpu.matmul %76, %78, %cst_112 {dimension_numbers = #tpu.dot_dimension_numbers<[2], [0], [0, 1], [1], [0, 0, 0, 1, 1, 1], [], []>} : vector<8x16x3xf32>, vector<3x8xf32>, vector<8x16x8xf32> -> vector<8x16x8xf32>
    %80 = arith.addf %75, %79 : vector<8x16x8xf32>
    %c8_113 = arith.constant 8 : index
    %c8_114 = arith.constant 8 : index
    %c0_115 = arith.constant 0 : index
    %81 = vector.load %arg9[%c8_113, %c8_114, %c0_115] : memref<18x25x3xf32, #tpu.memory_space<vmem>>, vector<8x16x3xf32>
    %c1_116 = arith.constant 1 : index
    %c0_117 = arith.constant 0 : index
    %c0_118 = arith.constant 0 : index
    %82 = vector.load %arg2[%c1_116, %c0_117, %c0_118] : memref<9x3x8xf32, #tpu.memory_space<vmem>>, vector<1x3x8xf32>
    %83 = vector.shape_cast %82 : vector<1x3x8xf32> to vector<3x8xf32>
    %cst_119 = arith.constant dense<0.000000e+00> : vector<8x16x8xf32>
    %84 = tpu.matmul %81, %83, %cst_119 {dimension_numbers = #tpu.dot_dimension_numbers<[2], [0], [0, 1], [1], [0, 0, 0, 1, 1, 1], [], []>} : vector<8x16x3xf32>, vector<3x8xf32>, vector<8x16x8xf32> -> vector<8x16x8xf32>
    %85 = arith.addf %80, %84 : vector<8x16x8xf32>
    %c8_120 = arith.constant 8 : index
    %c9_121 = arith.constant 9 : index
    %c0_122 = arith.constant 0 : index
    %86 = vector.load %arg9[%c8_120, %c9_121, %c0_122] : memref<18x25x3xf32, #tpu.memory_space<vmem>>, vector<8x16x3xf32>
    %c2_123 = arith.constant 2 : index
    %c0_124 = arith.constant 0 : index
    %c0_125 = arith.constant 0 : index
    %87 = vector.load %arg2[%c2_123, %c0_124, %c0_125] : memref<9x3x8xf32, #tpu.memory_space<vmem>>, vector<1x3x8xf32>
    %88 = vector.shape_cast %87 : vector<1x3x8xf32> to vector<3x8xf32>
    %cst_126 = arith.constant dense<0.000000e+00> : vector<8x16x8xf32>
    %89 = tpu.matmul %86, %88, %cst_126 {dimension_numbers = #tpu.dot_dimension_numbers<[2], [0], [0, 1], [1], [0, 0, 0, 1, 1, 1], [], []>} : vector<8x16x3xf32>, vector<3x8xf32>, vector<8x16x8xf32> -> vector<8x16x8xf32>
    %90 = arith.addf %85, %89 : vector<8x16x8xf32>
    %c9_127 = arith.constant 9 : index
    %c7_128 = arith.constant 7 : index
    %c0_129 = arith.constant 0 : index
    %91 = vector.load %arg9[%c9_127, %c7_128, %c0_129] : memref<18x25x3xf32, #tpu.memory_space<vmem>>, vector<8x16x3xf32>
    %c3_130 = arith.constant 3 : index
    %c0_131 = arith.constant 0 : index
    %c0_132 = arith.constant 0 : index
    %92 = vector.load %arg2[%c3_130, %c0_131, %c0_132] : memref<9x3x8xf32, #tpu.memory_space<vmem>>, vector<1x3x8xf32>
    %93 = vector.shape_cast %92 : vector<1x3x8xf32> to vector<3x8xf32>
    %cst_133 = arith.constant dense<0.000000e+00> : vector<8x16x8xf32>
    %94 = tpu.matmul %91, %93, %cst_133 {dimension_numbers = #tpu.dot_dimension_numbers<[2], [0], [0, 1], [1], [0, 0, 0, 1, 1, 1], [], []>} : vector<8x16x3xf32>, vector<3x8xf32>, vector<8x16x8xf32> -> vector<8x16x8xf32>
    %95 = arith.addf %90, %94 : vector<8x16x8xf32>
    %c9_134 = arith.constant 9 : index
    %c8_135 = arith.constant 8 : index
    %c0_136 = arith.constant 0 : index
    %96 = vector.load %arg9[%c9_134, %c8_135, %c0_136] : memref<18x25x3xf32, #tpu.memory_space<vmem>>, vector<8x16x3xf32>
    %c4_137 = arith.constant 4 : index
    %c0_138 = arith.constant 0 : index
    %c0_139 = arith.constant 0 : index
    %97 = vector.load %arg2[%c4_137, %c0_138, %c0_139] : memref<9x3x8xf32, #tpu.memory_space<vmem>>, vector<1x3x8xf32>
    %98 = vector.shape_cast %97 : vector<1x3x8xf32> to vector<3x8xf32>
    %cst_140 = arith.constant dense<0.000000e+00> : vector<8x16x8xf32>
    %99 = tpu.matmul %96, %98, %cst_140 {dimension_numbers = #tpu.dot_dimension_numbers<[2], [0], [0, 1], [1], [0, 0, 0, 1, 1, 1], [], []>} : vector<8x16x3xf32>, vector<3x8xf32>, vector<8x16x8xf32> -> vector<8x16x8xf32>
    %100 = arith.addf %95, %99 : vector<8x16x8xf32>
    %c9_141 = arith.constant 9 : index
    %c9_142 = arith.constant 9 : index
    %c0_143 = arith.constant 0 : index
    %101 = vector.load %arg9[%c9_141, %c9_142, %c0_143] : memref<18x25x3xf32, #tpu.memory_space<vmem>>, vector<8x16x3xf32>
    %c5_144 = arith.constant 5 : index
    %c0_145 = arith.constant 0 : index
    %c0_146 = arith.constant 0 : index
    %102 = vector.load %arg2[%c5_144, %c0_145, %c0_146] : memref<9x3x8xf32, #tpu.memory_space<vmem>>, vector<1x3x8xf32>
    %103 = vector.shape_cast %102 : vector<1x3x8xf32> to vector<3x8xf32>
    %cst_147 = arith.constant dense<0.000000e+00> : vector<8x16x8xf32>
    %104 = tpu.matmul %101, %103, %cst_147 {dimension_numbers = #tpu.dot_dimension_numbers<[2], [0], [0, 1], [1], [0, 0, 0, 1, 1, 1], [], []>} : vector<8x16x3xf32>, vector<3x8xf32>, vector<8x16x8xf32> -> vector<8x16x8xf32>
    %105 = arith.addf %100, %104 : vector<8x16x8xf32>
    %c10 = arith.constant 10 : index
    %c7_148 = arith.constant 7 : index
    %c0_149 = arith.constant 0 : index
    %106 = vector.load %arg9[%c10, %c7_148, %c0_149] : memref<18x25x3xf32, #tpu.memory_space<vmem>>, vector<8x16x3xf32>
    %c6_150 = arith.constant 6 : index
    %c0_151 = arith.constant 0 : index
    %c0_152 = arith.constant 0 : index
    %107 = vector.load %arg2[%c6_150, %c0_151, %c0_152] : memref<9x3x8xf32, #tpu.memory_space<vmem>>, vector<1x3x8xf32>
    %108 = vector.shape_cast %107 : vector<1x3x8xf32> to vector<3x8xf32>
    %cst_153 = arith.constant dense<0.000000e+00> : vector<8x16x8xf32>
    %109 = tpu.matmul %106, %108, %cst_153 {dimension_numbers = #tpu.dot_dimension_numbers<[2], [0], [0, 1], [1], [0, 0, 0, 1, 1, 1], [], []>} : vector<8x16x3xf32>, vector<3x8xf32>, vector<8x16x8xf32> -> vector<8x16x8xf32>
    %110 = arith.addf %105, %109 : vector<8x16x8xf32>
    %c10_154 = arith.constant 10 : index
    %c8_155 = arith.constant 8 : index
    %c0_156 = arith.constant 0 : index
    %111 = vector.load %arg9[%c10_154, %c8_155, %c0_156] : memref<18x25x3xf32, #tpu.memory_space<vmem>>, vector<8x16x3xf32>
    %c7_157 = arith.constant 7 : index
    %c0_158 = arith.constant 0 : index
    %c0_159 = arith.constant 0 : index
    %112 = vector.load %arg2[%c7_157, %c0_158, %c0_159] : memref<9x3x8xf32, #tpu.memory_space<vmem>>, vector<1x3x8xf32>
    %113 = vector.shape_cast %112 : vector<1x3x8xf32> to vector<3x8xf32>
    %cst_160 = arith.constant dense<0.000000e+00> : vector<8x16x8xf32>
    %114 = tpu.matmul %111, %113, %cst_160 {dimension_numbers = #tpu.dot_dimension_numbers<[2], [0], [0, 1], [1], [0, 0, 0, 1, 1, 1], [], []>} : vector<8x16x3xf32>, vector<3x8xf32>, vector<8x16x8xf32> -> vector<8x16x8xf32>
    %115 = arith.addf %110, %114 : vector<8x16x8xf32>
    %c10_161 = arith.constant 10 : index
    %c9_162 = arith.constant 9 : index
    %c0_163 = arith.constant 0 : index
    %116 = vector.load %arg9[%c10_161, %c9_162, %c0_163] : memref<18x25x3xf32, #tpu.memory_space<vmem>>, vector<8x16x3xf32>
    %c8_164 = arith.constant 8 : index
    %c0_165 = arith.constant 0 : index
    %c0_166 = arith.constant 0 : index
    %117 = vector.load %arg2[%c8_164, %c0_165, %c0_166] : memref<9x3x8xf32, #tpu.memory_space<vmem>>, vector<1x3x8xf32>
    %118 = vector.shape_cast %117 : vector<1x3x8xf32> to vector<3x8xf32>
    %cst_167 = arith.constant dense<0.000000e+00> : vector<8x16x8xf32>
    %119 = tpu.matmul %116, %118, %cst_167 {dimension_numbers = #tpu.dot_dimension_numbers<[2], [0], [0, 1], [1], [0, 0, 0, 1, 1, 1], [], []>} : vector<8x16x3xf32>, vector<3x8xf32>, vector<8x16x8xf32> -> vector<8x16x8xf32>
    %120 = arith.addf %115, %119 : vector<8x16x8xf32>
    %121 = vector.shape_cast %22 : vector<8xf32> to vector<1x1x8xf32>
    %122 = vector.broadcast %121 : vector<1x1x8xf32> to vector<8x16x8xf32>
    %123 = arith.addf %120, %122 : vector<8x16x8xf32>
    %cst_168 = arith.constant 0.000000e+00 : f32
    %124 = vector.broadcast %cst_168 : f32 to vector<8x16x8xf32>
    %125 = arith.maximumf %123, %124 : vector<8x16x8xf32>
    %c8_169 = arith.constant 8 : index
    %c0_170 = arith.constant 0 : index
    %c0_171 = arith.constant 0 : index
    %126 = vector.load %arg10[%c8_169, %c0_170, %c0_171] : memref<16x16x8xf32, #tpu.memory_space<vmem>>, vector<8x16x8xf32>
    tpu.vector_store %arg10[%c8_169, %c0_170, %c0_171], %125 {strides = array<i32>} : memref<16x16x8xf32, #tpu.memory_space<vmem>>, vector<8x16x8xf32>,
    %c0_172 = arith.constant 0 : index
    %c0_173 = arith.constant 0 : index
    %c0_174 = arith.constant 0 : index
    %127 = tpu.strided_load %arg10[%c0_172, %c0_173, %c0_174] {strides = array<i32: 1, 2, 1>} : memref<16x16x8xf32, #tpu.memory_space<vmem>>, vector<16x8x8xf32>
    %c0_175 = arith.constant 0 : index
    %c1_176 = arith.constant 1 : index
    %c0_177 = arith.constant 0 : index
    %128 = tpu.strided_load %arg10[%c0_175, %c1_176, %c0_177] {strides = array<i32: 1, 2, 1>} : memref<16x16x8xf32, #tpu.memory_space<vmem>>, vector<16x8x8xf32>
    %129 = arith.maximumf %127, %128 : vector<16x8x8xf32>
    %130 = vector.shape_cast %129 : vector<16x8x8xf32> to vector<8x2x8x8xf32>
    %cst_178 = arith.constant dense<0xFF800000> : vector<8x8x8xf32>
    %131 = vector.multi_reduction <maximumf>, %130, %cst_178 [1] : vector<8x2x8x8xf32> to vector<8x8x8xf32>
    %c1_179 = arith.constant 1 : index
    %c8_180 = arith.constant 8 : index
    %c0_181 = arith.constant 0 : index
    %132 = vector.load %arg11[%c1_179, %c8_180, %c0_181] : memref<10x17x8xf32, #tpu.memory_space<vmem>>, vector<8x8x8xf32>
    tpu.vector_store %arg11[%c1_179, %c8_180, %c0_181], %131 {strides = array<i32>} : memref<10x17x8xf32, #tpu.memory_space<vmem>>, vector<8x8x8xf32>,
    %c0_182 = arith.constant 0 : index
    %c0_183 = arith.constant 0 : index
    %133 = vector.load %arg5[%c0_182, %c0_183] : memref<1x8xf32, #tpu.memory_space<vmem>>, vector<1x8xf32>
    %134 = vector.shape_cast %133 : vector<1x8xf32> to vector<8xf32>
    %cst_184 = arith.constant 0.000000e+00 : f32
    %135 = vector.broadcast %cst_184 : f32 to vector<8x8x8xf32>
    %c0_185 = arith.constant 0 : index
    %c7_186 = arith.constant 7 : index
    %c0_187 = arith.constant 0 : index
    %136 = vector.load %arg11[%c0_185, %c7_186, %c0_187] : memref<10x17x8xf32, #tpu.memory_space<vmem>>, vector<8x8x8xf32>
    %c0_188 = arith.constant 0 : index
    %c0_189 = arith.constant 0 : index
    %c0_190 = arith.constant 0 : index
    %137 = vector.load %arg4[%c0_188, %c0_189, %c0_190] : memref<9x8x8xf32, #tpu.memory_space<vmem>>, vector<1x8x8xf32>
    %138 = vector.shape_cast %137 : vector<1x8x8xf32> to vector<8x8xf32>
    %cst_191 = arith.constant dense<0.000000e+00> : vector<8x8x8xf32>
    %139 = tpu.matmul %136, %138, %cst_191 {dimension_numbers = #tpu.dot_dimension_numbers<[2], [0], [0, 1], [1], [0, 0, 0, 1, 1, 1], [], []>} : vector<8x8x8xf32>, vector<8x8xf32>, vector<8x8x8xf32> -> vector<8x8x8xf32>
    %140 = arith.addf %135, %139 : vector<8x8x8xf32>
    %c0_192 = arith.constant 0 : index
    %c8_193 = arith.constant 8 : index
    %c0_194 = arith.constant 0 : index
    %141 = vector.load %arg11[%c0_192, %c8_193, %c0_194] : memref<10x17x8xf32, #tpu.memory_space<vmem>>, vector<8x8x8xf32>
    %c1_195 = arith.constant 1 : index
    %c0_196 = arith.constant 0 : index
    %c0_197 = arith.constant 0 : index
    %142 = vector.load %arg4[%c1_195, %c0_196, %c0_197] : memref<9x8x8xf32, #tpu.memory_space<vmem>>, vector<1x8x8xf32>
    %143 = vector.shape_cast %142 : vector<1x8x8xf32> to vector<8x8xf32>
    %cst_198 = arith.constant dense<0.000000e+00> : vector<8x8x8xf32>
    %144 = tpu.matmul %141, %143, %cst_198 {dimension_numbers = #tpu.dot_dimension_numbers<[2], [0], [0, 1], [1], [0, 0, 0, 1, 1, 1], [], []>} : vector<8x8x8xf32>, vector<8x8xf32>, vector<8x8x8xf32> -> vector<8x8x8xf32>
    %145 = arith.addf %140, %144 : vector<8x8x8xf32>
    %c0_199 = arith.constant 0 : index
    %c9_200 = arith.constant 9 : index
    %c0_201 = arith.constant 0 : index
    %146 = vector.load %arg11[%c0_199, %c9_200, %c0_201] : memref<10x17x8xf32, #tpu.memory_space<vmem>>, vector<8x8x8xf32>
    %c2_202 = arith.constant 2 : index
    %c0_203 = arith.constant 0 : index
    %c0_204 = arith.constant 0 : index
    %147 = vector.load %arg4[%c2_202, %c0_203, %c0_204] : memref<9x8x8xf32, #tpu.memory_space<vmem>>, vector<1x8x8xf32>
    %148 = vector.shape_cast %147 : vector<1x8x8xf32> to vector<8x8xf32>
    %cst_205 = arith.constant dense<0.000000e+00> : vector<8x8x8xf32>
    %149 = tpu.matmul %146, %148, %cst_205 {dimension_numbers = #tpu.dot_dimension_numbers<[2], [0], [0, 1], [1], [0, 0, 0, 1, 1, 1], [], []>} : vector<8x8x8xf32>, vector<8x8xf32>, vector<8x8x8xf32> -> vector<8x8x8xf32>
    %150 = arith.addf %145, %149 : vector<8x8x8xf32>
    %c1_206 = arith.constant 1 : index
    %c7_207 = arith.constant 7 : index
    %c0_208 = arith.constant 0 : index
    %151 = vector.load %arg11[%c1_206, %c7_207, %c0_208] : memref<10x17x8xf32, #tpu.memory_space<vmem>>, vector<8x8x8xf32>
    %c3_209 = arith.constant 3 : index
    %c0_210 = arith.constant 0 : index
    %c0_211 = arith.constant 0 : index
    %152 = vector.load %arg4[%c3_209, %c0_210, %c0_211] : memref<9x8x8xf32, #tpu.memory_space<vmem>>, vector<1x8x8xf32>
    %153 = vector.shape_cast %152 : vector<1x8x8xf32> to vector<8x8xf32>
    %cst_212 = arith.constant dense<0.000000e+00> : vector<8x8x8xf32>
    %154 = tpu.matmul %151, %153, %cst_212 {dimension_numbers = #tpu.dot_dimension_numbers<[2], [0], [0, 1], [1], [0, 0, 0, 1, 1, 1], [], []>} : vector<8x8x8xf32>, vector<8x8xf32>, vector<8x8x8xf32> -> vector<8x8x8xf32>
    %155 = arith.addf %150, %154 : vector<8x8x8xf32>
    %c1_213 = arith.constant 1 : index
    %c8_214 = arith.constant 8 : index
    %c0_215 = arith.constant 0 : index
    %156 = vector.load %arg11[%c1_213, %c8_214, %c0_215] : memref<10x17x8xf32, #tpu.memory_space<vmem>>, vector<8x8x8xf32>
    %c4_216 = arith.constant 4 : index
    %c0_217 = arith.constant 0 : index
    %c0_218 = arith.constant 0 : index
    %157 = vector.load %arg4[%c4_216, %c0_217, %c0_218] : memref<9x8x8xf32, #tpu.memory_space<vmem>>, vector<1x8x8xf32>
    %158 = vector.shape_cast %157 : vector<1x8x8xf32> to vector<8x8xf32>
    %cst_219 = arith.constant dense<0.000000e+00> : vector<8x8x8xf32>
    %159 = tpu.matmul %156, %158, %cst_219 {dimension_numbers = #tpu.dot_dimension_numbers<[2], [0], [0, 1], [1], [0, 0, 0, 1, 1, 1], [], []>} : vector<8x8x8xf32>, vector<8x8xf32>, vector<8x8x8xf32> -> vector<8x8x8xf32>
    %160 = arith.addf %155, %159 : vector<8x8x8xf32>
    %c1_220 = arith.constant 1 : index
    %c9_221 = arith.constant 9 : index
    %c0_222 = arith.constant 0 : index
    %161 = vector.load %arg11[%c1_220, %c9_221, %c0_222] : memref<10x17x8xf32, #tpu.memory_space<vmem>>, vector<8x8x8xf32>
    %c5_223 = arith.constant 5 : index
    %c0_224 = arith.constant 0 : index
    %c0_225 = arith.constant 0 : index
    %162 = vector.load %arg4[%c5_223, %c0_224, %c0_225] : memref<9x8x8xf32, #tpu.memory_space<vmem>>, vector<1x8x8xf32>
    %163 = vector.shape_cast %162 : vector<1x8x8xf32> to vector<8x8xf32>
    %cst_226 = arith.constant dense<0.000000e+00> : vector<8x8x8xf32>
    %164 = tpu.matmul %161, %163, %cst_226 {dimension_numbers = #tpu.dot_dimension_numbers<[2], [0], [0, 1], [1], [0, 0, 0, 1, 1, 1], [], []>} : vector<8x8x8xf32>, vector<8x8xf32>, vector<8x8x8xf32> -> vector<8x8x8xf32>
    %165 = arith.addf %160, %164 : vector<8x8x8xf32>
    %c2_227 = arith.constant 2 : index
    %c7_228 = arith.constant 7 : index
    %c0_229 = arith.constant 0 : index
    %166 = vector.load %arg11[%c2_227, %c7_228, %c0_229] : memref<10x17x8xf32, #tpu.memory_space<vmem>>, vector<8x8x8xf32>
    %c6_230 = arith.constant 6 : index
    %c0_231 = arith.constant 0 : index
    %c0_232 = arith.constant 0 : index
    %167 = vector.load %arg4[%c6_230, %c0_231, %c0_232] : memref<9x8x8xf32, #tpu.memory_space<vmem>>, vector<1x8x8xf32>
    %168 = vector.shape_cast %167 : vector<1x8x8xf32> to vector<8x8xf32>
    %cst_233 = arith.constant dense<0.000000e+00> : vector<8x8x8xf32>
    %169 = tpu.matmul %166, %168, %cst_233 {dimension_numbers = #tpu.dot_dimension_numbers<[2], [0], [0, 1], [1], [0, 0, 0, 1, 1, 1], [], []>} : vector<8x8x8xf32>, vector<8x8xf32>, vector<8x8x8xf32> -> vector<8x8x8xf32>
    %170 = arith.addf %165, %169 : vector<8x8x8xf32>
    %c2_234 = arith.constant 2 : index
    %c8_235 = arith.constant 8 : index
    %c0_236 = arith.constant 0 : index
    %171 = vector.load %arg11[%c2_234, %c8_235, %c0_236] : memref<10x17x8xf32, #tpu.memory_space<vmem>>, vector<8x8x8xf32>
    %c7_237 = arith.constant 7 : index
    %c0_238 = arith.constant 0 : index
    %c0_239 = arith.constant 0 : index
    %172 = vector.load %arg4[%c7_237, %c0_238, %c0_239] : memref<9x8x8xf32, #tpu.memory_space<vmem>>, vector<1x8x8xf32>
    %173 = vector.shape_cast %172 : vector<1x8x8xf32> to vector<8x8xf32>
    %cst_240 = arith.constant dense<0.000000e+00> : vector<8x8x8xf32>
    %174 = tpu.matmul %171, %173, %cst_240 {dimension_numbers = #tpu.dot_dimension_numbers<[2], [0], [0, 1], [1], [0, 0, 0, 1, 1, 1], [], []>} : vector<8x8x8xf32>, vector<8x8xf32>, vector<8x8x8xf32> -> vector<8x8x8xf32>
    %175 = arith.addf %170, %174 : vector<8x8x8xf32>
    %c2_241 = arith.constant 2 : index
    %c9_242 = arith.constant 9 : index
    %c0_243 = arith.constant 0 : index
    %176 = vector.load %arg11[%c2_241, %c9_242, %c0_243] : memref<10x17x8xf32, #tpu.memory_space<vmem>>, vector<8x8x8xf32>
    %c8_244 = arith.constant 8 : index
    %c0_245 = arith.constant 0 : index
    %c0_246 = arith.constant 0 : index
    %177 = vector.load %arg4[%c8_244, %c0_245, %c0_246] : memref<9x8x8xf32, #tpu.memory_space<vmem>>, vector<1x8x8xf32>
    %178 = vector.shape_cast %177 : vector<1x8x8xf32> to vector<8x8xf32>
    %cst_247 = arith.constant dense<0.000000e+00> : vector<8x8x8xf32>
    %179 = tpu.matmul %176, %178, %cst_247 {dimension_numbers = #tpu.dot_dimension_numbers<[2], [0], [0, 1], [1], [0, 0, 0, 1, 1, 1], [], []>} : vector<8x8x8xf32>, vector<8x8xf32>, vector<8x8x8xf32> -> vector<8x8x8xf32>
    %180 = arith.addf %175, %179 : vector<8x8x8xf32>
    %181 = vector.shape_cast %134 : vector<8xf32> to vector<1x1x8xf32>
    %182 = vector.broadcast %181 : vector<1x1x8xf32> to vector<8x8x8xf32>
    %183 = arith.addf %180, %182 : vector<8x8x8xf32>
    %cst_248 = arith.constant 0.000000e+00 : f32
    %184 = vector.broadcast %cst_248 : f32 to vector<8x8x8xf32>
    %185 = arith.maximumf %183, %184 : vector<8x8x8xf32>
    %c1_249 = arith.constant 1 : index
    %c8_250 = arith.constant 8 : index
    %c0_251 = arith.constant 0 : index
    %186 = vector.load %arg12[%c1_249, %c8_250, %c0_251] : memref<10x17x8xf32, #tpu.memory_space<vmem>>, vector<8x8x8xf32>
    tpu.vector_store %arg12[%c1_249, %c8_250, %c0_251], %185 {strides = array<i32>} : memref<10x17x8xf32, #tpu.memory_space<vmem>>, vector<8x8x8xf32>,
    %c0_252 = arith.constant 0 : index
    %c0_253 = arith.constant 0 : index
    %187 = vector.load %arg7[%c0_252, %c0_253] : memref<1x8xf32, #tpu.memory_space<vmem>>, vector<1x8xf32>
    %188 = vector.shape_cast %187 : vector<1x8xf32> to vector<8xf32>
    %cst_254 = arith.constant 0.000000e+00 : f32
    %189 = vector.broadcast %cst_254 : f32 to vector<8x8x8xf32>
    %c0_255 = arith.constant 0 : index
    %c7_256 = arith.constant 7 : index
    %c0_257 = arith.constant 0 : index
    %190 = vector.load %arg12[%c0_255, %c7_256, %c0_257] : memref<10x17x8xf32, #tpu.memory_space<vmem>>, vector<8x8x8xf32>
    %c0_258 = arith.constant 0 : index
    %c0_259 = arith.constant 0 : index
    %c0_260 = arith.constant 0 : index
    %191 = vector.load %arg6[%c0_258, %c0_259, %c0_260] : memref<9x8x8xf32, #tpu.memory_space<vmem>>, vector<1x8x8xf32>
    %192 = vector.shape_cast %191 : vector<1x8x8xf32> to vector<8x8xf32>
    %cst_261 = arith.constant dense<0.000000e+00> : vector<8x8x8xf32>
    %193 = tpu.matmul %190, %192, %cst_261 {dimension_numbers = #tpu.dot_dimension_numbers<[2], [0], [0, 1], [1], [0, 0, 0, 1, 1, 1], [], []>} : vector<8x8x8xf32>, vector<8x8xf32>, vector<8x8x8xf32> -> vector<8x8x8xf32>
    %194 = arith.addf %189, %193 : vector<8x8x8xf32>
    %c0_262 = arith.constant 0 : index
    %c8_263 = arith.constant 8 : index
    %c0_264 = arith.constant 0 : index
    %195 = vector.load %arg12[%c0_262, %c8_263, %c0_264] : memref<10x17x8xf32, #tpu.memory_space<vmem>>, vector<8x8x8xf32>
    %c1_265 = arith.constant 1 : index
    %c0_266 = arith.constant 0 : index
    %c0_267 = arith.constant 0 : index
    %196 = vector.load %arg6[%c1_265, %c0_266, %c0_267] : memref<9x8x8xf32, #tpu.memory_space<vmem>>, vector<1x8x8xf32>
    %197 = vector.shape_cast %196 : vector<1x8x8xf32> to vector<8x8xf32>
    %cst_268 = arith.constant dense<0.000000e+00> : vector<8x8x8xf32>
    %198 = tpu.matmul %195, %197, %cst_268 {dimension_numbers = #tpu.dot_dimension_numbers<[2], [0], [0, 1], [1], [0, 0, 0, 1, 1, 1], [], []>} : vector<8x8x8xf32>, vector<8x8xf32>, vector<8x8x8xf32> -> vector<8x8x8xf32>
    %199 = arith.addf %194, %198 : vector<8x8x8xf32>
    %c0_269 = arith.constant 0 : index
    %c9_270 = arith.constant 9 : index
    %c0_271 = arith.constant 0 : index
    %200 = vector.load %arg12[%c0_269, %c9_270, %c0_271] : memref<10x17x8xf32, #tpu.memory_space<vmem>>, vector<8x8x8xf32>
    %c2_272 = arith.constant 2 : index
    %c0_273 = arith.constant 0 : index
    %c0_274 = arith.constant 0 : index
    %201 = vector.load %arg6[%c2_272, %c0_273, %c0_274] : memref<9x8x8xf32, #tpu.memory_space<vmem>>, vector<1x8x8xf32>
    %202 = vector.shape_cast %201 : vector<1x8x8xf32> to vector<8x8xf32>
    %cst_275 = arith.constant dense<0.000000e+00> : vector<8x8x8xf32>
    %203 = tpu.matmul %200, %202, %cst_275 {dimension_numbers = #tpu.dot_dimension_numbers<[2], [0], [0, 1], [1], [0, 0, 0, 1, 1, 1], [], []>} : vector<8x8x8xf32>, vector<8x8xf32>, vector<8x8x8xf32> -> vector<8x8x8xf32>
    %204 = arith.addf %199, %203 : vector<8x8x8xf32>
    %c1_276 = arith.constant 1 : index
    %c7_277 = arith.constant 7 : index
    %c0_278 = arith.constant 0 : index
    %205 = vector.load %arg12[%c1_276, %c7_277, %c0_278] : memref<10x17x8xf32, #tpu.memory_space<vmem>>, vector<8x8x8xf32>
    %c3_279 = arith.constant 3 : index
    %c0_280 = arith.constant 0 : index
    %c0_281 = arith.constant 0 : index
    %206 = vector.load %arg6[%c3_279, %c0_280, %c0_281] : memref<9x8x8xf32, #tpu.memory_space<vmem>>, vector<1x8x8xf32>
    %207 = vector.shape_cast %206 : vector<1x8x8xf32> to vector<8x8xf32>
    %cst_282 = arith.constant dense<0.000000e+00> : vector<8x8x8xf32>
    %208 = tpu.matmul %205, %207, %cst_282 {dimension_numbers = #tpu.dot_dimension_numbers<[2], [0], [0, 1], [1], [0, 0, 0, 1, 1, 1], [], []>} : vector<8x8x8xf32>, vector<8x8xf32>, vector<8x8x8xf32> -> vector<8x8x8xf32>
    %209 = arith.addf %204, %208 : vector<8x8x8xf32>
    %c1_283 = arith.constant 1 : index
    %c8_284 = arith.constant 8 : index
    %c0_285 = arith.constant 0 : index
    %210 = vector.load %arg12[%c1_283, %c8_284, %c0_285] : memref<10x17x8xf32, #tpu.memory_space<vmem>>, vector<8x8x8xf32>
    %c4_286 = arith.constant 4 : index
    %c0_287 = arith.constant 0 : index
    %c0_288 = arith.constant 0 : index
    %211 = vector.load %arg6[%c4_286, %c0_287, %c0_288] : memref<9x8x8xf32, #tpu.memory_space<vmem>>, vector<1x8x8xf32>
    %212 = vector.shape_cast %211 : vector<1x8x8xf32> to vector<8x8xf32>
    %cst_289 = arith.constant dense<0.000000e+00> : vector<8x8x8xf32>
    %213 = tpu.matmul %210, %212, %cst_289 {dimension_numbers = #tpu.dot_dimension_numbers<[2], [0], [0, 1], [1], [0, 0, 0, 1, 1, 1], [], []>} : vector<8x8x8xf32>, vector<8x8xf32>, vector<8x8x8xf32> -> vector<8x8x8xf32>
    %214 = arith.addf %209, %213 : vector<8x8x8xf32>
    %c1_290 = arith.constant 1 : index
    %c9_291 = arith.constant 9 : index
    %c0_292 = arith.constant 0 : index
    %215 = vector.load %arg12[%c1_290, %c9_291, %c0_292] : memref<10x17x8xf32, #tpu.memory_space<vmem>>, vector<8x8x8xf32>
    %c5_293 = arith.constant 5 : index
    %c0_294 = arith.constant 0 : index
    %c0_295 = arith.constant 0 : index
    %216 = vector.load %arg6[%c5_293, %c0_294, %c0_295] : memref<9x8x8xf32, #tpu.memory_space<vmem>>, vector<1x8x8xf32>
    %217 = vector.shape_cast %216 : vector<1x8x8xf32> to vector<8x8xf32>
    %cst_296 = arith.constant dense<0.000000e+00> : vector<8x8x8xf32>
    %218 = tpu.matmul %215, %217, %cst_296 {dimension_numbers = #tpu.dot_dimension_numbers<[2], [0], [0, 1], [1], [0, 0, 0, 1, 1, 1], [], []>} : vector<8x8x8xf32>, vector<8x8xf32>, vector<8x8x8xf32> -> vector<8x8x8xf32>
    %219 = arith.addf %214, %218 : vector<8x8x8xf32>
    %c2_297 = arith.constant 2 : index
    %c7_298 = arith.constant 7 : index
    %c0_299 = arith.constant 0 : index
    %220 = vector.load %arg12[%c2_297, %c7_298, %c0_299] : memref<10x17x8xf32, #tpu.memory_space<vmem>>, vector<8x8x8xf32>
    %c6_300 = arith.constant 6 : index
    %c0_301 = arith.constant 0 : index
    %c0_302 = arith.constant 0 : index
    %221 = vector.load %arg6[%c6_300, %c0_301, %c0_302] : memref<9x8x8xf32, #tpu.memory_space<vmem>>, vector<1x8x8xf32>
    %222 = vector.shape_cast %221 : vector<1x8x8xf32> to vector<8x8xf32>
    %cst_303 = arith.constant dense<0.000000e+00> : vector<8x8x8xf32>
    %223 = tpu.matmul %220, %222, %cst_303 {dimension_numbers = #tpu.dot_dimension_numbers<[2], [0], [0, 1], [1], [0, 0, 0, 1, 1, 1], [], []>} : vector<8x8x8xf32>, vector<8x8xf32>, vector<8x8x8xf32> -> vector<8x8x8xf32>
    %224 = arith.addf %219, %223 : vector<8x8x8xf32>
    %c2_304 = arith.constant 2 : index
    %c8_305 = arith.constant 8 : index
    %c0_306 = arith.constant 0 : index
    %225 = vector.load %arg12[%c2_304, %c8_305, %c0_306] : memref<10x17x8xf32, #tpu.memory_space<vmem>>, vector<8x8x8xf32>
    %c7_307 = arith.constant 7 : index
    %c0_308 = arith.constant 0 : index
    %c0_309 = arith.constant 0 : index
    %226 = vector.load %arg6[%c7_307, %c0_308, %c0_309] : memref<9x8x8xf32, #tpu.memory_space<vmem>>, vector<1x8x8xf32>
    %227 = vector.shape_cast %226 : vector<1x8x8xf32> to vector<8x8xf32>
    %cst_310 = arith.constant dense<0.000000e+00> : vector<8x8x8xf32>
    %228 = tpu.matmul %225, %227, %cst_310 {dimension_numbers = #tpu.dot_dimension_numbers<[2], [0], [0, 1], [1], [0, 0, 0, 1, 1, 1], [], []>} : vector<8x8x8xf32>, vector<8x8xf32>, vector<8x8x8xf32> -> vector<8x8x8xf32>
    %229 = arith.addf %224, %228 : vector<8x8x8xf32>
    %c2_311 = arith.constant 2 : index
    %c9_312 = arith.constant 9 : index
    %c0_313 = arith.constant 0 : index
    %230 = vector.load %arg12[%c2_311, %c9_312, %c0_313] : memref<10x17x8xf32, #tpu.memory_space<vmem>>, vector<8x8x8xf32>
    %c8_314 = arith.constant 8 : index
    %c0_315 = arith.constant 0 : index
    %c0_316 = arith.constant 0 : index
    %231 = vector.load %arg6[%c8_314, %c0_315, %c0_316] : memref<9x8x8xf32, #tpu.memory_space<vmem>>, vector<1x8x8xf32>
    %232 = vector.shape_cast %231 : vector<1x8x8xf32> to vector<8x8xf32>
    %cst_317 = arith.constant dense<0.000000e+00> : vector<8x8x8xf32>
    %233 = tpu.matmul %230, %232, %cst_317 {dimension_numbers = #tpu.dot_dimension_numbers<[2], [0], [0, 1], [1], [0, 0, 0, 1, 1, 1], [], []>} : vector<8x8x8xf32>, vector<8x8xf32>, vector<8x8x8xf32> -> vector<8x8x8xf32>
    %234 = arith.addf %229, %233 : vector<8x8x8xf32>
    %235 = vector.shape_cast %188 : vector<8xf32> to vector<1x1x8xf32>
    %236 = vector.broadcast %235 : vector<1x1x8xf32> to vector<8x8x8xf32>
    %237 = arith.addf %234, %236 : vector<8x8x8xf32>
    %c0_318 = arith.constant 0 : index
    %c0_319 = arith.constant 0 : index
    %c0_320 = arith.constant 0 : index
    %c0_321 = arith.constant 0 : index
    %238 = vector.load %arg8[%c0_318, %c0_319, %c0_320, %c0_321] : memref<1x8x8x8xf32, #tpu.memory_space<vmem>>, vector<1x8x8x8xf32>
    %239 = vector.shape_cast %238 : vector<1x8x8x8xf32> to vector<8x8x8xf32>
    %240 = vector.shape_cast %237 : vector<8x8x8xf32> to vector<1x8x8x8xf32>
    tpu.vector_store %arg8[%c0_318, %c0_319, %c0_320, %c0_321], %240 {strides = array<i32>} : memref<1x8x8x8xf32, #tpu.memory_space<vmem>>, vector<1x8x8x8xf32>,
    return
  }
  func.func @transform_0(%arg0: i32) -> (i32, i32, i32, i32) {
    %c0_i32 = arith.constant 0 : i32
    %c0_i32_0 = arith.constant 0 : i32
    %c0_i32_1 = arith.constant 0 : i32
    %c0_i32_2 = arith.constant 0 : i32
    return %arg0, %c0_i32, %c0_i32_0, %c0_i32_1 : i32, i32, i32, i32
  }
  func.func @transform_1(%arg0: i32) -> (i32, i32, i32) {
    %c0_i32 = arith.constant 0 : i32
    %c0_i32_0 = arith.constant 0 : i32
    %c0_i32_1 = arith.constant 0 : i32
    %c0_i32_2 = arith.constant 0 : i32
    return %c0_i32, %c0_i32_0, %c0_i32_1 : i32, i32, i32
  }
  func.func @transform_2(%arg0: i32) -> (i32, i32) {
    %c0_i32 = arith.constant 0 : i32
    %c0_i32_0 = arith.constant 0 : i32
    %c0_i32_1 = arith.constant 0 : i32
    return %c0_i32, %c0_i32_0 : i32, i32
  }
  func.func @transform_3(%arg0: i32) -> (i32, i32, i32) {
    %c0_i32 = arith.constant 0 : i32
    %c0_i32_0 = arith.constant 0 : i32
    %c0_i32_1 = arith.constant 0 : i32
    %c0_i32_2 = arith.constant 0 : i32
    return %c0_i32, %c0_i32_0, %c0_i32_1 : i32, i32, i32
  }
  func.func @transform_4(%arg0: i32) -> (i32, i32) {
    %c0_i32 = arith.constant 0 : i32
    %c0_i32_0 = arith.constant 0 : i32
    %c0_i32_1 = arith.constant 0 : i32
    return %c0_i32, %c0_i32_0 : i32, i32
  }
  func.func @transform_5(%arg0: i32) -> (i32, i32, i32) {
    %c0_i32 = arith.constant 0 : i32
    %c0_i32_0 = arith.constant 0 : i32
    %c0_i32_1 = arith.constant 0 : i32
    %c0_i32_2 = arith.constant 0 : i32
    return %c0_i32, %c0_i32_0, %c0_i32_1 : i32, i32, i32
  }
  func.func @transform_6(%arg0: i32) -> (i32, i32) {
    %c0_i32 = arith.constant 0 : i32
    %c0_i32_0 = arith.constant 0 : i32
    %c0_i32_1 = arith.constant 0 : i32
    return %c0_i32, %c0_i32_0 : i32, i32
  }
  func.func @transform_7(%arg0: i32) -> (i32, i32, i32, i32) {
    %c0_i32 = arith.constant 0 : i32
    %c0_i32_0 = arith.constant 0 : i32
    %c0_i32_1 = arith.constant 0 : i32
    %c0_i32_2 = arith.constant 0 : i32
    return %arg0, %c0_i32, %c0_i32_0, %c0_i32_1 : i32, i32, i32, i32
  }
}

</mosaic_0001>

<bundles_post_ra>
// kernel: tpu_custom_call.1
= control target key start
LH: loop header
LB: loop body
LE: loop exit
PB: predicated region body
PF: predicated region fallthrough
CT: control target
= control target key end

     0   :  { %12 = vsyncpa [#allocation7], 0  ;;  %s11429_s0 = inlined_call_operand.vmem [shape: f32[2,16,16,3], index: 0, kind: input, shape index: {}]   ;;  %s11430_s1 = inlined_call_operand.vmem [shape: f32[9,3,8], index: 1, kind: input, shape index: {}]   ;;  %s11431_s2 = inlined_call_operand.vmem [shape: f32[1,8], index: 2, kind: input, shape index: {}]   ;;  %s11432_s3 = inlined_call_operand.vmem [shape: f32[9,8,8], index: 3, kind: input, shape index: {}]   ;;  %s11433_s4 = inlined_call_operand.vmem [shape: f32[1,8], index: 4, kind: input, shape index: {}]   ;;  %s11434_s5 = inlined_call_operand.vmem [shape: f32[9,8,8], index: 5, kind: input, shape index: {}]   ;;  %s11435_s6 = inlined_call_operand.vmem [shape: f32[1,8], index: 6, kind: input, shape index: {}]   ;;  %s11436_s7 = inlined_call_operand.hbm [shape: f32[2,8,8,8], index: 7, kind: output, shape index: {}]  }
   0x1   :  { %14 = vsyncpa [#allocation7 + $0x1], 0  ;;  %s9698_s24 = smov 0   ;;  %s9700_s25 = smov 0  }
   0x2   :  { %s9702_s26 = smov 0   ;;  %s9704_s27 = smov 0  }
   0x3 LB: > { %s9719_s28 = sadd.s32 4294967295, %s9652_s27   ;;  %s7477_s29 = sadd.s32 4294967294, %s9652_s27   ;;  %s9652_s27 = sphi %s9704_s27, %s11562_s27   ;;  %s9648_s26 = sphi %s9702_s26, %s11561_s26   ;;  %s9644_s25 = sphi %s9700_s25, %s11560_s25   ;;  %s9640_s24 = sphi %s9698_s24, %s11559_s24  }
   0x4   : > { %s9723_s30 = sadd.s32 1, %s9652_s27   ;;  %s179_s8 = sadd.s32 1, %s9648_s26 }
   0x5   : > { %s176_s9 = ssub.s32 %s9652_s27, %s9723_s30  ;;  %p189_p0 = scmp.ne.s32.totalorder %s9648_s26, %s9644_s25 }
   0x6   : > { %p177_p1 = scmp.eq.s32.totalorder %s176_s9, 0  ;;  %p190_p2 = scmp.eq.s32.totalorder %s9719_s28, 1 }
   0x7   : > { %p195_p3 = scmp.ne.s32.totalorder %s9644_s25, %s9640_s24  ;;  %p196_p4 = scmp.eq.s32.totalorder %s7477_s29, 1 }
   0x8   : > { %s9734_s10 = scalar_select %p177_p1, %s9648_s26, %s179_s8  }
   0x9   : > { %p9736_p5 = por %p190_p2, %p189_p0  ;;  %p9740_p6 = por %p196_p4, %p195_p3 }
   0xa   : > { %p7480_p7 = scmp.ge.s32.totalorder %s9652_s27, 1  ;;  %p240_p8 = scmp.lt.s32.totalorder %s9652_s27, 3 }
   0xc   : > { %p241_p9 = pnand %p7480_p7, %p240_p8 }
   0xe   : > { %244 = sbr.rel (%p241_p9) target bundleno = 1288 (0x508), region = 48 }
  0x15   : > { %v7484_v0 = vld [vmem:[%s11430_s1 + $0x4] sm:$0x7]  ;;  %vm529_vm0 = vcmask 1042432   ;;  %vm277_vm1 = vcmask 23552   ;;  %p272_p10 = scmp.lt.s32.totalorder %s9719_s28, 1  ;;  %v11437_v1 = vmov 0.0  }
  0x16   : > { %8444 = vmatprep.subr.msk.mxu0 %vm529_vm0, %v7484_v0  ;;  %279 = vst.msk [vmem:[#allocation2 + $0x8] sm:$0xff] %vm277_vm1, %v11437_v1  ;;  %278 = vst.msk [vmem:[#allocation2] sm:$0xff] %vm277_vm1, %v11437_v1  ;;  %v9766_v2 = vld [vmem:[%s11430_s1] sm:$0x7]  ;;  %v7646_v3 = vld [vmem:[%s11430_s1 + $0x4] sm:$0x7] }
  0x17   : > { %280 = vst.msk [vmem:[#allocation2 + $0x10] sm:$0xff] %vm277_vm1, %v11437_v1  ;;  %284 = vst.msk [vmem:[#allocation2 + $0x220] sm:$0xff] %vm277_vm1, %v11437_v1  ;;  %v9774_v4 = vld [vmem:[%s11430_s1] sm:$0x7]  ;;  %8445 = vmatpush3.msk.msra.mxu0 %vm529_vm0, %v7484_v0  ;;  %8678 = vmatprep.subr.msk.mxu1 %vm529_vm0, %v7646_v3  ;;  %s9781_s21 = scalar_select %p272_p10, %s9719_s28, 1  ;;  %vm281_vm2 = vcmask 16384  }
  0x18   : > { %285 = vst.msk [vmem:[#allocation2 + $0x228] sm:$0xff] %vm277_vm1, %v11437_v1  ;;  %286 = vst.msk [vmem:[#allocation2 + $0x230] sm:$0xff] %vm277_vm1, %v11437_v1  ;;  %8470 = vmatprep.subr.msk.mxu0 %vm529_vm0, %v9766_v2  ;;  %8679 = vmatpush3.msk.msra.mxu1 %vm529_vm0, %v7646_v3  ;;  %v9882_v11 = vld [vmem:[%s11430_s1 + $0x8] sm:$0x7]  ;;  %vm389_vm3 = vcmask 64512   ;;  %vm392_vm4 = vcmask 57344  }
  0x19   : > { %288 = vst.msk [vmem:[#allocation2 + $0x7] sm:$0x1] %vm281_vm2, %v11437_v1  ;;  %282 = vst.msk [vmem:[#allocation2 + $0x18] sm:$0x1] %vm281_vm2, %v11437_v1  ;;  %s7974_s22 = sshll.u32 %s9781_s21, 8  ;;  %8704 = vmatprep.subr.msk.mxu1 %vm529_vm0, %v9774_v4  ;;  %s269_s29 = sand.u32 1, %s9644_s25  }
  0x1a   : > { %287 = vst.msk [vmem:[#allocation2 + $0x238] sm:$0x1] %vm281_vm2, %v11437_v1  ;;  %289 = vst.msk [vmem:[#allocation2 + $0x27] sm:$0x1] %vm281_vm2, %v11437_v1  ;;  %s9868_s8 = scalar_lea.vmem %s11429_s0, %s7974_s22  ;;  %v9950_v38 = vld [vmem:[%s11430_s1 + $0x8] sm:$0x7] }
  0x1b   : > { %290 = vst.msk [vmem:[#allocation2 + $0x47] sm:$0x1] %vm281_vm2, %v11437_v1  ;;  %291 = vst.msk [vmem:[#allocation2 + $0x67] sm:$0x1] %vm281_vm2, %v11437_v1  ;;  %v324_v5 = vld [vmem:[%s9868_s8] sm:$0xff]  ;;  %v338_v6 = vld [vmem:[%s9868_s8 + $0x70] sm:$0xff] }
  0x1c   : > { %292 = vst.msk [vmem:[#allocation2 + $0x87] sm:$0x1] %vm281_vm2, %v11437_v1  ;;  %293 = vst.msk [vmem:[#allocation2 + $0xa7] sm:$0x1] %vm281_vm2, %v11437_v1  ;;  %v325_v7 = vld [vmem:[%s9868_s8 + $0x8] sm:$0xff]  ;;  %v339_v8 = vld [vmem:[%s9868_s8 + $0x78] sm:$0xff] }
  0x1d   : > { %294 = vst.msk [vmem:[#allocation2 + $0xc7] sm:$0x1] %vm281_vm2, %v11437_v1  ;;  %295 = vst.msk [vmem:[#allocation2 + $0xe7] sm:$0x1] %vm281_vm2, %v11437_v1  ;;  %v326_v9 = vld [vmem:[%s9868_s8 + $0x10] sm:$0xff]  ;;  %v340_v10 = vld [vmem:[%s9868_s8 + $0x80] sm:$0xff] }
  0x1e   : > { %296 = vst.msk [vmem:[#allocation2 + $0x107] sm:$0x1] %vm281_vm2, %v11437_v1  ;;  %297 = vst.msk [vmem:[#allocation2 + $0x127] sm:$0x1] %vm281_vm2, %v11437_v1  ;;  %v463_v12 = vld [vmem:[#allocation2 + $0x8] sm:$0xff]  ;;  %v464_v13 = vld [vmem:[#allocation2 + $0x10] sm:$0xff] }
  0x1f   : > { %298 = vst.msk [vmem:[#allocation2 + $0x147] sm:$0x1] %vm281_vm2, %v11437_v1  ;;  %299 = vst.msk [vmem:[#allocation2 + $0x167] sm:$0x1] %vm281_vm2, %v11437_v1  ;;  %v327_v14 = vld [vmem:[%s9868_s8 + $0x18] sm:$0xff]  ;;  %8446 = vmatprep.mubr.msk.f32.mxu0 %vm277_vm1, %v463_v12  ;;  %v341_v15 = vld [vmem:[%s9868_s8 + $0x88] sm:$0xff] }
  0x20   : > { %300 = vst.msk [vmem:[#allocation2 + $0x187] sm:$0x1] %vm281_vm2, %v11437_v1  ;;  %301 = vst.msk [vmem:[#allocation2 + $0x1a7] sm:$0x1] %vm281_vm2, %v11437_v1  ;;  %v328_v16 = vld [vmem:[%s9868_s8 + $0x20] sm:$0xff]  ;;  %v342_v17 = vld [vmem:[%s9868_s8 + $0x90] sm:$0xff]  ;;  %8447 = vmatmul.mubr.msk.f32.vlgmr.msra.gmra.mrb[0].mxu0 %vm277_vm1, %v464_v13 }
  0x21   : > { %302 = vst.msk [vmem:[#allocation2 + $0x1c7] sm:$0x1] %vm281_vm2, %v11437_v1  ;;  %303 = vst.msk [vmem:[#allocation2 + $0x1e7] sm:$0x1] %vm281_vm2, %v11437_v1  ;;  %v329_v18 = vld [vmem:[%s9868_s8 + $0x28] sm:$0xff]  ;;  %v343_v19 = vld [vmem:[%s9868_s8 + $0x98] sm:$0xff]  ;;  %8471 = vmatpush3.msk.msra.mxu0 %vm529_vm0, %v9766_v2 }
  0x22   : > { %304 = vst.msk [vmem:[#allocation2 + $0x207] sm:$0x1] %vm281_vm2, %v11437_v1  ;;  %305 = vst.msk [vmem:[#allocation2 + $0x227] sm:$0x1] %vm281_vm2, %v11437_v1  ;;  %v330_v20 = vld [vmem:[%s9868_s8 + $0x30] sm:$0xff]  ;;  %v344_v21 = vld [vmem:[%s9868_s8 + $0xa0] sm:$0xff]  ;;  %8496 = vmatprep.subr.msk.mxu0 %vm529_vm0, %v9882_v11 }
  0x23   : > { %307 = vst.msk [vmem:[#allocation2 + $0x38] sm:$0x1] %vm281_vm2, %v11437_v1  ;;  %308 = vst.msk [vmem:[#allocation2 + $0x58] sm:$0x1] %vm281_vm2, %v11437_v1  ;;  %v331_v22 = vld [vmem:[%s9868_s8 + $0x38] sm:$0xff]  ;;  %v345_v23 = vld [vmem:[%s9868_s8 + $0xa8] sm:$0xff] }
  0x24   : > { %309 = vst.msk [vmem:[#allocation2 + $0x78] sm:$0x1] %vm281_vm2, %v11437_v1  ;;  %310 = vst.msk [vmem:[#allocation2 + $0x98] sm:$0x1] %vm281_vm2, %v11437_v1  ;;  %v332_v24 = vld [vmem:[%s9868_s8 + $0x40] sm:$0xff]  ;;  %v346_v25 = vld [vmem:[%s9868_s8 + $0xb0] sm:$0xff] }
  0x25   : > { %311 = vst.msk [vmem:[#allocation2 + $0xb8] sm:$0x1] %vm281_vm2, %v11437_v1  ;;  %312 = vst.msk [vmem:[#allocation2 + $0xd8] sm:$0x1] %vm281_vm2, %v11437_v1  ;;  %v333_v26 = vld [vmem:[%s9868_s8 + $0x48] sm:$0xff]  ;;  %v347_v27 = vld [vmem:[%s9868_s8 + $0xb8] sm:$0xff] }
  0x26   : > { %313 = vst.msk [vmem:[#allocation2 + $0xf8] sm:$0x1] %vm281_vm2, %v11437_v1  ;;  %314 = vst.msk [vmem:[#allocation2 + $0x118] sm:$0x1] %vm281_vm2, %v11437_v1  ;;  %v334_v28 = vld [vmem:[%s9868_s8 + $0x50] sm:$0xff]  ;;  %v348_v29 = vld [vmem:[%s9868_s8 + $0xc0] sm:$0xff] }
  0x27   : > { %315 = vst.msk [vmem:[#allocation2 + $0x138] sm:$0x1] %vm281_vm2, %v11437_v1  ;;  %316 = vst.msk [vmem:[#allocation2 + $0x158] sm:$0x1] %vm281_vm2, %v11437_v1  ;;  %v335_v36 = vld [vmem:[%s9868_s8 + $0x58] sm:$0xff]  ;;  %v349_v37 = vld [vmem:[%s9868_s8 + $0xc8] sm:$0xff] }
  0x28   : > { %317 = vst.msk [vmem:[#allocation2 + $0x178] sm:$0x1] %vm281_vm2, %v11437_v1  ;;  %318 = vst.msk [vmem:[#allocation2 + $0x198] sm:$0x1] %vm281_vm2, %v11437_v1  ;;  %v336_v47 = vld [vmem:[%s9868_s8 + $0x60] sm:$0xff]  ;;  %v350_v48 = vld [vmem:[%s9868_s8 + $0xd0] sm:$0xff] }
  0x29   : > { %319 = vst.msk [vmem:[#allocation2 + $0x1b8] sm:$0x1] %vm281_vm2, %v11437_v1  ;;  %320 = vst.msk [vmem:[#allocation2 + $0x1d8] sm:$0x1] %vm281_vm2, %v11437_v1  ;;  %v337_v49 = vld [vmem:[%s9868_s8 + $0x68] sm:$0xff]  ;;  %v351_v50 = vld [vmem:[%s9868_s8 + $0xd8] sm:$0xff] }
  0x2a   : > { %321 = vst.msk [vmem:[#allocation2 + $0x1f8] sm:$0x1] %vm281_vm2, %v11437_v1  ;;  %322 = vst.msk [vmem:[#allocation2 + $0x218] sm:$0x1] %vm281_vm2, %v11437_v1  ;;  %v352_v51 = vld [vmem:[%s9868_s8 + $0xe0] sm:$0xff]  ;;  %v353_v54 = vld [vmem:[%s9868_s8 + $0xe8] sm:$0xff] }
  0x2b   : > { %306 = vst.msk [vmem:[#allocation2 + $0x18] sm:$0x1] %vm281_vm2, %v11437_v1  ;;  %323 = vst.msk [vmem:[#allocation2 + $0x238] sm:$0x1] %vm281_vm2, %v11437_v1  ;;  %s7975_s15 = sshll.u32 %s9719_s28, 10  ;;  %s11388_s28 = scalar_lea.sflag [#allocation7], %s269_s29 }
  0x2c   : > { %357 = vst.msk [vmem:[#allocation2 + $0x28] sm:$0xff] %vm277_vm1, %v324_v5  ;;  %371 = vst.msk [vmem:[#allocation2 + $0x108] sm:$0xff] %vm277_vm1, %v338_v6  ;;  %v447_v6 = vld [vmem:[#allocation2 + $0xf] sm:$0xff]  ;;  %s11380_s19 = scalar_lea.hbm %s11436_s7, %s7975_s15  ;;  %s9655_s21 = smov [#allocation6]  }
  0x2d   : > { %358 = vst.msk [vmem:[#allocation2 + $0x30] sm:$0xff] %vm277_vm1, %v325_v7  ;;  %372 = vst.msk [vmem:[#allocation2 + $0x110] sm:$0xff] %vm277_vm1, %v339_v8  ;;  %s9594_s22 = sshll.u32 %s9655_s21, 4  ;;  %s9595_s22 = int_to_ptr.vmem [resolvable:$false] %s9594_s22 }
  0x2e   : > { %359 = vst.msk [vmem:[#allocation2 + $0x48] sm:$0xff] %vm277_vm1, %v326_v9  ;;  %373 = vst.msk [vmem:[#allocation2 + $0x128] sm:$0xff] %vm277_vm1, %v340_v10  ;;  %v10076_v10 = vld [vmem:[%s11430_s1 + $0xc] sm:$0x7]  ;;  %s9596_s23 = scalar_lea.vmem %s9595_s22, 2048 }
  0x2f   : > { %360 = vst.msk [vmem:[#allocation2 + $0x50] sm:$0xff] %vm277_vm1, %v327_v14  ;;  %374 = vst.msk [vmem:[#allocation2 + $0x130] sm:$0xff] %vm277_vm1, %v341_v15 }
  0x30   : > { %361 = vst.msk [vmem:[#allocation2 + $0x68] sm:$0xff] %vm277_vm1, %v328_v16  ;;  %375 = vst.msk [vmem:[#allocation2 + $0x148] sm:$0xff] %vm277_vm1, %v342_v17  ;;  %v354_v16 = vld [vmem:[%s9868_s8 + $0xf0] sm:$0xff]  ;;  %v355_v17 = vld [vmem:[%s9868_s8 + $0xf8] sm:$0xff]  ;;  %s7481_s8 = sshll.u32 %s269_s29, 6 }
  0x31   : > { %362 = vst.msk [vmem:[#allocation2 + $0x70] sm:$0xff] %vm277_vm1, %v329_v18  ;;  %376 = vst.msk [vmem:[#allocation2 + $0x150] sm:$0xff] %vm277_vm1, %v343_v19  ;;  %s271_s14 = scalar_lea.vmem [#allocation6], %s7481_s8 }
  0x32   : > { %363 = vst.msk [vmem:[#allocation2 + $0x88] sm:$0xff] %vm277_vm1, %v330_v20  ;;  %377 = vst.msk [vmem:[#allocation2 + $0x168] sm:$0xff] %vm277_vm1, %v344_v21  ;;  %s7415_s16 = sshll.u32 %s271_s14, 4  ;;  %s11382_s16 = int_to_ptr.vmem [resolvable:$true] %s7415_s16 }
  0x33   : > { %364 = vst.msk [vmem:[#allocation2 + $0x90] sm:$0xff] %vm277_vm1, %v331_v22  ;;  %378 = vst.msk [vmem:[#allocation2 + $0x170] sm:$0xff] %vm277_vm1, %v345_v23  ;;  %v9922_v30 = vld [vmem:[#allocation2 + $0x28] sm:$0xff]  ;;  %s9590_s20 = scalar_lea.vmem %s11382_s16, 1024  ;;  %p9597_p0 = scmp.lt.s32.totalorder %s11382_s16, %s9595_s22 }
  0x34   : > { %365 = vst.msk [vmem:[#allocation2 + $0xa8] sm:$0xff] %vm277_vm1, %v332_v24  ;;  %379 = vst.msk [vmem:[#allocation2 + $0x188] sm:$0xff] %vm277_vm1, %v346_v25  ;;  %v9924_v31 = vld [vmem:[#allocation2 + $0x108] sm:$0xff]  ;;  %v9926_v32 = vld [vmem:[#allocation2 + $0x30] sm:$0xff]  ;;  %8449 = vmatprep.mubr.msk.f32.mxu0 %vm277_vm1, %v9922_v30  ;;  %p9591_p11 = scmp.ne.s32.totalorder %s11382_s16, %s9590_s20  ;;  %p9598_p1 = scmp.lt.s32.totalorder %s9596_s23, %s9590_s20 }
  0x35   : > { %366 = vst.msk [vmem:[#allocation2 + $0xb0] sm:$0xff] %vm277_vm1, %v333_v26  ;;  %11495 = vst [vmem:[#allocation9_spill] sm:$0xff] %v9924_v31  ;;  %8680 = vmatprep.mubr.msk.f32.mxu1 %vm277_vm1, %v9924_v31  ;;  %v9935_v33 = vld [vmem:[#allocation2 + $0x110] sm:$0xff]  ;;  %v9937_v34 = vld [vmem:[#allocation2 + $0x48] sm:$0xff]  ;;  %8450 = vmatmul.mubr.msk.f32.gmra.mrb[2].mxu0 %vm277_vm1, %v9926_v32 }
  0x36   : > { %380 = vst.msk [vmem:[#allocation2 + $0x190] sm:$0xff] %vm277_vm1, %v347_v27  ;;  %367 = vst.msk [vmem:[#allocation2 + $0xc8] sm:$0xff] %vm277_vm1, %v334_v28  ;;  %v9939_v35 = vld [vmem:[#allocation2 + $0x128] sm:$0xff]  ;;  %8681 = vmatmul.mubr.msk.f32.vlgmr.msra.gmra.mrb[0].mxu1 %vm277_vm1, %v9935_v33  ;;  %8452 = vmatprep.mubr.msk.f32.mxu0 %vm277_vm1, %v9937_v34  ;;  %v9956_v39 = vld [vmem:[#allocation2 + $0x50] sm:$0xff]  ;;  %p9592_p12 = pnand %p9591_p11, %p9736_p5  ;;  %p9599_p2 = por %p9598_p1, %p9597_p0 }
  0x37   : > { %381 = vst.msk [vmem:[#allocation2 + $0x1a8] sm:$0xff] %vm277_vm1, %v348_v29  ;;  %11496 = vst [vmem:[#allocation10_spill] sm:$0xff] %v9935_v33  ;;  %8683 = vmatprep.mubr.msk.f32.mxu1 %vm277_vm1, %v9939_v35  ;;  %v9958_v40 = vld [vmem:[#allocation2 + $0x130] sm:$0xff]  ;;  %v9962_v41 = vld [vmem:[#allocation2 + $0x68] sm:$0xff]  ;;  %8705 = vmatpush3.msk.msra.mxu1 %vm529_vm0, %v9774_v4 }
  0x38   : > { %368 = vst.msk [vmem:[#allocation2 + $0xd0] sm:$0xff] %vm277_vm1, %v335_v36  ;;  %382 = vst.msk [vmem:[#allocation2 + $0x1b0] sm:$0xff] %vm277_vm1, %v349_v37  ;;  %v9964_v42 = vld [vmem:[#allocation2 + $0x148] sm:$0xff]  ;;  %8730 = vmatprep.subr.msk.mxu1 %vm529_vm0, %v9950_v38  ;;  %v9974_v43 = vld [vmem:[#allocation2 + $0x70] sm:$0xff]  ;;  %p9593_p13 = pneg %p9592_p12 }
  0x39   : > { %8453 = vmatmul.mubr.msk.f32.gmra.mrb[4].mxu0 %vm277_vm1, %v9956_v39  ;;  %v9980_v44 = vld [vmem:[#allocation2 + $0x150] sm:$0xff]  ;;  %v9982_v45 = vld [vmem:[#allocation2 + $0x88] sm:$0xff]  ;;  %369 = vst.msk [vmem:[#allocation2 + $0xe8] sm:$0xff] %vm277_vm1, %v336_v47  ;;  %383 = vst.msk [vmem:[#allocation2 + $0x1c8] sm:$0xff] %vm277_vm1, %v350_v48 }
  0x3a   : > { %8684 = vmatmul.mubr.msk.f32.gmra.mrb[2].mxu1 %vm277_vm1, %v9958_v40  ;;  %8455 = vmatprep.mubr.msk.f32.mxu0 %vm277_vm1, %v9962_v41  ;;  %v9984_v46 = vld [vmem:[#allocation2 + $0x168] sm:$0xff]  ;;  %370 = vst.msk [vmem:[#allocation2 + $0xf0] sm:$0xff] %vm277_vm1, %v337_v49  ;;  %384 = vst.msk [vmem:[#allocation2 + $0x1d0] sm:$0xff] %vm277_vm1, %v351_v50  ;;  %v10004_v52 = vld [vmem:[#allocation2 + $0x90] sm:$0xff]  ;;  %p9600_p3 = pnand %p9599_p2, %p9593_p13 }
  0x3b   : > { %8686 = vmatprep.mubr.msk.f32.mxu1 %vm277_vm1, %v9964_v42  ;;  %385 = vst.msk [vmem:[#allocation2 + $0x1e8] sm:$0xff] %vm277_vm1, %v352_v51  ;;  %v10006_v53 = vld [vmem:[#allocation2 + $0x170] sm:$0xff]  ;;  %v10009_v55 = vld [vmem:[#allocation2 + $0xa8] sm:$0xff]  ;;  %386 = vst.msk [vmem:[#allocation2 + $0x1f0] sm:$0xff] %vm277_vm1, %v353_v54 }
  0x3c   : > { %v10011_v56 = vld [vmem:[#allocation2 + $0x188] sm:$0xff]  ;;  %v10022_v57 = vld [vmem:[#allocation2 + $0xb0] sm:$0xff]  ;;  %387 = vst.msk [vmem:[#allocation2 + $0x208] sm:$0xff] %vm277_vm1, %v354_v16  ;;  %388 = vst.msk [vmem:[#allocation2 + $0x210] sm:$0xff] %vm277_vm1, %v355_v17 }
  0x3d   : > { %8456 = vmatmul.mubr.msk.f32.gmra.mrb[6].mxu0 %vm277_vm1, %v9974_v43  ;;  %v10024_v58 = vld [vmem:[#allocation2 + $0x190] sm:$0xff]  ;;  %v10026_v59 = vld [vmem:[#allocation2 + $0xc8] sm:$0xff] }
  0x3e   : > { %8687 = vmatmul.mubr.msk.f32.gmra.mrb[4].mxu1 %vm277_vm1, %v9980_v44  ;;  %8458 = vmatprep.mubr.msk.f32.mxu0 %vm277_vm1, %v9982_v45  ;;  %v10028_v60 = vld [vmem:[#allocation2 + $0x1a8] sm:$0xff]  ;;  %v875_v17 = vld [vmem:[#allocation2 + $0x11] sm:$0xff] }
  0x3f   : > { %8689 = vmatprep.mubr.msk.f32.mxu1 %vm277_vm1, %v9984_v46  ;;  %v10038_v61 = vld [vmem:[#allocation2 + $0xd0] sm:$0xff]  ;;  %v446_v4 = vld [vmem:[#allocation2 + $0x7] sm:$0xff] }
  0x40   : > { %v10040_v62 = vld [vmem:[#allocation2 + $0x1b0] sm:$0xff]  ;;  %v10042_v63 = vld [vmem:[#allocation2 + $0xe8] sm:$0xff] }
  0x41   : > { %8459 = vmatmul.mubr.msk.f32.gmra.mrb[8].mxu0 %vm277_vm1, %v10004_v52  ;;  %v10044_v0 = vld [vmem:[#allocation2 + $0x1c8] sm:$0xff]  ;;  %v10054_v2 = vld [vmem:[#allocation2 + $0xf0] sm:$0xff] }
  0x42   : > { %8690 = vmatmul.mubr.msk.f32.gmra.mrb[6].mxu1 %vm277_vm1, %v10006_v53  ;;  %8461 = vmatprep.mubr.msk.f32.mxu0 %vm277_vm1, %v10009_v55  ;;  %11497 = vst [vmem:[#allocation11_spill] sm:$0xff] %v10054_v2  ;;  %v10056_v3 = vld [vmem:[#allocation2 + $0x1d0] sm:$0xff]  ;;  %v10058_v5 = vld [vmem:[#allocation2 + $0x1e8] sm:$0xff] }
  0x43   : > { %8692 = vmatprep.mubr.msk.f32.mxu1 %vm277_vm1, %v10011_v56  ;;  %11498 = vst [vmem:[#allocation12_spill] sm:$0xff] %v10056_v3  ;;  %11499 = vst [vmem:[#allocation13_spill] sm:$0xff] %v10058_v5  ;;  %v10067_v7 = vld [vmem:[#allocation2 + $0x1f0] sm:$0xff]  ;;  %v10069_v8 = vld [vmem:[#allocation2 + $0x27] sm:$0xff] }
  0x44   : > { %11500 = vst [vmem:[#allocation14_spill] sm:$0xff] %v10067_v7  ;;  %v10071_v9 = vld [vmem:[#allocation2 + $0x107] sm:$0xff]  ;;  %v10085_v12 = vld [vmem:[#allocation2 + $0x2f] sm:$0xff] }
  0x45   : > { %8462 = vmatmul.mubr.msk.f32.gmra.mrb[10].mxu0 %vm277_vm1, %v10022_v57  ;;  %v10087_v13 = vld [vmem:[#allocation2 + $0x10f] sm:$0xff]  ;;  %v10091_v14 = vld [vmem:[#allocation2 + $0x47] sm:$0xff] }
  0x46   : > { %8693 = vmatmul.mubr.msk.f32.gmra.mrb[8].mxu1 %vm277_vm1, %v10024_v58  ;;  %8464 = vmatprep.mubr.msk.f32.mxu0 %vm277_vm1, %v10026_v59  ;;  %v10093_v15 = vld [vmem:[#allocation2 + $0x127] sm:$0xff]  ;;  %v10112_v18 = vld [vmem:[#allocation2 + $0x4f] sm:$0xff] }
  0x47   : > { %8695 = vmatprep.mubr.msk.f32.mxu1 %vm277_vm1, %v10028_v60  ;;  %v10114_v19 = vld [vmem:[#allocation2 + $0x12f] sm:$0xff]  ;;  %v10118_v20 = vld [vmem:[#allocation2 + $0x67] sm:$0xff] }
  0x48   : > { %v10120_v21 = vld [vmem:[#allocation2 + $0x147] sm:$0xff]  ;;  %v10134_v22 = vld [vmem:[#allocation2 + $0x6f] sm:$0xff] }
  0x49   : > { %8465 = vmatmul.mubr.msk.f32.gmra.mrb[12].mxu0 %vm277_vm1, %v10038_v61  ;;  %v10136_v23 = vld [vmem:[#allocation2 + $0x14f] sm:$0xff]  ;;  %v10138_v24 = vld [vmem:[#allocation2 + $0x87] sm:$0xff] }
  0x4a   : > { %8696 = vmatmul.mubr.msk.f32.gmra.mrb[10].mxu1 %vm277_vm1, %v10040_v62  ;;  %8467 = vmatprep.mubr.msk.f32.mxu0 %vm277_vm1, %v10042_v63  ;;  %v10140_v25 = vld [vmem:[#allocation2 + $0x167] sm:$0xff]  ;;  %v10150_v26 = vld [vmem:[#allocation2 + $0x8f] sm:$0xff] }
  0x4b   : > { %8698 = vmatprep.mubr.msk.f32.mxu1 %vm277_vm1, %v10044_v0  ;;  %v10152_v27 = vld [vmem:[#allocation2 + $0x16f] sm:$0xff]  ;;  %v10154_v28 = vld [vmem:[#allocation2 + $0xa7] sm:$0xff] }
  0x4c   : > { %v10156_v29 = vld [vmem:[#allocation2 + $0x187] sm:$0xff]  ;;  %v10166_v36 = vld [vmem:[#allocation2 + $0xaf] sm:$0xff] }
  0x4d   : > { %8468 = vmatmul.mubr.msk.f32.gmra.mrb[14].mxu0 %vm277_vm1, %v10054_v2  ;;  %v10168_v37 = vld [vmem:[#allocation2 + $0x18f] sm:$0xff]  ;;  %v10172_v47 = vld [vmem:[#allocation2 + $0x1a7] sm:$0xff] }
  0x4e   : > { %8699 = vmatmul.mubr.msk.f32.gmra.mrb[12].mxu1 %vm277_vm1, %v10056_v3  ;;  %8472 = vmatprep.mubr.msk.f32.mxu0 %vm277_vm1, %v446_v4  ;;  %v10182_v48 = vld [vmem:[#allocation2 + $0xcf] sm:$0xff]  ;;  %v10186_v50 = vld [vmem:[#allocation2 + $0xe7] sm:$0xff] }
  0x4f   : > { %8701 = vmatprep.mubr.msk.f32.mxu1 %vm277_vm1, %v10058_v5  ;;  %v10184_v49 = vld [vmem:[#allocation2 + $0x1af] sm:$0xff]  ;;  %v10188_v51 = vld [vmem:[#allocation2 + $0x1c7] sm:$0xff] }
  0x50   : > { %v10198_v54 = vld [vmem:[#allocation2 + $0xef] sm:$0xff]  ;;  %v10202_v16 = vld [vmem:[#allocation2 + $0x1e7] sm:$0xff] }
  0x51   : > { %8473 = vmatmul.mubr.msk.f32.vlgmr.msra.gmra.mrb[0].mxu0 %vm277_vm1, %v447_v6  ;;  %v10200_v4 = vld [vmem:[#allocation2 + $0x1cf] sm:$0xff] }
  0x52   : > { %8702 = vmatmul.mubr.msk.f32.gmra.mrb[14].mxu1 %vm277_vm1, %v10067_v7  ;;  %8497 = vmatpush3.msk.msra.mxu0 %vm529_vm0, %v9882_v11  ;;  %v10104_v11 = vld [vmem:[%s11430_s1 + $0xc] sm:$0x7]  ;;  %v10211_v1 = vld [vmem:[#allocation2 + $0x1ef] sm:$0xff] }
  0x53   : > { %8475 = vmatprep.mubr.msk.f32.mxu0 %vm277_vm1, %v10069_v8  ;;  %8706 = vmatprep.mubr.msk.f32.mxu1 %vm277_vm1, %v10071_v9  ;;  %v874_v6 = vld [vmem:[#allocation2 + $0x9] sm:$0xff]  ;;  %v10231_v31 = vld [vmem:[#allocation2 + $0x111] sm:$0xff] }
  0x54   : > { %8522 = vmatprep.subr.msk.mxu0 %vm529_vm0, %v10076_v10  ;;  %v10213_v7 = vld [vmem:[#allocation2 + $0x29] sm:$0xff]  ;;  %11504 = vst [vmem:[#allocation18_spill] sm:$0xff] %v10231_v31 }
  0x55   : > { %8476 = vmatmul.mubr.msk.f32.gmra.mrb[2].mxu0 %vm277_vm1, %v10085_v12  ;;  %11501 = vst [vmem:[#allocation15_spill] sm:$0xff] %v10213_v7  ;;  %v10215_v33 = vld [vmem:[#allocation2 + $0x109] sm:$0xff] }
  0x56   : > { %8707 = vmatmul.mubr.msk.f32.vlgmr.msra.gmra.mrb[0].mxu1 %vm277_vm1, %v10087_v13  ;;  %8478 = vmatprep.mubr.msk.f32.mxu0 %vm277_vm1, %v10091_v14  ;;  %11502 = vst [vmem:[#allocation16_spill] sm:$0xff] %v10215_v33  ;;  %v10220_v5 = vld [vmem:[%s11430_s1 + $0x10] sm:$0x7] }
  0x57   : > { %8709 = vmatprep.mubr.msk.f32.mxu1 %vm277_vm1, %v10093_v15  ;;  %8731 = vmatpush3.msk.msra.mxu1 %vm529_vm0, %v9950_v38  ;;  %v10170_v38 = vld [vmem:[#allocation2 + $0xc7] sm:$0xff] }
  0x58   : > { %8756 = vmatprep.subr.msk.mxu1 %vm529_vm0, %v10104_v11  ;;  %v10235_v3 = vld [vmem:[#allocation2 + $0x49] sm:$0xff] }
  0x59   : > { %8479 = vmatmul.mubr.msk.f32.gmra.mrb[4].mxu0 %vm277_vm1, %v10112_v18  ;;  %11505 = vst [vmem:[#allocation19_spill] sm:$0xff] %v10235_v3  ;;  %v10237_v2 = vld [vmem:[#allocation2 + $0x129] sm:$0xff] }
  0x5a   : > { %8710 = vmatmul.mubr.msk.f32.gmra.mrb[2].mxu1 %vm277_vm1, %v10114_v19  ;;  %8481 = vmatprep.mubr.msk.f32.mxu0 %vm277_vm1, %v10118_v20  ;;  %11506 = vst [vmem:[#allocation20_spill] sm:$0xff] %v10237_v2 }
  0x5b   : > { %8712 = vmatprep.mubr.msk.f32.mxu1 %vm277_vm1, %v10120_v21 }
  0x5d   : > { %8482 = vmatmul.mubr.msk.f32.gmra.mrb[6].mxu0 %vm277_vm1, %v10134_v22 }
  0x5e   : > { %8713 = vmatmul.mubr.msk.f32.gmra.mrb[4].mxu1 %vm277_vm1, %v10136_v23  ;;  %8484 = vmatprep.mubr.msk.f32.mxu0 %vm277_vm1, %v10138_v24 }
  0x5f   : > { %8715 = vmatprep.mubr.msk.f32.mxu1 %vm277_vm1, %v10140_v25 }
  0x61   : > { %8485 = vmatmul.mubr.msk.f32.gmra.mrb[8].mxu0 %vm277_vm1, %v10150_v26 }
  0x62   : > { %8716 = vmatmul.mubr.msk.f32.gmra.mrb[6].mxu1 %vm277_vm1, %v10152_v27  ;;  %8487 = vmatprep.mubr.msk.f32.mxu0 %vm277_vm1, %v10154_v28 }
  0x63   : > { %8718 = vmatprep.mubr.msk.f32.mxu1 %vm277_vm1, %v10156_v29 }
  0x65   : > { %8488 = vmatmul.mubr.msk.f32.gmra.mrb[10].mxu0 %vm277_vm1, %v10166_v36 }
  0x66   : > { %8719 = vmatmul.mubr.msk.f32.gmra.mrb[8].mxu1 %vm277_vm1, %v10168_v37  ;;  %8490 = vmatprep.mubr.msk.f32.mxu0 %vm277_vm1, %v10170_v38 }
  0x67   : > { %8721 = vmatprep.mubr.msk.f32.mxu1 %vm277_vm1, %v10172_v47 }
  0x69   : > { %8491 = vmatmul.mubr.msk.f32.gmra.mrb[12].mxu0 %vm277_vm1, %v10182_v48 }
  0x6a   : > { %8722 = vmatmul.mubr.msk.f32.gmra.mrb[10].mxu1 %vm277_vm1, %v10184_v49  ;;  %8493 = vmatprep.mubr.msk.f32.mxu0 %vm277_vm1, %v10186_v50 }
  0x6b   : > { %8724 = vmatprep.mubr.msk.f32.mxu1 %vm277_vm1, %v10188_v51 }
  0x6d   : > { %8494 = vmatmul.mubr.msk.f32.gmra.mrb[14].mxu0 %vm277_vm1, %v10198_v54 }
  0x6e   : > { %8725 = vmatmul.mubr.msk.f32.gmra.mrb[12].mxu1 %vm277_vm1, %v10200_v4  ;;  %8498 = vmatprep.mubr.msk.f32.mxu0 %vm277_vm1, %v874_v6  ;;  %v10229_v6 = vld [vmem:[#allocation2 + $0x31] sm:$0xff] }
  0x6f   : > { %8727 = vmatprep.mubr.msk.f32.mxu1 %vm277_vm1, %v10202_v16  ;;  %11503 = vst [vmem:[#allocation17_spill] sm:$0xff] %v10229_v6 }
  0x71   : > { %8499 = vmatmul.mubr.msk.f32.vlgmr.msra.gmra.mrb[0].mxu0 %vm277_vm1, %v875_v17  ;;  %v10254_v17 = vld [vmem:[#allocation2 + $0x51] sm:$0xff] }
  0x72   : > { %8728 = vmatmul.mubr.msk.f32.gmra.mrb[14].mxu1 %vm277_vm1, %v10211_v1  ;;  %8523 = vmatpush3.msk.msra.mxu0 %vm529_vm0, %v10076_v10  ;;  %v10248_v10 = vld [vmem:[%s11430_s1 + $0x10] sm:$0x7]  ;;  %11507 = vst [vmem:[#allocation21_spill] sm:$0xff] %v10254_v17 }
  0x73   : > { %8501 = vmatprep.mubr.msk.f32.mxu0 %vm277_vm1, %v10213_v7  ;;  %8732 = vmatprep.mubr.msk.f32.mxu1 %vm277_vm1, %v10215_v33  ;;  %v10256_v33 = vld [vmem:[#allocation2 + $0x131] sm:$0xff]  ;;  %v10258_v7 = vld [vmem:[#allocation2 + $0x69] sm:$0xff] }
  0x74   : > { %8548 = vmatprep.subr.msk.mxu0 %vm529_vm0, %v10220_v5  ;;  %11508 = vst [vmem:[#allocation22_spill] sm:$0xff] %v10256_v33  ;;  %11509 = vst [vmem:[#allocation23_spill] sm:$0xff] %v10258_v7 }
  0x75   : > { %8502 = vmatmul.mubr.msk.f32.gmra.mrb[2].mxu0 %vm277_vm1, %v10229_v6  ;;  %v10260_v6 = vld [vmem:[#allocation2 + $0x149] sm:$0xff] }
  0x76   : > { %8733 = vmatmul.mubr.msk.f32.vlgmr.msra.gmra.mrb[0].mxu1 %vm277_vm1, %v10231_v31  ;;  %8504 = vmatprep.mubr.msk.f32.mxu0 %vm277_vm1, %v10235_v3  ;;  %11510 = vst [vmem:[#allocation24_spill] sm:$0xff] %v10260_v6  ;;  %v10274_v31 = vld [vmem:[#allocation2 + $0x71] sm:$0xff]  ;;  %v10280_v3 = vld [vmem:[#allocation2 + $0x169] sm:$0xff] }
  0x77   : > { %8735 = vmatprep.mubr.msk.f32.mxu1 %vm277_vm1, %v10237_v2  ;;  %8757 = vmatpush3.msk.msra.mxu1 %vm529_vm0, %v10104_v11  ;;  %11511 = vst [vmem:[#allocation25_spill] sm:$0xff] %v10274_v31  ;;  %v10276_v2 = vld [vmem:[#allocation2 + $0x151] sm:$0xff]  ;;  %v10278_v11 = vld [vmem:[#allocation2 + $0x89] sm:$0xff]  ;;  %11514 = vst [vmem:[#allocation28_spill] sm:$0xff] %v10280_v3 }
  0x78   : > { %8782 = vmatprep.subr.msk.mxu1 %vm529_vm0, %v10248_v10  ;;  %11512 = vst [vmem:[#allocation26_spill] sm:$0xff] %v10276_v2  ;;  %11513 = vst [vmem:[#allocation27_spill] sm:$0xff] %v10278_v11 }
  0x79   : > { %8505 = vmatmul.mubr.msk.f32.gmra.mrb[4].mxu0 %vm277_vm1, %v10254_v17  ;;  %v10296_v17 = vld [vmem:[#allocation2 + $0x189] sm:$0xff] }
  0x7a   : > { %8736 = vmatmul.mubr.msk.f32.gmra.mrb[2].mxu1 %vm277_vm1, %v10256_v33  ;;  %8507 = vmatprep.mubr.msk.f32.mxu0 %vm277_vm1, %v10258_v7  ;;  %v10292_v7 = vld [vmem:[#allocation2 + $0x171] sm:$0xff]  ;;  %v10294_v33 = vld [vmem:[#allocation2 + $0xa9] sm:$0xff]  ;;  %11518 = vst [vmem:[#allocation32_spill] sm:$0xff] %v10296_v17 }
  0x7b   : > { %8738 = vmatprep.mubr.msk.f32.mxu1 %vm277_vm1, %v10260_v6  ;;  %v10290_v6 = vld [vmem:[#allocation2 + $0x91] sm:$0xff]  ;;  %11516 = vst [vmem:[#allocation30_spill] sm:$0xff] %v10292_v7  ;;  %11517 = vst [vmem:[#allocation31_spill] sm:$0xff] %v10294_v33 }
  0x7c   : > { %11515 = vst [vmem:[#allocation29_spill] sm:$0xff] %v10290_v6 }
  0x7d   : > { %8508 = vmatmul.mubr.msk.f32.gmra.mrb[6].mxu0 %vm277_vm1, %v10274_v31  ;;  %v10312_v31 = vld [vmem:[#allocation2 + $0x1a9] sm:$0xff] }
  0x7e   : > { %8739 = vmatmul.mubr.msk.f32.gmra.mrb[4].mxu1 %vm277_vm1, %v10276_v2  ;;  %8510 = vmatprep.mubr.msk.f32.mxu0 %vm277_vm1, %v10278_v11  ;;  %v10308_v11 = vld [vmem:[#allocation2 + $0x191] sm:$0xff]  ;;  %v10310_v2 = vld [vmem:[#allocation2 + $0xc9] sm:$0xff]  ;;  %11521 = vst [vmem:[#allocation35_spill] sm:$0xff] %v10312_v31 }
  0x7f   : > { %8741 = vmatprep.mubr.msk.f32.mxu1 %vm277_vm1, %v10280_v3  ;;  %v10306_v3 = vld [vmem:[#allocation2 + $0xb1] sm:$0xff]  ;;  %11519 = vst [vmem:[#allocation33_spill] sm:$0xff] %v10308_v11  ;;  %11520 = vst [vmem:[#allocation34_spill] sm:$0xff] %v10310_v2 }
  0x81   : > { %8511 = vmatmul.mubr.msk.f32.gmra.mrb[8].mxu0 %vm277_vm1, %v10290_v6  ;;  %v10328_v6 = vld [vmem:[#allocation2 + $0x1c9] sm:$0xff] }
  0x82   : > { %8742 = vmatmul.mubr.msk.f32.gmra.mrb[6].mxu1 %vm277_vm1, %v10292_v7  ;;  %8513 = vmatprep.mubr.msk.f32.mxu0 %vm277_vm1, %v10294_v33  ;;  %v10324_v33 = vld [vmem:[#allocation2 + $0x1b1] sm:$0xff]  ;;  %v10326_v7 = vld [vmem:[#allocation2 + $0xe9] sm:$0xff]  ;;  %11523 = vst [vmem:[#allocation37_spill] sm:$0xff] %v10328_v6 }
  0x83   : > { %8744 = vmatprep.mubr.msk.f32.mxu1 %vm277_vm1, %v10296_v17  ;;  %v10322_v17 = vld [vmem:[#allocation2 + $0xd1] sm:$0xff]  ;;  %11522 = vst [vmem:[#allocation36_spill] sm:$0xff] %v10326_v7 }
  0x85   : > { %8514 = vmatmul.mubr.msk.f32.gmra.mrb[10].mxu0 %vm277_vm1, %v10306_v3 }
  0x86   : > { %8745 = vmatmul.mubr.msk.f32.gmra.mrb[8].mxu1 %vm277_vm1, %v10308_v11  ;;  %8516 = vmatprep.mubr.msk.f32.mxu0 %vm277_vm1, %v10310_v2  ;;  %v10340_v2 = vld [vmem:[#allocation2 + $0x1d1] sm:$0xff]  ;;  %v10342_v11 = vld [vmem:[#allocation2 + $0x1e9] sm:$0xff] }
  0x87   : > { %8747 = vmatprep.mubr.msk.f32.mxu1 %vm277_vm1, %v10312_v31  ;;  %v10338_v31 = vld [vmem:[#allocation2 + $0xf1] sm:$0xff]  ;;  %11524 = vst [vmem:[#allocation38_spill] sm:$0xff] %v10342_v11 }
  0x89   : > { %8517 = vmatmul.mubr.msk.f32.gmra.mrb[12].mxu0 %vm277_vm1, %v10322_v17 }
  0x8a   : > { %8748 = vmatmul.mubr.msk.f32.gmra.mrb[10].mxu1 %vm277_vm1, %v10324_v33  ;;  %8519 = vmatprep.mubr.msk.f32.mxu0 %vm277_vm1, %v10326_v7  ;;  %v10352_v7 = vld [vmem:[#allocation2 + $0x1f1] sm:$0xff] }
  0x8b   : > { %8750 = vmatprep.mubr.msk.f32.mxu1 %vm277_vm1, %v10328_v6  ;;  %v7573_v6 = vld [vmem:[%s11430_s1 + $0x14] sm:$0x7] }
  0x8d   : > { %8520 = vmatmul.mubr.msk.f32.gmra.mrb[14].mxu0 %vm277_vm1, %v10338_v31 }
  0x8e   : > { %8751 = vmatmul.mubr.msk.f32.gmra.mrb[12].mxu1 %vm277_vm1, %v10340_v2  ;;  %8524 = vmatprep.mubr.msk.f32.mxu0 %vm277_vm1, %v10069_v8  ;;  %v7735_v8 = vld [vmem:[%s11430_s1 + $0x14] sm:$0x7] }
  0x8f   : > { %8753 = vmatprep.mubr.msk.f32.mxu1 %vm277_vm1, %v10342_v11 }
  0x91   : > { %8525 = vmatmul.mubr.msk.f32.vlgmr.msra.gmra.mrb[0].mxu0 %vm277_vm1, %v10085_v12  ;;  %v10432_v12 = vld [vmem:[#allocation2 + $0x20f] sm:$0xff] }
  0x92   : > { %8754 = vmatmul.mubr.msk.f32.gmra.mrb[14].mxu1 %vm277_vm1, %v10352_v7  ;;  %8549 = vmatpush3.msk.msra.mxu0 %vm529_vm0, %v10220_v5  ;;  %v10422_v5 = vld [vmem:[#allocation2 + $0x207] sm:$0xff] }
  0x93   : > { %8527 = vmatprep.mubr.msk.f32.mxu0 %vm277_vm1, %v10091_v14  ;;  %8758 = vmatprep.mubr.msk.f32.mxu1 %vm277_vm1, %v10093_v15 }
  0x94   : > { %8574 = vmatprep.subr.msk.mxu0 %vm529_vm0, %v7573_v6 }
  0x95   : > { %8528 = vmatmul.mubr.msk.f32.gmra.mrb[2].mxu0 %vm277_vm1, %v10112_v18 }
  0x96   : > { %8759 = vmatmul.mubr.msk.f32.vlgmr.msra.gmra.mrb[0].mxu1 %vm277_vm1, %v10114_v19  ;;  %8530 = vmatprep.mubr.msk.f32.mxu0 %vm277_vm1, %v10118_v20 }
  0x97   : > { %8761 = vmatprep.mubr.msk.f32.mxu1 %vm277_vm1, %v10120_v21  ;;  %8783 = vmatpush3.msk.msra.mxu1 %vm529_vm0, %v10248_v10  ;;  %v7591_v10 = vld [vmem:[%s11430_s1 + $0x18] sm:$0x7] }
  0x98   : > { %8808 = vmatprep.subr.msk.mxu1 %vm529_vm0, %v7735_v8 }
  0x99   : > { %8531 = vmatmul.mubr.msk.f32.gmra.mrb[4].mxu0 %vm277_vm1, %v10134_v22 }
  0x9a   : > { %8762 = vmatmul.mubr.msk.f32.gmra.mrb[2].mxu1 %vm277_vm1, %v10136_v23  ;;  %8533 = vmatprep.mubr.msk.f32.mxu0 %vm277_vm1, %v10138_v24 }
  0x9b   : > { %8764 = vmatprep.mubr.msk.f32.mxu1 %vm277_vm1, %v10140_v25 }
  0x9d   : > { %8534 = vmatmul.mubr.msk.f32.gmra.mrb[6].mxu0 %vm277_vm1, %v10150_v26 }
  0x9e   : > { %8765 = vmatmul.mubr.msk.f32.gmra.mrb[4].mxu1 %vm277_vm1, %v10152_v27  ;;  %8536 = vmatprep.mubr.msk.f32.mxu0 %vm277_vm1, %v10154_v28 }
  0x9f   : > { %8767 = vmatprep.mubr.msk.f32.mxu1 %vm277_vm1, %v10156_v29 }
  0xa1   : > { %8537 = vmatmul.mubr.msk.f32.gmra.mrb[8].mxu0 %vm277_vm1, %v10166_v36 }
  0xa2   : > { %8768 = vmatmul.mubr.msk.f32.gmra.mrb[6].mxu1 %vm277_vm1, %v10168_v37  ;;  %8539 = vmatprep.mubr.msk.f32.mxu0 %vm277_vm1, %v10170_v38 }
  0xa3   : > { %8770 = vmatprep.mubr.msk.f32.mxu1 %vm277_vm1, %v10172_v47 }
  0xa5   : > { %8540 = vmatmul.mubr.msk.f32.gmra.mrb[10].mxu0 %vm277_vm1, %v10182_v48 }
  0xa6   : > { %8771 = vmatmul.mubr.msk.f32.gmra.mrb[8].mxu1 %vm277_vm1, %v10184_v49  ;;  %8542 = vmatprep.mubr.msk.f32.mxu0 %vm277_vm1, %v10186_v50 }
  0xa7   : > { %8773 = vmatprep.mubr.msk.f32.mxu1 %vm277_vm1, %v10188_v51 }
  0xa9   : > { %8543 = vmatmul.mubr.msk.f32.gmra.mrb[12].mxu0 %vm277_vm1, %v10198_v54 }
  0xaa   : > { %8774 = vmatmul.mubr.msk.f32.gmra.mrb[10].mxu1 %vm277_vm1, %v10200_v4  ;;  %8545 = vmatprep.mubr.msk.f32.mxu0 %vm277_vm1, %v10071_v9 }
  0xab   : > { %8776 = vmatprep.mubr.msk.f32.mxu1 %vm277_vm1, %v10202_v16 }
  0xad   : > { %8546 = vmatmul.mubr.msk.f32.gmra.mrb[14].mxu0 %vm277_vm1, %v10087_v13 }
  0xae   : > { %8777 = vmatmul.mubr.msk.f32.gmra.mrb[12].mxu1 %vm277_vm1, %v10211_v1  ;;  %8550 = vmatprep.mubr.msk.f32.mxu0 %vm277_vm1, %v9922_v30  ;;  %v7753_v30 = vld [vmem:[%s11430_s1 + $0x18] sm:$0x7] }
  0xaf   : > { %8779 = vmatprep.mubr.msk.f32.mxu1 %vm277_vm1, %v10422_v5 }
  0xb1   : > { %8551 = vmatmul.mubr.msk.f32.vlgmr.msra.gmra.mrb[0].mxu0 %vm277_vm1, %v9926_v32  ;;  %v11525_v32 = vld [vmem:[#allocation11_spill] sm:$0xff] }
  0xb2   : > { %8780 = vmatmul.mubr.msk.f32.gmra.mrb[14].mxu1 %vm277_vm1, %v10432_v12  ;;  %8575 = vmatpush3.msk.msra.mxu0 %vm529_vm0, %v7573_v6  ;;  %v11544_v6 = vld [vmem:[#allocation29_spill] sm:$0xff] }
  0xb3   : > { %8553 = vmatprep.mubr.msk.f32.mxu0 %vm277_vm1, %v9937_v34  ;;  %8784 = vmatprep.mubr.msk.f32.mxu1 %vm277_vm1, %v9939_v35  ;;  %v11526_v34 = vld [vmem:[#allocation12_spill] sm:$0xff]  ;;  %v11527_v35 = vld [vmem:[#allocation9_spill] sm:$0xff] }
  0xb4   : > { %8600 = vmatprep.subr.msk.mxu0 %vm529_vm0, %v7591_v10 }
  0xb5   : > { %8554 = vmatmul.mubr.msk.f32.gmra.mrb[2].mxu0 %vm277_vm1, %v9956_v39  ;;  %v11528_v39 = vld [vmem:[#allocation13_spill] sm:$0xff] }
  0xb6   : > { %8785 = vmatmul.mubr.msk.f32.vlgmr.msra.gmra.mrb[0].mxu1 %vm277_vm1, %v9958_v40  ;;  %8556 = vmatprep.mubr.msk.f32.mxu0 %vm277_vm1, %v9962_v41  ;;  %v10500_v40 = vld [vmem:[#allocation2 + $0x208] sm:$0xff] }
  0xb7   : > { %8787 = vmatprep.mubr.msk.f32.mxu1 %vm277_vm1, %v9964_v42  ;;  %8809 = vmatpush3.msk.msra.mxu1 %vm529_vm0, %v7735_v8  ;;  %v11529_v41 = vld [vmem:[#allocation10_spill] sm:$0xff] }
  0xb8   : > { %8834 = vmatprep.subr.msk.mxu1 %vm529_vm0, %v7753_v30  ;;  %v11530_v42 = vld [vmem:[#allocation14_spill] sm:$0xff] }
  0xb9   : > { %8557 = vmatmul.mubr.msk.f32.gmra.mrb[4].mxu0 %vm277_vm1, %v9974_v43  ;;  %v11531_v43 = vld [vmem:[#allocation15_spill] sm:$0xff]  ;;  %v11545_v8 = vld [vmem:[#allocation30_spill] sm:$0xff] }
  0xba   : > { %8788 = vmatmul.mubr.msk.f32.gmra.mrb[2].mxu1 %vm277_vm1, %v9980_v44  ;;  %8559 = vmatprep.mubr.msk.f32.mxu0 %vm277_vm1, %v9982_v45  ;;  %v10510_v44 = vld [vmem:[#allocation2 + $0x210] sm:$0xff]  ;;  %v7609_v45 = vld [vmem:[%s11430_s1 + $0x1c] sm:$0x7] }
  0xbb   : > { %8790 = vmatprep.mubr.msk.f32.mxu1 %vm277_vm1, %v9984_v46  ;;  %v11532_v46 = vld [vmem:[#allocation17_spill] sm:$0xff] }
  0xbd   : > { %8560 = vmatmul.mubr.msk.f32.gmra.mrb[6].mxu0 %vm277_vm1, %v10004_v52  ;;  %v11533_v52 = vld [vmem:[#allocation19_spill] sm:$0xff] }
  0xbe   : > { %8791 = vmatmul.mubr.msk.f32.gmra.mrb[4].mxu1 %vm277_vm1, %v10006_v53  ;;  %8562 = vmatprep.mubr.msk.f32.mxu0 %vm277_vm1, %v10009_v55  ;;  %v11534_v53 = vmov 0.0   ;;  %v11535_v55 = vld [vmem:[#allocation20_spill] sm:$0xff] }
  0xbf   : > { %8793 = vmatprep.mubr.msk.f32.mxu1 %vm277_vm1, %v10011_v56  ;;  %390 = vst.msk [vmem:[#allocation4] sm:$0xff] %vm389_vm3, %v11534_v53  ;;  %391 = vst.msk [vmem:[#allocation4 + $0x8] sm:$0xff] %vm389_vm3, %v11534_v53  ;;  %v11536_v56 = vld [vmem:[#allocation21_spill] sm:$0xff] }
  0xc0   : > { %395 = vst.msk [vmem:[#allocation4 + $0xd8] sm:$0xff] %vm389_vm3, %v11534_v53  ;;  %396 = vst.msk [vmem:[#allocation4 + $0xe0] sm:$0xff] %vm389_vm3, %v11534_v53 }
  0xc1   : > { %8563 = vmatmul.mubr.msk.f32.gmra.mrb[8].mxu0 %vm277_vm1, %v10022_v57  ;;  %418 = vst.msk [vmem:[#allocation5] sm:$0xff] %vm389_vm3, %v11534_v53  ;;  %419 = vst.msk [vmem:[#allocation5 + $0x8] sm:$0xff] %vm389_vm3, %v11534_v53  ;;  %v11537_v57 = vld [vmem:[#allocation22_spill] sm:$0xff] }
  0xc2   : > { %8794 = vmatmul.mubr.msk.f32.gmra.mrb[6].mxu1 %vm277_vm1, %v10024_v58  ;;  %8565 = vmatprep.mubr.msk.f32.mxu0 %vm277_vm1, %v10026_v59  ;;  %422 = vst.msk [vmem:[#allocation5 + $0xd8] sm:$0xff] %vm389_vm3, %v11534_v53  ;;  %423 = vst.msk [vmem:[#allocation5 + $0xe0] sm:$0xff] %vm389_vm3, %v11534_v53  ;;  %v7771_v58 = vld [vmem:[%s11430_s1 + $0x1c] sm:$0x7]  ;;  %v11538_v59 = vld [vmem:[#allocation23_spill] sm:$0xff] }
  0xc3   : > { %8796 = vmatprep.mubr.msk.f32.mxu1 %vm277_vm1, %v10028_v60  ;;  %v11539_v60 = vld [vmem:[#allocation24_spill] sm:$0xff]  ;;  %v10594_v53 = vld [vmem:[#allocation2 + $0x209] sm:$0xff] }
  0xc5   : > { %8566 = vmatmul.mubr.msk.f32.gmra.mrb[10].mxu0 %vm277_vm1, %v10038_v61  ;;  %v11540_v61 = vld [vmem:[#allocation25_spill] sm:$0xff] }
  0xc6   : > { %8797 = vmatmul.mubr.msk.f32.gmra.mrb[8].mxu1 %vm277_vm1, %v10040_v62  ;;  %8568 = vmatprep.mubr.msk.f32.mxu0 %vm277_vm1, %v10042_v63  ;;  %v11541_v62 = vld [vmem:[#allocation26_spill] sm:$0xff]  ;;  %v11542_v63 = vld [vmem:[#allocation27_spill] sm:$0xff] }
  0xc7   : > { %8799 = vmatprep.mubr.msk.f32.mxu1 %vm277_vm1, %v10044_v0  ;;  %v11543_v0 = vld [vmem:[#allocation28_spill] sm:$0xff] }
  0xc9   : > { %8569 = vmatmul.mubr.msk.f32.gmra.mrb[12].mxu0 %vm277_vm1, %v11525_v32  ;;  %v11548_v32 = vld [vmem:[#allocation33_spill] sm:$0xff] }
  0xca   : > { %8800 = vmatmul.mubr.msk.f32.gmra.mrb[10].mxu1 %vm277_vm1, %v11526_v34  ;;  %8571 = vmatprep.mubr.msk.f32.mxu0 %vm277_vm1, %v11527_v35  ;;  %v11549_v34 = vld [vmem:[#allocation34_spill] sm:$0xff]  ;;  %v11550_v35 = vld [vmem:[#allocation35_spill] sm:$0xff] }
  0xcb   : > { %8802 = vmatprep.mubr.msk.f32.mxu1 %vm277_vm1, %v11528_v39 }
  0xcd   : > { %8572 = vmatmul.mubr.msk.f32.gmra.mrb[14].mxu0 %vm277_vm1, %v11529_v41  ;;  %v11551_v41 = vld [vmem:[#allocation36_spill] sm:$0xff] }
  0xce   : > { %8803 = vmatmul.mubr.msk.f32.gmra.mrb[12].mxu1 %vm277_vm1, %v11530_v42  ;;  %8576 = vmatprep.mubr.msk.f32.mxu0 %vm277_vm1, %v11531_v43  ;;  %v11552_v43 = vld [vmem:[#allocation37_spill] sm:$0xff] }
  0xcf   : > { %8805 = vmatprep.mubr.msk.f32.mxu1 %vm277_vm1, %v10500_v40 }
  0xd1   : > { %8577 = vmatmul.mubr.msk.f32.vlgmr.msra.gmra.mrb[0].mxu0 %vm277_vm1, %v11532_v46  ;;  %v11553_v46 = vld [vmem:[#allocation16_spill] sm:$0xff] }
  0xd2   : > { %8806 = vmatmul.mubr.msk.f32.gmra.mrb[14].mxu1 %vm277_vm1, %v10510_v44  ;;  %8601 = vmatpush3.msk.msra.mxu0 %vm529_vm0, %v7591_v10  ;;  %v11546_v10 = vld [vmem:[#allocation31_spill] sm:$0xff] }
  0xd3   : > { %8579 = vmatprep.mubr.msk.f32.mxu0 %vm277_vm1, %v11533_v52  ;;  %8810 = vmatprep.mubr.msk.f32.mxu1 %vm277_vm1, %v11535_v55  ;;  %v10604_v55 = vld [vmem:[#allocation2 + $0x211] sm:$0xff] }
  0xd4   : > { %8626 = vmatprep.subr.msk.mxu0 %vm529_vm0, %v7609_v45 }
  0xd5   : > { %8580 = vmatmul.mubr.msk.f32.gmra.mrb[2].mxu0 %vm277_vm1, %v11536_v56 }
  0xd6   : > { %8811 = vmatmul.mubr.msk.f32.vlgmr.msra.gmra.mrb[0].mxu1 %vm277_vm1, %v11537_v57  ;;  %8582 = vmatprep.mubr.msk.f32.mxu0 %vm277_vm1, %v11538_v59  ;;  %v11554_v57 = vld [vmem:[#allocation18_spill] sm:$0xff] }
  0xd7   : > { %8813 = vmatprep.mubr.msk.f32.mxu1 %vm277_vm1, %v11539_v60  ;;  %8835 = vmatpush3.msk.msra.mxu1 %vm529_vm0, %v7753_v30  ;;  %v11547_v30 = vld [vmem:[#allocation32_spill] sm:$0xff] }
  0xd8   : > { %8860 = vmatprep.subr.msk.mxu1 %vm529_vm0, %v7771_v58 }
  0xd9   : > { %8583 = vmatmul.mubr.msk.f32.gmra.mrb[4].mxu0 %vm277_vm1, %v11540_v61 }
  0xda   : > { %8814 = vmatmul.mubr.msk.f32.gmra.mrb[2].mxu1 %vm277_vm1, %v11541_v62  ;;  %8585 = vmatprep.mubr.msk.f32.mxu0 %vm277_vm1, %v11542_v63 }
  0xdb   : > { %8816 = vmatprep.mubr.msk.f32.mxu1 %vm277_vm1, %v11543_v0 }
  0xdd   : > { %8586 = vmatmul.mubr.msk.f32.gmra.mrb[6].mxu0 %vm277_vm1, %v11544_v6 }
  0xde   : > { %8817 = vmatmul.mubr.msk.f32.gmra.mrb[4].mxu1 %vm277_vm1, %v11545_v8  ;;  %8588 = vmatprep.mubr.msk.f32.mxu0 %vm277_vm1, %v11546_v10 }
  0xdf   : > { %8819 = vmatprep.mubr.msk.f32.mxu1 %vm277_vm1, %v11547_v30 }
  0xe1   : > { %8589 = vmatmul.mubr.msk.f32.gmra.mrb[8].mxu0 %vm277_vm1, %v10306_v3 }
  0xe2   : > { %8820 = vmatmul.mubr.msk.f32.gmra.mrb[6].mxu1 %vm277_vm1, %v11548_v32  ;;  %8591 = vmatprep.mubr.msk.f32.mxu0 %vm277_vm1, %v11549_v34 }
  0xe3   : > { %8822 = vmatprep.mubr.msk.f32.mxu1 %vm277_vm1, %v11550_v35 }
  0xe5   : > { %8592 = vmatmul.mubr.msk.f32.gmra.mrb[10].mxu0 %vm277_vm1, %v10322_v17 }
  0xe6   : > { %8823 = vmatmul.mubr.msk.f32.gmra.mrb[8].mxu1 %vm277_vm1, %v10324_v33  ;;  %8594 = vmatprep.mubr.msk.f32.mxu0 %vm277_vm1, %v11551_v41 }
  0xe7   : > { %8825 = vmatprep.mubr.msk.f32.mxu1 %vm277_vm1, %v11552_v43 }
  0xe9   : > { %8595 = vmatmul.mubr.msk.f32.gmra.mrb[12].mxu0 %vm277_vm1, %v10338_v31 }
  0xea   : > { %8826 = vmatmul.mubr.msk.f32.gmra.mrb[10].mxu1 %vm277_vm1, %v10340_v2  ;;  %8597 = vmatprep.mubr.msk.f32.mxu0 %vm277_vm1, %v11553_v46 }
  0xeb   : > { %8828 = vmatprep.mubr.msk.f32.mxu1 %vm277_vm1, %v10342_v11  ;;  %v7627_v11 = vld [vmem:[%s11430_s1 + $0x20] sm:$0x7] }
  0xed   : > { %8598 = vmatmul.mubr.msk.f32.gmra.mrb[14].mxu0 %vm277_vm1, %v11554_v57 }
  0xee   : > { %8829 = vmatmul.mubr.msk.f32.gmra.mrb[12].mxu1 %vm277_vm1, %v10352_v7  ;;  %8602 = vmatprep.mubr.msk.f32.mxu0 %vm277_vm1, %v10091_v14  ;;  %v7789_v14 = vld [vmem:[%s11430_s1 + $0x20] sm:$0x7] }
  0xef   : > { %8831 = vmatprep.mubr.msk.f32.mxu1 %vm277_vm1, %v10594_v53 }
  0xf1   : > { %8603 = vmatmul.mubr.msk.f32.vlgmr.msra.gmra.mrb[0].mxu0 %vm277_vm1, %v10112_v18  ;;  %v2025_v18 = vld [vmem:[#allocation2 + $0x48] sm:$0xff] }
  0xf2   : > { %8832 = vmatmul.mubr.msk.f32.gmra.mrb[14].mxu1 %vm277_vm1, %v10604_v55  ;;  %8627 = vmatpush3.msk.msra.mxu0 %vm529_vm0, %v7609_v45 }
  0xf3   : > { %8605 = vmatprep.mubr.msk.f32.mxu0 %vm277_vm1, %v10118_v20  ;;  %8836 = vmatprep.mubr.msk.f32.mxu1 %vm277_vm1, %v10120_v21  ;;  %v3898_v20 = vld [vmem:[#allocation2 + $0x227] sm:$0xff] }
  0xf4   : > { %8652 = vmatprep.subr.msk.mxu0 %vm529_vm0, %v7627_v11  ;;  %v4113_v21 = vld [vmem:[#allocation2 + $0x148] sm:$0xff] }
  0xf5   : > { %8606 = vmatmul.mubr.msk.f32.gmra.mrb[2].mxu0 %vm277_vm1, %v10134_v22  ;;  %v2029_v22 = vld [vmem:[#allocation2 + $0x88] sm:$0xff] }
  0xf6   : > { %8837 = vmatmul.mubr.msk.f32.vlgmr.msra.gmra.mrb[0].mxu1 %vm277_vm1, %v10136_v23  ;;  %8608 = vmatprep.mubr.msk.f32.mxu0 %vm277_vm1, %v10138_v24  ;;  %v4115_v23 = vld [vmem:[#allocation2 + $0x168] sm:$0xff]  ;;  %v2030_v24 = vld [vmem:[#allocation2 + $0x90] sm:$0xff] }
  0xf7   : > { %8839 = vmatprep.mubr.msk.f32.mxu1 %vm277_vm1, %v10140_v25  ;;  %8861 = vmatpush3.msk.msra.mxu1 %vm529_vm0, %v7771_v58  ;;  %v4116_v25 = vld [vmem:[#allocation2 + $0x170] sm:$0xff] }
  0xf8   : > { %8886 = vmatprep.subr.msk.mxu1 %vm529_vm0, %v7789_v14 }
  0xf9   : > { %8609 = vmatmul.mubr.msk.f32.gmra.mrb[4].mxu0 %vm277_vm1, %v10150_v26  ;;  %v2031_v26 = vld [vmem:[#allocation2 + $0xa8] sm:$0xff] }
  0xfa   : > { %8840 = vmatmul.mubr.msk.f32.gmra.mrb[2].mxu1 %vm277_vm1, %v10152_v27  ;;  %8611 = vmatprep.mubr.msk.f32.mxu0 %vm277_vm1, %v10154_v28  ;;  %v4117_v27 = vld [vmem:[#allocation2 + $0x188] sm:$0xff]  ;;  %v2032_v28 = vld [vmem:[#allocation2 + $0xb0] sm:$0xff] }
  0xfb   : > { %8842 = vmatprep.mubr.msk.f32.mxu1 %vm277_vm1, %v10156_v29  ;;  %v4118_v29 = vld [vmem:[#allocation2 + $0x190] sm:$0xff] }
  0xfd   : > { %8612 = vmatmul.mubr.msk.f32.gmra.mrb[6].mxu0 %vm277_vm1, %v10166_v36  ;;  %v2033_v36 = vld [vmem:[#allocation2 + $0xc8] sm:$0xff] }
  0xfe   : > { %8843 = vmatmul.mubr.msk.f32.gmra.mrb[4].mxu1 %vm277_vm1, %v10168_v37  ;;  %8614 = vmatprep.mubr.msk.f32.mxu0 %vm277_vm1, %v10170_v38  ;;  %v4119_v37 = vld [vmem:[#allocation2 + $0x1a8] sm:$0xff]  ;;  %v2034_v38 = vld [vmem:[#allocation2 + $0xd0] sm:$0xff] }
  0xff   : > { %8845 = vmatprep.mubr.msk.f32.mxu1 %vm277_vm1, %v10172_v47  ;;  %v4120_v47 = vld [vmem:[#allocation2 + $0x1b0] sm:$0xff] }
 0x101   : > { %8615 = vmatmul.mubr.msk.f32.gmra.mrb[8].mxu0 %vm277_vm1, %v10182_v48  ;;  %v2035_v48 = vld [vmem:[#allocation2 + $0xe8] sm:$0xff] }
 0x102   : > { %8846 = vmatmul.mubr.msk.f32.gmra.mrb[6].mxu1 %vm277_vm1, %v10184_v49  ;;  %8617 = vmatprep.mubr.msk.f32.mxu0 %vm277_vm1, %v10186_v50  ;;  %v4121_v49 = vld [vmem:[#allocation2 + $0x1c8] sm:$0xff]  ;;  %v2036_v50 = vld [vmem:[#allocation2 + $0xf0] sm:$0xff] }
 0x103   : > { %8848 = vmatprep.mubr.msk.f32.mxu1 %vm277_vm1, %v10188_v51  ;;  %v4122_v51 = vld [vmem:[#allocation2 + $0x1d0] sm:$0xff] }
 0x105   : > { %8618 = vmatmul.mubr.msk.f32.gmra.mrb[10].mxu0 %vm277_vm1, %v10198_v54  ;;  %v2037_v54 = vld [vmem:[#allocation2 + $0x108] sm:$0xff] }
 0x106   : > { %8849 = vmatmul.mubr.msk.f32.gmra.mrb[8].mxu1 %vm277_vm1, %v10200_v4  ;;  %8620 = vmatprep.mubr.msk.f32.mxu0 %vm277_vm1, %v10071_v9  ;;  %v2026_v9 = vld [vmem:[#allocation2 + $0x50] sm:$0xff] }
 0x107   : > { %8851 = vmatprep.mubr.msk.f32.mxu1 %vm277_vm1, %v10202_v16  ;;  %v2038_v4 = vld [vmem:[#allocation2 + $0x110] sm:$0xff]  ;;  %v2039_v16 = vld [vmem:[#allocation2 + $0x128] sm:$0xff] }
 0x109   : > { %8621 = vmatmul.mubr.msk.f32.gmra.mrb[12].mxu0 %vm277_vm1, %v10087_v13  ;;  %v2027_v13 = vld [vmem:[#allocation2 + $0x68] sm:$0xff] }
 0x10a   : > { %8852 = vmatmul.mubr.msk.f32.gmra.mrb[10].mxu1 %vm277_vm1, %v10211_v1  ;;  %8623 = vmatprep.mubr.msk.f32.mxu0 %vm277_vm1, %v10093_v15  ;;  %v3899_v1 = vld [vmem:[#allocation2 + $0x22f] sm:$0xff] }
 0x10b   : > { %8854 = vmatprep.mubr.msk.f32.mxu1 %vm277_vm1, %v10422_v5  ;;  %v2028_v15 = vld [vmem:[#allocation2 + $0x70] sm:$0xff]  ;;  %v4127_v5 = vld [vmem:[#allocation2 + $0x228] sm:$0xff] }
 0x10d   : > { %8624 = vmatmul.mubr.msk.f32.gmra.mrb[14].mxu0 %vm277_vm1, %v10114_v19  ;;  %v4114_v19 = vld [vmem:[#allocation2 + $0x150] sm:$0xff] }
 0x10e   : > { %8855 = vmatmul.mubr.msk.f32.gmra.mrb[12].mxu1 %vm277_vm1, %v10432_v12  ;;  %8628 = vmatprep.mubr.msk.f32.mxu0 %vm277_vm1, %v2025_v18  ;;  %v4128_v12 = vld [vmem:[#allocation2 + $0x230] sm:$0xff] }
 0x10f   : > { %8857 = vmatprep.mubr.msk.f32.mxu1 %vm277_vm1, %v3898_v20 }
 0x111   : > { %8629 = vmatmul.mubr.msk.f32.vlgmr.msra.gmra.mrb[0].mxu0 %vm277_vm1, %v2026_v9 }
 0x112   : > { %8858 = vmatmul.mubr.msk.f32.gmra.mrb[14].mxu1 %vm277_vm1, %v3899_v1  ;;  %8653 = vmatpush3.msk.msra.mxu0 %vm529_vm0, %v7627_v11  ;;  %v2040_v11 = vld [vmem:[#allocation2 + $0x130] sm:$0xff] }
 0x113   : > { %8631 = vmatprep.mubr.msk.f32.mxu0 %vm277_vm1, %v2027_v13  ;;  %8862 = vmatprep.mubr.msk.f32.mxu1 %vm277_vm1, %v4113_v21 }
 0x115   : > { %8632 = vmatmul.mubr.msk.f32.gmra.mrb[2].mxu0 %vm277_vm1, %v2028_v15 }
 0x116   : > { %8863 = vmatmul.mubr.msk.f32.vlgmr.msra.gmra.mrb[0].mxu1 %vm277_vm1, %v4114_v19  ;;  %8634 = vmatprep.mubr.msk.f32.mxu0 %vm277_vm1, %v2029_v22 }
 0x117   : > { %8865 = vmatprep.mubr.msk.f32.mxu1 %vm277_vm1, %v4115_v23  ;;  %8887 = vmatpush3.msk.msra.mxu1 %vm529_vm0, %v7789_v14 }
 0x119   : > { %8635 = vmatmul.mubr.msk.f32.gmra.mrb[4].mxu0 %vm277_vm1, %v2030_v24 }
 0x11a   : > { %8866 = vmatmul.mubr.msk.f32.gmra.mrb[2].mxu1 %vm277_vm1, %v4116_v25  ;;  %8637 = vmatprep.mubr.msk.f32.mxu0 %vm277_vm1, %v2031_v26 }
 0x11b   : > { %8868 = vmatprep.mubr.msk.f32.mxu1 %vm277_vm1, %v4117_v27 }
 0x11d   : > { %8638 = vmatmul.mubr.msk.f32.gmra.mrb[6].mxu0 %vm277_vm1, %v2032_v28 }
 0x11e   : > { %8869 = vmatmul.mubr.msk.f32.gmra.mrb[4].mxu1 %vm277_vm1, %v4118_v29  ;;  %8640 = vmatprep.mubr.msk.f32.mxu0 %vm277_vm1, %v2033_v36 }
 0x11f   : > { %8871 = vmatprep.mubr.msk.f32.mxu1 %vm277_vm1, %v4119_v37 }
 0x121   : > { %8641 = vmatmul.mubr.msk.f32.gmra.mrb[8].mxu0 %vm277_vm1, %v2034_v38 }
 0x122   : > { %8872 = vmatmul.mubr.msk.f32.gmra.mrb[6].mxu1 %vm277_vm1, %v4120_v47  ;;  %8643 = vmatprep.mubr.msk.f32.mxu0 %vm277_vm1, %v2035_v48 }
 0x123   : > { %8874 = vmatprep.mubr.msk.f32.mxu1 %vm277_vm1, %v4121_v49 }
 0x125   : > { %8644 = vmatmul.mubr.msk.f32.gmra.mrb[10].mxu0 %vm277_vm1, %v2036_v50 }
 0x126   : > { %8875 = vmatmul.mubr.msk.f32.gmra.mrb[8].mxu1 %vm277_vm1, %v4122_v51  ;;  %8646 = vmatprep.mubr.msk.f32.mxu0 %vm277_vm1, %v2037_v54 }
 0x127   : > { %8877 = vmatprep.mubr.msk.f32.mxu1 %vm277_vm1, %v11528_v39  ;;  %v7807_v39 = vld [vmem:[%s11432_s3 + $0x8] sm:$0xff] }
 0x128   : > { %8912 = vmatprep.subr.mxu0 %v7807_v39 }
 0x129   : > { %8647 = vmatmul.mubr.msk.f32.gmra.mrb[12].mxu0 %vm277_vm1, %v2038_v4 }
 0x12a   : > { %8878 = vmatmul.mubr.msk.f32.gmra.mrb[10].mxu1 %vm277_vm1, %v11530_v42  ;;  %8649 = vmatprep.mubr.msk.f32.mxu0 %vm277_vm1, %v2039_v16  ;;  %v10873_v42 = vld [vmem:[%s11432_s3] sm:$0xff] }
 0x12b   : > { %8880 = vmatprep.mubr.msk.f32.mxu1 %vm277_vm1, %v10500_v40  ;;  %v4742_v40 = vld [vmem:[#allocation4 + $0x8] sm:$0xff] }
 0x12d   : > { %8650 = vmatmul.mubr.msk.f32.gmra.mrb[14].mxu0 %vm277_vm1, %v2040_v11 }
 0x12e   : > { %8881 = vmatmul.mubr.msk.f32.gmra.mrb[12].mxu1 %vm277_vm1, %v10510_v44  ;;  %8654 = vmatprep.mubr.msk.f32.mxu0 %vm277_vm1, %v11533_v52  ;;  %v10879_v44 = vld [vmem:[%s11431_s2] ss:$0 sm:$0xff] }
 0x12f   : > { %8883 = vmatprep.mubr.msk.f32.mxu1 %vm277_vm1, %v4127_v5 }
 0x131   : > { %8655 = vmatmul.mubr.msk.f32.vlgmr.msra.gmra.mrb[0].mxu0 %vm277_vm1, %v11536_v56 }
 0x132   : > { %8884 = vmatmul.mubr.msk.f32.gmra.mrb[14].mxu1 %vm277_vm1, %v4128_v12  ;;  %8657 = vmatprep.mubr.msk.f32.mxu0 %vm277_vm1, %v11538_v59 }
 0x133   : > { %8888 = vmatprep.mubr.msk.f32.mxu1 %vm277_vm1, %v11539_v60  ;;  %8913 = vmatpush3.msra.mxu0 %v7807_v39 }
 0x134   : > { %8926 = vmatprep.subr.mxu0 %v10873_v42 }
 0x135   : > { %8658 = vmatmul.mubr.msk.f32.gmra.mrb[2].mxu0 %vm277_vm1, %v11540_v61 }
 0x136   : > { %8889 = vmatmul.mubr.msk.f32.vlgmr.msra.gmra.mrb[0].mxu1 %vm277_vm1, %v11541_v62  ;;  %8660 = vmatprep.mubr.msk.f32.mxu0 %vm277_vm1, %v11542_v63 }
 0x137   : > { %8891 = vmatprep.mubr.msk.f32.mxu1 %vm277_vm1, %v11543_v0 }
 0x139   : > { %8661 = vmatmul.mubr.msk.f32.gmra.mrb[4].mxu0 %vm277_vm1, %v11544_v6 }
 0x13a   : > { %8892 = vmatmul.mubr.msk.f32.gmra.mrb[2].mxu1 %vm277_vm1, %v11545_v8  ;;  %8663 = vmatprep.mubr.msk.f32.mxu0 %vm277_vm1, %v11546_v10 }
 0x13b   : > { %8894 = vmatprep.mubr.msk.f32.mxu1 %vm277_vm1, %v11547_v30 }
 0x13d   : > { %8664 = vmatmul.mubr.msk.f32.gmra.mrb[6].mxu0 %vm277_vm1, %v10306_v3  ;;  %v11555_v3 = vld [vmem:[#allocation38_spill] sm:$0xff] }
 0x13e   : > { %8895 = vmatmul.mubr.msk.f32.gmra.mrb[4].mxu1 %vm277_vm1, %v11548_v32  ;;  %8666 = vmatprep.mubr.msk.f32.mxu0 %vm277_vm1, %v11549_v34 }
 0x13f   : > { %8897 = vmatprep.mubr.msk.f32.mxu1 %vm277_vm1, %v11550_v35 }
 0x141   : > { %8667 = vmatmul.mubr.msk.f32.gmra.mrb[8].mxu0 %vm277_vm1, %v10322_v17  ;;  %v4357_v17 = vld [vmem:[#allocation2 + $0x231] sm:$0xff] }
 0x142   : > { %8898 = vmatmul.mubr.msk.f32.gmra.mrb[6].mxu1 %vm277_vm1, %v10324_v33  ;;  %8669 = vmatprep.mubr.msk.f32.mxu0 %vm277_vm1, %v11551_v41  ;;  %v11556_v33 = vld [vmem:[#allocation20_spill] sm:$0xff] }
 0x143   : > { %8900 = vmatprep.mubr.msk.f32.mxu1 %vm277_vm1, %v11552_v43 }
 0x145   : > { %8670 = vmatmul.mubr.msk.f32.gmra.mrb[10].mxu0 %vm277_vm1, %v10338_v31  ;;  %v4356_v31 = vld [vmem:[#allocation2 + $0x229] sm:$0xff] }
 0x146   : > { %8901 = vmatmul.mubr.msk.f32.gmra.mrb[8].mxu1 %vm277_vm1, %v10340_v2  ;;  %8672 = vmatprep.mubr.msk.f32.mxu0 %vm277_vm1, %v11553_v46  ;;  %v11557_v2 = vld [vmem:[#allocation22_spill] sm:$0xff] }
 0x147   : > { %8903 = vmatprep.mubr.msk.f32.mxu1 %vm277_vm1, %v11555_v3 }
 0x149   : > { %8673 = vmatmul.mubr.msk.f32.gmra.mrb[12].mxu0 %vm277_vm1, %v11554_v57 }
 0x14a   : > { %8904 = vmatmul.mubr.msk.f32.gmra.mrb[10].mxu1 %vm277_vm1, %v10352_v7  ;;  %8675 = vmatprep.mubr.msk.f32.mxu0 %vm277_vm1, %v11556_v33  ;;  %v11558_v7 = vmov 0.0  }
 0x14b   : > { %8906 = vmatprep.mubr.msk.f32.mxu1 %vm277_vm1, %v10594_v53  ;;  %398 = vst.msk [vmem:[#allocation4 + $0x7] sm:$0x1] %vm392_vm4, %v11558_v7  ;;  %393 = vst.msk [vmem:[#allocation4 + $0x10] sm:$0x1] %vm392_vm4, %v11558_v7 }
 0x14c   : > { %397 = vst.msk [vmem:[#allocation4 + $0xe8] sm:$0x1] %vm392_vm4, %v11558_v7  ;;  %399 = vst.msk [vmem:[#allocation4 + $0x1f] sm:$0x1] %vm392_vm4, %v11558_v7 }
 0x14d   : > { %8676 = vmatmul.mubr.msk.f32.gmra.mrb[14].mxu0 %vm277_vm1, %v11557_v2  ;;  %400 = vst.msk [vmem:[#allocation4 + $0x37] sm:$0x1] %vm392_vm4, %v11558_v7  ;;  %401 = vst.msk [vmem:[#allocation4 + $0x4f] sm:$0x1] %vm392_vm4, %v11558_v7 }
 0x14e   : > { %8907 = vmatmul.mubr.msk.f32.gmra.mrb[12].mxu1 %vm277_vm1, %v10604_v55  ;;  %402 = vst.msk [vmem:[#allocation4 + $0x67] sm:$0x1] %vm392_vm4, %v11558_v7  ;;  %403 = vst.msk [vmem:[#allocation4 + $0x7f] sm:$0x1] %vm392_vm4, %v11558_v7  ;;  %8914 = vmatprep.mubr.msk.f32.mxu0 %vm389_vm3, %v4742_v40 }
 0x14f   : > { %8909 = vmatprep.mubr.msk.f32.mxu1 %vm277_vm1, %v4356_v31  ;;  %404 = vst.msk [vmem:[#allocation4 + $0x97] sm:$0x1] %vm392_vm4, %v11558_v7  ;;  %405 = vst.msk [vmem:[#allocation4 + $0xaf] sm:$0x1] %vm392_vm4, %v11558_v7 }
 0x150   : > { %406 = vst.msk [vmem:[#allocation4 + $0xc7] sm:$0x1] %vm392_vm4, %v11558_v7  ;;  %407 = vst.msk [vmem:[#allocation4 + $0xdf] sm:$0x1] %vm392_vm4, %v11558_v7 }
 0x151   : > { %409 = vst.msk [vmem:[#allocation4 + $0x28] sm:$0x1] %vm392_vm4, %v11558_v7  ;;  %410 = vst.msk [vmem:[#allocation4 + $0x40] sm:$0x1] %vm392_vm4, %v11558_v7 }
 0x152   : > { %8910 = vmatmul.mubr.msk.f32.gmra.mrb[14].mxu1 %vm277_vm1, %v4357_v17  ;;  %411 = vst.msk [vmem:[#allocation4 + $0x58] sm:$0x1] %vm392_vm4, %v11558_v7  ;;  %412 = vst.msk [vmem:[#allocation4 + $0x70] sm:$0x1] %vm392_vm4, %v11558_v7 }
 0x153   : > { %413 = vst.msk [vmem:[#allocation4 + $0x88] sm:$0x1] %vm392_vm4, %v11558_v7  ;;  %414 = vst.msk [vmem:[#allocation4 + $0xa0] sm:$0x1] %vm392_vm4, %v11558_v7 }
 0x154   : > { %415 = vst.msk [vmem:[#allocation4 + $0xb8] sm:$0x1] %vm392_vm4, %v11558_v7  ;;  %416 = vst.msk [vmem:[#allocation4 + $0xd0] sm:$0x1] %vm392_vm4, %v11558_v7 }
 0x155   : > { %420 = vst.msk [vmem:[#allocation5 + $0x10] sm:$0x1] %vm392_vm4, %v11558_v7  ;;  %424 = vst.msk [vmem:[#allocation5 + $0xe8] sm:$0x1] %vm392_vm4, %v11558_v7 }
 0x156   : > { %425 = vst.msk [vmem:[#allocation5 + $0x7] sm:$0x1] %vm392_vm4, %v11558_v7  ;;  %426 = vst.msk [vmem:[#allocation5 + $0x1f] sm:$0x1] %vm392_vm4, %v11558_v7 }
 0x157   : > { %427 = vst.msk [vmem:[#allocation5 + $0x37] sm:$0x1] %vm392_vm4, %v11558_v7  ;;  %428 = vst.msk [vmem:[#allocation5 + $0x4f] sm:$0x1] %vm392_vm4, %v11558_v7 }
 0x158   : > { %429 = vst.msk [vmem:[#allocation5 + $0x67] sm:$0x1] %vm392_vm4, %v11558_v7  ;;  %430 = vst.msk [vmem:[#allocation5 + $0x7f] sm:$0x1] %vm392_vm4, %v11558_v7 }
 0x159   : > { %431 = vst.msk [vmem:[#allocation5 + $0x97] sm:$0x1] %vm392_vm4, %v11558_v7  ;;  %432 = vst.msk [vmem:[#allocation5 + $0xaf] sm:$0x1] %vm392_vm4, %v11558_v7 }
 0x15a   : > { %433 = vst.msk [vmem:[#allocation5 + $0xc7] sm:$0x1] %vm392_vm4, %v11558_v7  ;;  %434 = vst.msk [vmem:[#allocation5 + $0xdf] sm:$0x1] %vm392_vm4, %v11558_v7 }
 0x15b   : > { %436 = vst.msk [vmem:[#allocation5 + $0x28] sm:$0x1] %vm392_vm4, %v11558_v7  ;;  %437 = vst.msk [vmem:[#allocation5 + $0x40] sm:$0x1] %vm392_vm4, %v11558_v7 }
 0x15c   : > { %438 = vst.msk [vmem:[#allocation5 + $0x58] sm:$0x1] %vm392_vm4, %v11558_v7  ;;  %439 = vst.msk [vmem:[#allocation5 + $0x70] sm:$0x1] %vm392_vm4, %v11558_v7 }
 0x15d   : > { %440 = vst.msk [vmem:[#allocation5 + $0x88] sm:$0x1] %vm392_vm4, %v11558_v7  ;;  %441 = vst.msk [vmem:[#allocation5 + $0xa0] sm:$0x1] %vm392_vm4, %v11558_v7 }
 0x15e   : > { %442 = vst.msk [vmem:[#allocation5 + $0xb8] sm:$0x1] %vm392_vm4, %v11558_v7  ;;  %443 = vst.msk [vmem:[#allocation5 + $0xd0] sm:$0x1] %vm392_vm4, %v11558_v7 }
 0x15f   : > { %408 = vst.msk [vmem:[#allocation4 + $0x10] sm:$0x1] %vm392_vm4, %v11558_v7  ;;  %417 = vst.msk [vmem:[#allocation4 + $0xe8] sm:$0x1] %vm392_vm4, %v11558_v7 }
 0x160   : > { %435 = vst.msk [vmem:[#allocation5 + $0x10] sm:$0x1] %vm392_vm4, %v11558_v7  ;;  %444 = vst.msk [vmem:[#allocation5 + $0xe8] sm:$0x1] %vm392_vm4, %v11558_v7 }
 0x204   : > { %v8656_v45 = vpop.f32.mrb[0].mxu0 }
 0x205   : > { %v2492_v52 = vadd.f32 %v8656_v45, %v10879_v44  ;;  %v2390_v53 = vpop.f32.mrb[1].mxu0 }
 0x206   : > { %v2491_v55 = vadd.f32 %v10879_v44, %v2390_v53 }
 0x207   : > { %v2508_v56 = vmax.f32 %v2492_v52, 0.0 }
 0x208   : > { %v2507_v57 = vmax.f32 %v2491_v55, 0.0  ;;  %v8659_v58 = vpop.f32.mrb[2].mxu0 }
 0x209   : > { %v8890_v59 = vpop.f32.mrb[0].mxu1  ;;  %2524 = vst.msk [vmem:[#allocation3 + $0x8] sm:$0xff] %vm389_vm3, %v2508_v56  ;;  %v2494_v60 = vadd.f32 %v8659_v58, %v10879_v44  ;;  %v2400_v62 = vpop.f32.mrb[3].mxu0 }
 0x20a   : > { %v4572_v61 = vadd.f32 %v8890_v59, %v10879_v44  ;;  %v4476_v63 = vpop.f32.mrb[1].mxu1  ;;  %2523 = vst.msk [vmem:[#allocation3] sm:$0xff] %vm389_vm3, %v2507_v57  ;;  %v2493_v0 = vadd.f32 %v10879_v44, %v2400_v62 }
 0x20b   : > { %v4571_v6 = vadd.f32 %v10879_v44, %v4476_v63  ;;  %v2510_v8 = vmax.f32 %v2494_v60, 0.0 }
 0x20c   : > { %v4588_v10 = vmax.f32 %v4572_v61, 0.0  ;;  %v2509_v30 = vmax.f32 %v2493_v0, 0.0  ;;  %v8662_v34 = vpop.f32.mrb[4].mxu0 }
 0x20d   : > { %v4587_v32 = vmax.f32 %v4571_v6, 0.0  ;;  %v8893_v35 = vpop.f32.mrb[2].mxu1  ;;  %2526 = vst.msk [vmem:[#allocation3 + $0x18] sm:$0xff] %vm389_vm3, %v2510_v8  ;;  %v2496_v41 = vadd.f32 %v8662_v34, %v10879_v44  ;;  %v2410_v46 = vpop.f32.mrb[5].mxu0 }
 0x20e   : > { %4605 = vst.msk [vmem:[#allocation3 + $0x88] sm:$0xff] %vm389_vm3, %v4588_v10  ;;  %v4574_v43 = vadd.f32 %v8893_v35, %v10879_v44  ;;  %v4486_v14 = vpop.f32.mrb[3].mxu1  ;;  %2525 = vst.msk [vmem:[#allocation3 + $0x10] sm:$0xff] %vm389_vm3, %v2509_v30  ;;  %v2495_v18 = vadd.f32 %v10879_v44, %v2410_v46 }
 0x20f   : > { %4604 = vst.msk [vmem:[#allocation3 + $0x80] sm:$0xff] %vm389_vm3, %v4587_v32  ;;  %v4573_v20 = vadd.f32 %v10879_v44, %v4486_v14  ;;  %v2512_v9 = vmax.f32 %v2496_v41, 0.0 }
 0x210   : > { %v4590_v1 = vmax.f32 %v4574_v43, 0.0  ;;  %v2511_v13 = vmax.f32 %v2495_v18, 0.0  ;;  %v8665_v15 = vpop.f32.mrb[6].mxu0 }
 0x211   : > { %v4589_v21 = vmax.f32 %v4573_v20, 0.0  ;;  %v8896_v19 = vpop.f32.mrb[4].mxu1  ;;  %v4620_v22 = vld [vmem:[#allocation3] ss:$2 sm:$0xff]  ;;  %v4652_v23 = vld [vmem:[#allocation3 + $0x1] ss:$2 sm:$0xff]  ;;  %v2498_v24 = vadd.f32 %v8665_v15, %v10879_v44 }
 0x212   : > { %2528 = vst.msk [vmem:[#allocation3 + $0x28] sm:$0xff] %vm389_vm3, %v2512_v9  ;;  %4607 = vst.msk [vmem:[#allocation3 + $0x98] sm:$0xff] %vm389_vm3, %v4590_v1  ;;  %v4576_v25 = vadd.f32 %v8896_v19, %v10879_v44  ;;  %v2420_v26 = vpop.f32.mrb[7].mxu0  ;;  %v4496_v27 = vpop.f32.mrb[5].mxu1  ;;  %v4683_v38 = vmax.f32 %v4620_v22, %v4652_v23 }
 0x213   : > { %2527 = vst.msk [vmem:[#allocation3 + $0x20] sm:$0xff] %vm389_vm3, %v2511_v13  ;;  %4606 = vst.msk [vmem:[#allocation3 + $0x90] sm:$0xff] %vm389_vm3, %v4589_v21  ;;  %v2497_v28 = vadd.f32 %v10879_v44, %v2420_v26  ;;  %v4575_v29 = vadd.f32 %v10879_v44, %v4496_v27  ;;  %v2514_v36 = vmax.f32 %v2498_v24, 0.0 }
 0x214   : > { %v4592_v37 = vmax.f32 %v4576_v25, 0.0  ;;  %v8668_v49 = vpop.f32.mrb[8].mxu0  ;;  %v4699_v7 = vsel %vm389_vm3, %v4683_v38, -inf }
 0x215   : > { %v2513_v47 = vmax.f32 %v2497_v28, 0.0  ;;  %v4591_v48 = vmax.f32 %v4575_v29, 0.0  ;;  %v8899_v50 = vpop.f32.mrb[6].mxu1  ;;  %v4622_v51 = vld [vmem:[#allocation3 + $0x10] ss:$2 sm:$0xff]  ;;  %2530 = vst.msk [vmem:[#allocation3 + $0x38] sm:$0xff] %vm389_vm3, %v2514_v36  ;;  %v2500_v16 = vadd.f32 %v8668_v49, %v10879_v44 }
 0x216   : > { %v4654_v54 = vld [vmem:[#allocation3 + $0x11] ss:$2 sm:$0xff]  ;;  %v4636_v4 = vld [vmem:[#allocation3 + $0x80] ss:$2 sm:$0xff]  ;;  %4609 = vst.msk [vmem:[#allocation3 + $0xa8] sm:$0xff] %vm389_vm3, %v4592_v37  ;;  %v4578_v11 = vadd.f32 %v8899_v50, %v10879_v44  ;;  %v2430_v3 = vpop.f32.mrb[9].mxu0 }
 0x217   : > { %v4684_v5 = vmax.f32 %v4622_v51, %v4654_v54  ;;  %v4668_v12 = vld [vmem:[#allocation3 + $0x81] ss:$2 sm:$0xff]  ;;  %2529 = vst.msk [vmem:[#allocation3 + $0x30] sm:$0xff] %vm389_vm3, %v2513_v47  ;;  %4608 = vst.msk [vmem:[#allocation3 + $0xa0] sm:$0xff] %vm389_vm3, %v4591_v48  ;;  %v4506_v33 = vpop.f32.mrb[7].mxu1  ;;  %v2516_v31 = vmax.f32 %v2500_v16, 0.0  ;;  %v2499_v17 = vadd.f32 %v10879_v44, %v2430_v3 }
 0x218   : > { %v4594_v2 = vmax.f32 %v4578_v11, 0.0  ;;  %v4691_v40 = vmax.f32 %v4636_v4, %v4668_v12  ;;  %v4577_v45 = vadd.f32 %v10879_v44, %v4506_v33  ;;  %v8671_v52 = vpop.f32.mrb[10].mxu0  ;;  %v10944_v16 = vld [vmem:[%s11432_s3 + $0x10] sm:$0xff] }
 0x219   : > { %v4700_v39 = vsel %vm389_vm3, %v4684_v5, -inf  ;;  %v8902_v53 = vpop.f32.mrb[8].mxu1  ;;  %2532 = vst.msk [vmem:[#allocation3 + $0x48] sm:$0xff] %vm389_vm3, %v2516_v31  ;;  %v2515_v58 = vmax.f32 %v2499_v17, 0.0  ;;  %v2502_v59 = vadd.f32 %v8671_v52, %v10879_v44  ;;  %v2440_v0 = vpop.f32.mrb[11].mxu0 }
 0x21a   : > { %v4701_v55 = vmax.f32 %v4699_v7, %v4700_v39  ;;  %v4624_v56 = vld [vmem:[#allocation3 + $0x20] ss:$2 sm:$0xff]  ;;  %v4656_v57 = vld [vmem:[#allocation3 + $0x21] ss:$2 sm:$0xff]  ;;  %4611 = vst.msk [vmem:[#allocation3 + $0xb8] sm:$0xff] %vm389_vm3, %v4594_v2  ;;  %v4593_v62 = vmax.f32 %v4577_v45, 0.0  ;;  %v4580_v63 = vadd.f32 %v8902_v53, %v10879_v44  ;;  %v2501_v10 = vadd.f32 %v10879_v44, %v2440_v0 }
 0x21b   : > { %v4638_v60 = vld [vmem:[#allocation3 + $0x90] ss:$2 sm:$0xff]  ;;  %v4670_v61 = vld [vmem:[#allocation3 + $0x91] ss:$2 sm:$0xff]  ;;  %2531 = vst.msk [vmem:[#allocation3 + $0x40] sm:$0xff] %vm389_vm3, %v2515_v58  ;;  %v2518_v8 = vmax.f32 %v2502_v59, 0.0  ;;  %v4685_v34 = vmax.f32 %v4624_v56, %v4656_v57 }
 0x21c   : > { %4724 = vst.msk [vmem:[#allocation4 + $0x20] sm:$0xff] %vm389_vm3, %v4701_v55  ;;  %v4692_v6 = vmax.f32 %v4638_v60, %v4670_v61  ;;  %v4516_v30 = vpop.f32.mrb[9].mxu1  ;;  %v4711_v32 = vsel %vm389_vm3, %v4691_v40, -inf  ;;  %4610 = vst.msk [vmem:[#allocation3 + $0xb0] sm:$0xff] %vm389_vm3, %v4593_v62  ;;  %v4596_v35 = vmax.f32 %v4580_v63, 0.0  ;;  %v8674_v43 = vpop.f32.mrb[12].mxu0 }
 0x21d   : > { %v4579_v41 = vadd.f32 %v10879_v44, %v4516_v30  ;;  %v8905_v46 = vpop.f32.mrb[10].mxu1  ;;  %2534 = vst.msk [vmem:[#allocation3 + $0x58] sm:$0xff] %vm389_vm3, %v2518_v8  ;;  %v2517_v9 = vmax.f32 %v2501_v10, 0.0  ;;  %v2504_v1 = vadd.f32 %v8674_v43, %v10879_v44  ;;  %v2450_v23 = vpop.f32.mrb[13].mxu0  ;;  %v4702_v29 = vsel %vm389_vm3, %v4685_v34, -inf }
 0x21e   : > { %v4712_v14 = vsel %vm389_vm3, %v4692_v6, -inf  ;;  %v4626_v18 = vld [vmem:[#allocation3 + $0x30] ss:$2 sm:$0xff]  ;;  %v4658_v20 = vld [vmem:[#allocation3 + $0x31] ss:$2 sm:$0xff]  ;;  %v4582_v13 = vadd.f32 %v8905_v46, %v10879_v44  ;;  %4613 = vst.msk [vmem:[#allocation3 + $0xc8] sm:$0xff] %vm389_vm3, %v4596_v35  ;;  %v2503_v27 = vadd.f32 %v10879_v44, %v2450_v23 }
 0x21f   : > { %v4686_v21 = vmax.f32 %v4626_v18, %v4658_v20  ;;  %v4640_v15 = vld [vmem:[#allocation3 + $0xa0] ss:$2 sm:$0xff]  ;;  %v4672_v19 = vld [vmem:[#allocation3 + $0xa1] ss:$2 sm:$0xff]  ;;  %v4595_v22 = vmax.f32 %v4579_v41, 0.0  ;;  %v4713_v24 = vmax.f32 %v4711_v32, %v4712_v14  ;;  %2533 = vst.msk [vmem:[#allocation3 + $0x50] sm:$0xff] %vm389_vm3, %v2517_v9 }
 0x220   : > { %v2520_v25 = vmax.f32 %v2504_v1, 0.0  ;;  %v4598_v26 = vmax.f32 %v4582_v13, 0.0  ;;  %v4526_v28 = vpop.f32.mrb[11].mxu1  ;;  %v8677_v38 = vpop.f32.mrb[14].mxu0  ;;  %v4693_v48 = vmax.f32 %v4640_v15, %v4672_v19  ;;  %v2519_v49 = vmax.f32 %v2503_v27, 0.0 }
 0x221   : > { %v4703_v36 = vsel %vm389_vm3, %v4686_v21, -inf  ;;  %4612 = vst.msk [vmem:[#allocation3 + $0xc0] sm:$0xff] %vm389_vm3, %v4595_v22  ;;  %v4581_v37 = vadd.f32 %v10879_v44, %v4526_v28  ;;  %v8908_v47 = vpop.f32.mrb[12].mxu1  ;;  %4728 = vst.msk [vmem:[#allocation4 + $0x80] sm:$0xff] %vm389_vm3, %v4713_v24  ;;  %v2506_v50 = vadd.f32 %v8677_v38, %v10879_v44  ;;  %v2460_v54 = vpop.f32.mrb[15].mxu0 }
 0x222   : > { %2536 = vst.msk [vmem:[#allocation3 + $0x68] sm:$0xff] %vm389_vm3, %v2520_v25  ;;  %4615 = vst.msk [vmem:[#allocation3 + $0xd8] sm:$0xff] %vm389_vm3, %v4598_v26  ;;  %v4584_v51 = vadd.f32 %v8908_v47, %v10879_v44  ;;  %v4536_v4 = vpop.f32.mrb[13].mxu1  ;;  %v4628_v11 = vld [vmem:[#allocation3 + $0x40] ss:$2 sm:$0xff]  ;;  %v2505_v3 = vadd.f32 %v10879_v44, %v2460_v54  ;;  %v4704_v2 = vmax.f32 %v4702_v29, %v4703_v36  ;;  %v4714_v59 = vsel %vm389_vm3, %v4693_v48, -inf }
 0x223   : > { %v4660_v5 = vld [vmem:[#allocation3 + $0x41] ss:$2 sm:$0xff]  ;;  %v4597_v12 = vmax.f32 %v4581_v37, 0.0  ;;  %v4583_v33 = vadd.f32 %v10879_v44, %v4536_v4  ;;  %v4642_v17 = vld [vmem:[#allocation3 + $0xb0] ss:$2 sm:$0xff]  ;;  %2535 = vst.msk [vmem:[#allocation3 + $0x60] sm:$0xff] %vm389_vm3, %v2519_v49 }
 0x224   : > { %v10948_v31 = vld [vmem:[#allocation4 + $0x20] sm:$0xff]  ;;  %v4674_v7 = vld [vmem:[#allocation3 + $0xb1] ss:$2 sm:$0xff]  ;;  %v2522_v39 = vmax.f32 %v2506_v50, 0.0  ;;  %v4600_v40 = vmax.f32 %v4584_v51, 0.0  ;;  %v2521_v52 = vmax.f32 %v2505_v3, 0.0  ;;  %v4687_v56 = vmax.f32 %v4628_v11, %v4660_v5 }
 0x225   : > { %8915 = vmatmul.mubr.msk.f32.vlgmr.msra.gmra.mrb[16].mxu0 %vm389_vm3, %v10948_v31  ;;  %v4694_v45 = vmax.f32 %v4642_v17, %v4674_v7  ;;  %4614 = vst.msk [vmem:[#allocation3 + $0xd0] sm:$0xff] %vm389_vm3, %v4597_v12  ;;  %v4599_v53 = vmax.f32 %v4583_v33, 0.0  ;;  %v8911_v55 = vpop.f32.mrb[14].mxu1  ;;  %4725 = vst.msk [vmem:[#allocation4 + $0x38] sm:$0xff] %vm389_vm3, %v4704_v2  ;;  %v4733_v4 = vld [vmem:[#allocation4 + $0x7] sm:$0xff]  ;;  %v4734_v12 = vld [vmem:[#allocation4 + $0x1f] sm:$0xff] }
 0x226   : > { %8927 = vmatpush3.msra.mxu0 %v10873_v42  ;;  %2538 = vst.msk [vmem:[#allocation3 + $0x78] sm:$0xff] %vm389_vm3, %v2522_v39  ;;  %4617 = vst.msk [vmem:[#allocation3 + $0xe8] sm:$0xff] %vm389_vm3, %v4600_v40  ;;  %v4586_v57 = vadd.f32 %v8911_v55, %v10879_v44  ;;  %v4546_v58 = vpop.f32.mrb[15].mxu1  ;;  %v4630_v61 = vld [vmem:[#allocation3 + $0x50] ss:$2 sm:$0xff]  ;;  %v4705_v32 = vsel %vm389_vm3, %v4687_v56, -inf }
 0x227   : > { %8940 = vmatprep.subr.mxu0 %v10944_v16  ;;  %v4715_v60 = vsel %vm389_vm3, %v4694_v45, -inf  ;;  %v4662_v62 = vld [vmem:[#allocation3 + $0x51] ss:$2 sm:$0xff]  ;;  %2537 = vst.msk [vmem:[#allocation3 + $0x70] sm:$0xff] %vm389_vm3, %v2521_v52  ;;  %4616 = vst.msk [vmem:[#allocation3 + $0xe0] sm:$0xff] %vm389_vm3, %v4599_v53  ;;  %v4585_v42 = vadd.f32 %v10879_v44, %v4546_v58  ;;  %v7888_v5 = vld [vmem:[%s11434_s5 + $0x8] sm:$0xff] }
 0x228   : > { %v4688_v63 = vmax.f32 %v4630_v61, %v4662_v62  ;;  %v4644_v0 = vld [vmem:[#allocation3 + $0xc0] ss:$2 sm:$0xff]  ;;  %v4676_v6 = vld [vmem:[#allocation3 + $0xc1] ss:$2 sm:$0xff]  ;;  %v4602_v8 = vmax.f32 %v4586_v57, 0.0  ;;  %v4716_v10 = vmax.f32 %v4714_v59, %v4715_v60  ;;  %9038 = vmatprep.subr.mxu1 %v7888_v5  ;;  %v7833_v3 = vld [vmem:[%s11432_s3 + $0x18] sm:$0xff] }
 0x229   : > { %v4601_v30 = vmax.f32 %v4585_v42, 0.0  ;;  %v4695_v35 = vmax.f32 %v4644_v0, %v4676_v6  ;;  %v10992_v51 = vld [vmem:[#allocation4 + $0x80] sm:$0xff]  ;;  %9039 = vmatpush3.msra.mxu1 %v7888_v5  ;;  %v5010_v39 = vld [vmem:[#allocation4 + $0x9] sm:$0xff]  ;;  %v7869_v42 = vld [vmem:[%s11432_s3 + $0x38] sm:$0xff] }
 0x22a   : > { %v4706_v34 = vsel %vm389_vm3, %v4688_v63, -inf  ;;  %4619 = vst.msk [vmem:[#allocation3 + $0xf8] sm:$0xff] %vm389_vm3, %v4602_v8  ;;  %4729 = vst.msk [vmem:[#allocation4 + $0x98] sm:$0xff] %vm389_vm3, %v4716_v10  ;;  %v4632_v41 = vld [vmem:[#allocation3 + $0x60] ss:$2 sm:$0xff]  ;;  %v7860_v62 = vld [vmem:[%s11432_s3 + $0x30] sm:$0xff] }
 0x22b   : > { %v4664_v43 = vld [vmem:[#allocation3 + $0x61] ss:$2 sm:$0xff]  ;;  %4618 = vst.msk [vmem:[#allocation3 + $0xf0] sm:$0xff] %vm389_vm3, %v4601_v30  ;;  %v4707_v44 = vmax.f32 %v4705_v32, %v4706_v34  ;;  %v4717_v21 = vsel %vm389_vm3, %v4695_v35, -inf  ;;  %v6081_v30 = vld [vmem:[#allocation5 + $0x8] sm:$0xff] }
 0x22c   : > { %v4646_v46 = vld [vmem:[#allocation3 + $0xd0] ss:$2 sm:$0xff]  ;;  %v4678_v14 = vld [vmem:[#allocation3 + $0xd1] ss:$2 sm:$0xff]  ;;  %v4689_v20 = vmax.f32 %v4632_v41, %v4664_v43  ;;  %v5011_v45 = vld [vmem:[#allocation4 + $0x21] sm:$0xff]  ;;  %9040 = vmatprep.mubr.msk.f32.mxu1 %vm389_vm3, %v6081_v30 }
 0x22d   : > { %v10970_v18 = vld [vmem:[#allocation4 + $0x38] sm:$0xff]  ;;  %v4696_v9 = vmax.f32 %v4646_v46, %v4678_v14  ;;  %4726 = vst.msk [vmem:[#allocation4 + $0x50] sm:$0xff] %vm389_vm3, %v4707_v44  ;;  %v7842_v52 = vld [vmem:[%s11432_s3 + $0x20] sm:$0xff]  ;;  %v7851_v60 = vld [vmem:[%s11432_s3 + $0x28] sm:$0xff] }
 0x22e   : > { %8917 = vmatprep.mubr.msk.f32.mxu0 %vm389_vm3, %v10970_v18  ;;  %v4634_v1 = vld [vmem:[#allocation3 + $0x70] ss:$2 sm:$0xff]  ;;  %v4666_v13 = vld [vmem:[#allocation3 + $0x71] ss:$2 sm:$0xff]  ;;  %v4648_v22 = vld [vmem:[#allocation3 + $0xe0] ss:$2 sm:$0xff] }
 0x22f   : > { %v4718_v15 = vsel %vm389_vm3, %v4696_v9, -inf  ;;  %v4690_v19 = vmax.f32 %v4634_v1, %v4666_v13  ;;  %v4680_v23 = vld [vmem:[#allocation3 + $0xe1] ss:$2 sm:$0xff]  ;;  %v4708_v25 = vsel %vm389_vm3, %v4689_v20, -inf  ;;  %v11012_v33 = vld [vmem:[#allocation4 + $0x37] sm:$0xff] }
 0x230   : > { %v4719_v24 = vmax.f32 %v4717_v21, %v4718_v15  ;;  %v4697_v27 = vmax.f32 %v4648_v22, %v4680_v23  ;;  %v11025_v7 = vld [vmem:[#allocation4 + $0x7f] sm:$0xff] }
 0x231   : > { %v4709_v26 = vsel %vm389_vm3, %v4690_v19, -inf  ;;  %v10996_v54 = vld [vmem:[#allocation4 + $0x98] sm:$0xff]  ;;  %v11054_v57 = vld [vmem:[#allocation4 + $0x81] sm:$0xff]  ;;  %v7887_v34 = vld [vmem:[%s11433_s4] ss:$0 sm:$0xff] }
 0x232   : > { %v4650_v28 = vld [vmem:[#allocation3 + $0xf0] ss:$2 sm:$0xff]  ;;  %v4682_v29 = vld [vmem:[#allocation3 + $0xf1] ss:$2 sm:$0xff]  ;;  %v4710_v36 = vmax.f32 %v4708_v25, %v4709_v26  ;;  %4730 = vst.msk [vmem:[#allocation4 + $0xb0] sm:$0xff] %vm389_vm3, %v4719_v24  ;;  %v4720_v47 = vsel %vm389_vm3, %v4697_v27, -inf }
 0x233   : > { %v4698_v37 = vmax.f32 %v4650_v28, %v4682_v29  ;;  %v11042_v53 = vld [vmem:[#allocation4 + $0x39] sm:$0xff]  ;;  %v5900_v10 = vld [vmem:[#allocation4 + $0xe1] sm:$0xff] }
 0x234   : > { %v10980_v38 = vld [vmem:[#allocation4 + $0x50] sm:$0xff]  ;;  %4727 = vst.msk [vmem:[#allocation4 + $0x68] sm:$0xff] %vm389_vm3, %v4710_v36  ;;  %v11058_v58 = vld [vmem:[#allocation4 + $0x99] sm:$0xff] }
 0x235   : > { %v4721_v48 = vsel %vm389_vm3, %v4698_v37, -inf  ;;  %8918 = vmatmul.mubr.msk.f32.gmra.mrb[18].mxu0 %vm389_vm3, %v10980_v38  ;;  %v11017_v2 = vld [vmem:[#allocation4 + $0x4f] sm:$0xff]  ;;  %v7878_v0 = vld [vmem:[%s11432_s3 + $0x40] sm:$0xff] }
 0x236   : > { %v4722_v49 = vmax.f32 %v4720_v47, %v4721_v48  ;;  %v11046_v55 = vld [vmem:[#allocation4 + $0x51] sm:$0xff]  ;;  %v5606_v6 = vld [vmem:[#allocation4 + $0xdf] sm:$0xff] }
 0x237   : > { %v5753_v8 = vld [vmem:[#allocation4 + $0xe0] sm:$0xff]  ;;  %v7905_v36 = vld [vmem:[%s11434_s5 + $0x10] sm:$0xff] }
 0x238   : > { %4731 = vst.msk [vmem:[#allocation4 + $0xc8] sm:$0xff] %vm389_vm3, %v4722_v49  ;;  %v6080_v32 = vld [vmem:[%s11434_s5] sm:$0xff] }
 0x239   : > { %v11000_v11 = vld [vmem:[#allocation4 + $0xb0] sm:$0xff]  ;;  %9052 = vmatprep.subr.mxu1 %v6080_v32 }
 0x23a   : > { %v11033_v40 = vld [vmem:[#allocation4 + $0xaf] sm:$0xff] }
 0x23b   : > { %v10988_v50 = vld [vmem:[#allocation4 + $0x68] sm:$0xff]  ;;  %v11062_v59 = vld [vmem:[#allocation4 + $0xb1] sm:$0xff] }
 0x23c   : > { %8920 = vmatprep.mubr.msk.f32.mxu0 %vm389_vm3, %v10988_v50  ;;  %v11021_v17 = vld [vmem:[#allocation4 + $0x67] sm:$0xff] }
 0x23d   : > { %8921 = vmatmul.mubr.msk.f32.gmra.mrb[20].mxu0 %vm389_vm3, %v10992_v51  ;;  %v11050_v56 = vld [vmem:[#allocation4 + $0x69] sm:$0xff] }
 0x23e   : > { %8923 = vmatprep.mubr.msk.f32.mxu0 %vm389_vm3, %v10996_v54 }
 0x23f   : > { %v5164_v61 = vld [vmem:[#allocation4 + $0xc7] sm:$0xff] }
 0x240   : > { %v5458_v63 = vld [vmem:[#allocation4 + $0xc9] sm:$0xff] }
 0x241   : > { %8924 = vmatmul.mubr.msk.f32.gmra.mrb[22].mxu0 %vm389_vm3, %v11000_v11 }
 0x242   : > { %8928 = vmatprep.mubr.msk.f32.mxu0 %vm389_vm3, %v4733_v4  ;;  %v6072_v4 = vld [vmem:[#allocation5 + $0x7] sm:$0xff] }
 0x245   : > { %8929 = vmatmul.mubr.msk.f32.vlgmr.msra.gmra.mrb[16].mxu0 %vm389_vm3, %v4734_v12 }
 0x246   : > { %8941 = vmatpush3.msra.mxu0 %v10944_v16  ;;  %8931 = vmatprep.mubr.msk.f32.mxu0 %vm389_vm3, %v11012_v33  ;;  %v11029_v16 = vld [vmem:[#allocation4 + $0x97] sm:$0xff] }
 0x247   : > { %8954 = vmatprep.subr.mxu0 %v7833_v3 }
 0x249   : > { %8932 = vmatmul.mubr.msk.f32.gmra.mrb[18].mxu0 %vm389_vm3, %v11017_v2 }
 0x24a   : > { %8934 = vmatprep.mubr.msk.f32.mxu0 %vm389_vm3, %v11021_v17 }
 0x24d   : > { %8935 = vmatmul.mubr.msk.f32.gmra.mrb[20].mxu0 %vm389_vm3, %v11025_v7 }
 0x24e   : > { %8937 = vmatprep.mubr.msk.f32.mxu0 %vm389_vm3, %v11029_v16 }
 0x251   : > { %8938 = vmatmul.mubr.msk.f32.gmra.mrb[22].mxu0 %vm389_vm3, %v11033_v40 }
 0x252   : > { %8942 = vmatprep.mubr.msk.f32.mxu0 %vm389_vm3, %v5010_v39 }
 0x255   : > { %8943 = vmatmul.mubr.msk.f32.vlgmr.msra.gmra.mrb[16].mxu0 %vm389_vm3, %v5011_v45 }
 0x256   : > { %8955 = vmatpush3.msra.mxu0 %v7833_v3  ;;  %8945 = vmatprep.mubr.msk.f32.mxu0 %vm389_vm3, %v11042_v53 }
 0x257   : > { %8968 = vmatprep.subr.mxu0 %v7842_v52 }
 0x259   : > { %8946 = vmatmul.mubr.msk.f32.gmra.mrb[18].mxu0 %vm389_vm3, %v11046_v55 }
 0x25a   : > { %8948 = vmatprep.mubr.msk.f32.mxu0 %vm389_vm3, %v11050_v56 }
 0x25d   : > { %8949 = vmatmul.mubr.msk.f32.gmra.mrb[20].mxu0 %vm389_vm3, %v11054_v57 }
 0x25e   : > { %8951 = vmatprep.mubr.msk.f32.mxu0 %vm389_vm3, %v11058_v58 }
 0x261   : > { %8952 = vmatmul.mubr.msk.f32.gmra.mrb[22].mxu0 %vm389_vm3, %v11062_v59 }
 0x262   : > { %8956 = vmatprep.mubr.msk.f32.mxu0 %vm389_vm3, %v4734_v12  ;;  %v7914_v12 = vld [vmem:[%s11434_s5 + $0x18] sm:$0xff] }
 0x265   : > { %8957 = vmatmul.mubr.msk.f32.vlgmr.msra.gmra.mrb[16].mxu0 %vm389_vm3, %v11012_v33 }
 0x266   : > { %8969 = vmatpush3.msra.mxu0 %v7842_v52  ;;  %8959 = vmatprep.mubr.msk.f32.mxu0 %vm389_vm3, %v11017_v2 }
 0x267   : > { %8982 = vmatprep.subr.mxu0 %v7851_v60 }
 0x269   : > { %8960 = vmatmul.mubr.msk.f32.gmra.mrb[18].mxu0 %vm389_vm3, %v11021_v17 }
 0x26a   : > { %8962 = vmatprep.mubr.msk.f32.mxu0 %vm389_vm3, %v11025_v7 }
 0x26d   : > { %8963 = vmatmul.mubr.msk.f32.gmra.mrb[20].mxu0 %vm389_vm3, %v11029_v16 }
 0x26e   : > { %8965 = vmatprep.mubr.msk.f32.mxu0 %vm389_vm3, %v11033_v40 }
 0x271   : > { %8966 = vmatmul.mubr.msk.f32.gmra.mrb[22].mxu0 %vm389_vm3, %v5164_v61 }
 0x272   : > { %8970 = vmatprep.mubr.msk.f32.mxu0 %vm389_vm3, %v10948_v31  ;;  %v5311_v31 = vld [vmem:[#allocation4 + $0xc8] sm:$0xff] }
 0x275   : > { %8971 = vmatmul.mubr.msk.f32.vlgmr.msra.gmra.mrb[16].mxu0 %vm389_vm3, %v10970_v18 }
 0x276   : > { %8983 = vmatpush3.msra.mxu0 %v7851_v60  ;;  %8973 = vmatprep.mubr.msk.f32.mxu0 %vm389_vm3, %v10980_v38 }
 0x277   : > { %8996 = vmatprep.subr.mxu0 %v7860_v62 }
 0x279   : > { %8974 = vmatmul.mubr.msk.f32.gmra.mrb[18].mxu0 %vm389_vm3, %v10988_v50 }
 0x27a   : > { %8976 = vmatprep.mubr.msk.f32.mxu0 %vm389_vm3, %v10992_v51 }
 0x27d   : > { %8977 = vmatmul.mubr.msk.f32.gmra.mrb[20].mxu0 %vm389_vm3, %v10996_v54 }
 0x27e   : > { %8979 = vmatprep.mubr.msk.f32.mxu0 %vm389_vm3, %v11000_v11 }
 0x281   : > { %8980 = vmatmul.mubr.msk.f32.gmra.mrb[22].mxu0 %vm389_vm3, %v5311_v31 }
 0x282   : > { %8984 = vmatprep.mubr.msk.f32.mxu0 %vm389_vm3, %v5011_v45  ;;  %v7923_v45 = vld [vmem:[%s11434_s5 + $0x20] sm:$0xff] }
 0x285   : > { %8985 = vmatmul.mubr.msk.f32.vlgmr.msra.gmra.mrb[16].mxu0 %vm389_vm3, %v11042_v53 }
 0x286   : > { %8997 = vmatpush3.msra.mxu0 %v7860_v62  ;;  %8987 = vmatprep.mubr.msk.f32.mxu0 %vm389_vm3, %v11046_v55 }
 0x287   : > { %9010 = vmatprep.subr.mxu0 %v7869_v42 }
 0x289   : > { %8988 = vmatmul.mubr.msk.f32.gmra.mrb[18].mxu0 %vm389_vm3, %v11050_v56 }
 0x28a   : > { %8990 = vmatprep.mubr.msk.f32.mxu0 %vm389_vm3, %v11054_v57 }
 0x28d   : > { %8991 = vmatmul.mubr.msk.f32.gmra.mrb[20].mxu0 %vm389_vm3, %v11058_v58 }
 0x28e   : > { %8993 = vmatprep.mubr.msk.f32.mxu0 %vm389_vm3, %v11062_v59 }
 0x291   : > { %8994 = vmatmul.mubr.msk.f32.gmra.mrb[22].mxu0 %vm389_vm3, %v5458_v63 }
 0x292   : > { %8998 = vmatprep.mubr.msk.f32.mxu0 %vm389_vm3, %v11012_v33 }
 0x295   : > { %8999 = vmatmul.mubr.msk.f32.vlgmr.msra.gmra.mrb[16].mxu0 %vm389_vm3, %v11017_v2 }
 0x296   : > { %9011 = vmatpush3.msra.mxu0 %v7869_v42  ;;  %9001 = vmatprep.mubr.msk.f32.mxu0 %vm389_vm3, %v11021_v17 }
 0x297   : > { %9024 = vmatprep.subr.mxu0 %v7878_v0 }
 0x299   : > { %9002 = vmatmul.mubr.msk.f32.gmra.mrb[18].mxu0 %vm389_vm3, %v11025_v7 }
 0x29a   : > { %9004 = vmatprep.mubr.msk.f32.mxu0 %vm389_vm3, %v11029_v16  ;;  %v6349_v16 = vld [vmem:[#allocation5 + $0x9] sm:$0xff] }
 0x29d   : > { %9005 = vmatmul.mubr.msk.f32.gmra.mrb[20].mxu0 %vm389_vm3, %v11033_v40 }
 0x29e   : > { %9007 = vmatprep.mubr.msk.f32.mxu0 %vm389_vm3, %v5164_v61  ;;  %v7941_v61 = vld [vmem:[%s11434_s5 + $0x30] sm:$0xff] }
 0x2a1   : > { %9008 = vmatmul.mubr.msk.f32.gmra.mrb[22].mxu0 %vm389_vm3, %v5606_v6  ;;  %v7092_v6 = vld [vmem:[#allocation5 + $0xe0] sm:$0xff] }
 0x2a2   : > { %9012 = vmatprep.mubr.msk.f32.mxu0 %vm389_vm3, %v10970_v18 }
 0x2a5   : > { %9013 = vmatmul.mubr.msk.f32.vlgmr.msra.gmra.mrb[16].mxu0 %vm389_vm3, %v10980_v38 }
 0x2a6   : > { %9025 = vmatpush3.msra.mxu0 %v7878_v0  ;;  %9015 = vmatprep.mubr.msk.f32.mxu0 %vm389_vm3, %v10988_v50  ;;  %v6945_v0 = vld [vmem:[#allocation5 + $0xdf] sm:$0xff] }
 0x2a9   : > { %9016 = vmatmul.mubr.msk.f32.gmra.mrb[18].mxu0 %vm389_vm3, %v10992_v51 }
 0x2aa   : > { %9018 = vmatprep.mubr.msk.f32.mxu0 %vm389_vm3, %v10996_v54 }
 0x2ad   : > { %9019 = vmatmul.mubr.msk.f32.gmra.mrb[20].mxu0 %vm389_vm3, %v11000_v11 }
 0x2ae   : > { %9021 = vmatprep.mubr.msk.f32.mxu0 %vm389_vm3, %v5311_v31  ;;  %v7950_v31 = vld [vmem:[%s11434_s5 + $0x38] sm:$0xff] }
 0x2b1   : > { %9022 = vmatmul.mubr.msk.f32.gmra.mrb[22].mxu0 %vm389_vm3, %v5753_v8  ;;  %v7239_v8 = vld [vmem:[#allocation5 + $0xe1] sm:$0xff] }
 0x2b2   : > { %9026 = vmatprep.mubr.msk.f32.mxu0 %vm389_vm3, %v11042_v53 }
 0x2b5   : > { %9027 = vmatmul.mubr.msk.f32.vlgmr.msra.gmra.mrb[16].mxu0 %vm389_vm3, %v11046_v55 }
 0x2b6   : > { %9029 = vmatprep.mubr.msk.f32.mxu0 %vm389_vm3, %v11050_v56 }
 0x2b9   : > { %9030 = vmatmul.mubr.msk.f32.gmra.mrb[18].mxu0 %vm389_vm3, %v11054_v57 }
 0x2ba   : > { %9032 = vmatprep.mubr.msk.f32.mxu0 %vm389_vm3, %v11058_v58 }
 0x2bd   : > { %9033 = vmatmul.mubr.msk.f32.gmra.mrb[20].mxu0 %vm389_vm3, %v11062_v59  ;;  %v7932_v59 = vld [vmem:[%s11434_s5 + $0x28] sm:$0xff] }
 0x2be   : > { %9035 = vmatprep.mubr.msk.f32.mxu0 %vm389_vm3, %v5458_v63  ;;  %v7959_v63 = vld [vmem:[%s11434_s5 + $0x40] sm:$0xff] }
 0x2c1   : > { %9036 = vmatmul.mubr.msk.f32.gmra.mrb[22].mxu0 %vm389_vm3, %v5900_v10  ;;  %v7968_v10 = vld [vmem:[%s11435_s6] ss:$0 sm:$0xff] }
 0x388   : > { %v9028_v35 = vpop.f32.mrb[16].mxu0 }
 0x389   : > { %v6047_v41 = vadd.f32 %v9028_v35, %v7887_v34  ;;  %v5993_v43 = vpop.f32.mrb[17].mxu0 }
 0x38a   : > { %v6046_v44 = vadd.f32 %v7887_v34, %v5993_v43 }
 0x38b   : > { %v6055_v46 = vmax.f32 %v6047_v41, 0.0 }
 0x38c   : > { %v6054_v14 = vmax.f32 %v6046_v44, 0.0  ;;  %v9031_v18 = vpop.f32.mrb[18].mxu0 }
 0x38d   : > { %6064 = vst.msk [vmem:[#allocation5 + $0x38] sm:$0xff] %vm389_vm3, %v6055_v46  ;;  %v6049_v20 = vadd.f32 %v9031_v18, %v7887_v34  ;;  %v6003_v9 = vpop.f32.mrb[19].mxu0 }
 0x38e   : > { %6063 = vst.msk [vmem:[#allocation5 + $0x20] sm:$0xff] %vm389_vm3, %v6054_v14  ;;  %v6048_v1 = vadd.f32 %v7887_v34, %v6003_v9 }
 0x38f   : > { %v6057_v13 = vmax.f32 %v6049_v20, 0.0 }
 0x390   : > { %v6056_v21 = vmax.f32 %v6048_v1, 0.0  ;;  %v9034_v15 = vpop.f32.mrb[20].mxu0 }
 0x391   : > { %6066 = vst.msk [vmem:[#allocation5 + $0x68] sm:$0xff] %vm389_vm3, %v6057_v13  ;;  %v6051_v19 = vadd.f32 %v9034_v15, %v7887_v34  ;;  %v6013_v22 = vpop.f32.mrb[21].mxu0 }
 0x392   : > { %6065 = vst.msk [vmem:[#allocation5 + $0x50] sm:$0xff] %vm389_vm3, %v6056_v21  ;;  %v6050_v23 = vadd.f32 %v7887_v34, %v6013_v22 }
 0x393   : > { %v6059_v24 = vmax.f32 %v6051_v19, 0.0 }
 0x394   : > { %v6058_v25 = vmax.f32 %v6050_v23, 0.0  ;;  %v9037_v26 = vpop.f32.mrb[22].mxu0  ;;  %v11183_v38 = vld [vmem:[#allocation5 + $0x38] sm:$0xff] }
 0x395   : > { %6068 = vst.msk [vmem:[#allocation5 + $0x98] sm:$0xff] %vm389_vm3, %v6059_v24  ;;  %v6053_v27 = vadd.f32 %v9037_v26, %v7887_v34  ;;  %v6023_v28 = vpop.f32.mrb[23].mxu0  ;;  %v11175_v29 = vld [vmem:[#allocation5 + $0x20] sm:$0xff]  ;;  %v11214_v3 = vld [vmem:[#allocation5 + $0x37] sm:$0xff] }
 0x396   : > { %6067 = vst.msk [vmem:[#allocation5 + $0x80] sm:$0xff] %vm389_vm3, %v6058_v25  ;;  %v6052_v37 = vadd.f32 %v7887_v34, %v6023_v28  ;;  %9041 = vmatmul.mubr.msk.f32.vlgmr.msra.gmra.mrb[16].mxu1 %vm389_vm3, %v11175_v29  ;;  %v6073_v5 = vld [vmem:[#allocation5 + $0x1f] sm:$0xff] }
 0x397   : > { %v6061_v47 = vmax.f32 %v6053_v27, 0.0  ;;  %9053 = vmatpush3.msra.mxu1 %v6080_v32  ;;  %9043 = vmatprep.mubr.msk.f32.mxu1 %vm389_vm3, %v11183_v38  ;;  %v6350_v40 = vld [vmem:[#allocation5 + $0x21] sm:$0xff]  ;;  %v11243_v52 = vld [vmem:[#allocation5 + $0x39] sm:$0xff] }
 0x398   : > { %v6060_v48 = vmax.f32 %v6052_v37, 0.0  ;;  %9066 = vmatprep.subr.mxu1 %v7905_v36  ;;  %v11193_v50 = vld [vmem:[#allocation5 + $0x68] sm:$0xff] }
 0x399   : > { %6070 = vst.msk [vmem:[#allocation5 + $0xc8] sm:$0xff] %vm389_vm3, %v6061_v47  ;;  %v11188_v49 = vld [vmem:[#allocation5 + $0x50] sm:$0xff]  ;;  %v11222_v2 = vld [vmem:[#allocation5 + $0x67] sm:$0xff] }
 0x39a   : > { %6069 = vst.msk [vmem:[#allocation5 + $0xb0] sm:$0xff] %vm389_vm3, %v6060_v48  ;;  %9044 = vmatmul.mubr.msk.f32.gmra.mrb[18].mxu1 %vm389_vm3, %v11188_v49  ;;  %v11218_v33 = vld [vmem:[#allocation5 + $0x4f] sm:$0xff] }
 0x39b   : > { %9046 = vmatprep.mubr.msk.f32.mxu1 %vm389_vm3, %v11193_v50  ;;  %v11247_v53 = vld [vmem:[#allocation5 + $0x51] sm:$0xff]  ;;  %v11251_v55 = vld [vmem:[#allocation5 + $0x69] sm:$0xff] }
 0x39c   : > { %v11201_v54 = vld [vmem:[#allocation5 + $0x98] sm:$0xff] }
 0x39d   : > { %v11197_v51 = vld [vmem:[#allocation5 + $0x80] sm:$0xff]  ;;  %v11230_v7 = vld [vmem:[#allocation5 + $0x97] sm:$0xff] }
 0x39e   : > { %9047 = vmatmul.mubr.msk.f32.gmra.mrb[20].mxu1 %vm389_vm3, %v11197_v51  ;;  %v11226_v17 = vld [vmem:[#allocation5 + $0x7f] sm:$0xff] }
 0x39f   : > { %9049 = vmatprep.mubr.msk.f32.mxu1 %vm389_vm3, %v11201_v54  ;;  %v11255_v56 = vld [vmem:[#allocation5 + $0x81] sm:$0xff]  ;;  %v11259_v57 = vld [vmem:[#allocation5 + $0x99] sm:$0xff] }
 0x3a0   : > { %v6503_v60 = vld [vmem:[#allocation5 + $0xc7] sm:$0xff] }
 0x3a1   : > { %v11205_v11 = vld [vmem:[#allocation5 + $0xb0] sm:$0xff]  ;;  %v6650_v62 = vld [vmem:[#allocation5 + $0xc8] sm:$0xff] }
 0x3a2   : > { %9050 = vmatmul.mubr.msk.f32.gmra.mrb[22].mxu1 %vm389_vm3, %v11205_v11  ;;  %v11234_v39 = vld [vmem:[#allocation5 + $0xaf] sm:$0xff] }
 0x3a3   : > { %9054 = vmatprep.mubr.msk.f32.mxu1 %vm389_vm3, %v6072_v4  ;;  %v11263_v58 = vld [vmem:[#allocation5 + $0xb1] sm:$0xff]  ;;  %v6797_v42 = vld [vmem:[#allocation5 + $0xc9] sm:$0xff] }
 0x3a6   : > { %9055 = vmatmul.mubr.msk.f32.vlgmr.msra.gmra.mrb[16].mxu1 %vm389_vm3, %v6073_v5 }
 0x3a7   : > { %9067 = vmatpush3.msra.mxu1 %v7905_v36  ;;  %9057 = vmatprep.mubr.msk.f32.mxu1 %vm389_vm3, %v11214_v3 }
 0x3a8   : > { %9080 = vmatprep.subr.mxu1 %v7914_v12 }
 0x3aa   : > { %9058 = vmatmul.mubr.msk.f32.gmra.mrb[18].mxu1 %vm389_vm3, %v11218_v33 }
 0x3ab   : > { %9060 = vmatprep.mubr.msk.f32.mxu1 %vm389_vm3, %v11222_v2 }
 0x3ae   : > { %9061 = vmatmul.mubr.msk.f32.gmra.mrb[20].mxu1 %vm389_vm3, %v11226_v17 }
 0x3af   : > { %9063 = vmatprep.mubr.msk.f32.mxu1 %vm389_vm3, %v11230_v7 }
 0x3b2   : > { %9064 = vmatmul.mubr.msk.f32.gmra.mrb[22].mxu1 %vm389_vm3, %v11234_v39 }
 0x3b3   : > { %9068 = vmatprep.mubr.msk.f32.mxu1 %vm389_vm3, %v6349_v16 }
 0x3b6   : > { %9069 = vmatmul.mubr.msk.f32.vlgmr.msra.gmra.mrb[16].mxu1 %vm389_vm3, %v6350_v40 }
 0x3b7   : > { %9081 = vmatpush3.msra.mxu1 %v7914_v12  ;;  %9071 = vmatprep.mubr.msk.f32.mxu1 %vm389_vm3, %v11243_v52 }
 0x3b8   : > { %9094 = vmatprep.subr.mxu1 %v7923_v45 }
 0x3ba   : > { %9072 = vmatmul.mubr.msk.f32.gmra.mrb[18].mxu1 %vm389_vm3, %v11247_v53 }
 0x3bb   : > { %9074 = vmatprep.mubr.msk.f32.mxu1 %vm389_vm3, %v11251_v55 }
 0x3be   : > { %9075 = vmatmul.mubr.msk.f32.gmra.mrb[20].mxu1 %vm389_vm3, %v11255_v56 }
 0x3bf   : > { %9077 = vmatprep.mubr.msk.f32.mxu1 %vm389_vm3, %v11259_v57 }
 0x3c2   : > { %9078 = vmatmul.mubr.msk.f32.gmra.mrb[22].mxu1 %vm389_vm3, %v11263_v58 }
 0x3c3   : > { %9082 = vmatprep.mubr.msk.f32.mxu1 %vm389_vm3, %v6073_v5 }
 0x3c6   : > { %9083 = vmatmul.mubr.msk.f32.vlgmr.msra.gmra.mrb[16].mxu1 %vm389_vm3, %v11214_v3 }
 0x3c7   : > { %9095 = vmatpush3.msra.mxu1 %v7923_v45  ;;  %9085 = vmatprep.mubr.msk.f32.mxu1 %vm389_vm3, %v11218_v33 }
 0x3c8   : > { %9108 = vmatprep.subr.mxu1 %v7932_v59 }
 0x3ca   : > { %9086 = vmatmul.mubr.msk.f32.gmra.mrb[18].mxu1 %vm389_vm3, %v11222_v2 }
 0x3cb   : > { %9088 = vmatprep.mubr.msk.f32.mxu1 %vm389_vm3, %v11226_v17 }
 0x3ce   : > { %9089 = vmatmul.mubr.msk.f32.gmra.mrb[20].mxu1 %vm389_vm3, %v11230_v7 }
 0x3cf   : > { %9091 = vmatprep.mubr.msk.f32.mxu1 %vm389_vm3, %v11234_v39 }
 0x3d2   : > { %9092 = vmatmul.mubr.msk.f32.gmra.mrb[22].mxu1 %vm389_vm3, %v6503_v60 }
 0x3d3   : > { %9096 = vmatprep.mubr.msk.f32.mxu1 %vm389_vm3, %v11175_v29 }
 0x3d6   : > { %9097 = vmatmul.mubr.msk.f32.vlgmr.msra.gmra.mrb[16].mxu1 %vm389_vm3, %v11183_v38 }
 0x3d7   : > { %9109 = vmatpush3.msra.mxu1 %v7932_v59  ;;  %9099 = vmatprep.mubr.msk.f32.mxu1 %vm389_vm3, %v11188_v49 }
 0x3d8   : > { %9122 = vmatprep.subr.mxu1 %v7941_v61 }
 0x3da   : > { %9100 = vmatmul.mubr.msk.f32.gmra.mrb[18].mxu1 %vm389_vm3, %v11193_v50 }
 0x3db   : > { %9102 = vmatprep.mubr.msk.f32.mxu1 %vm389_vm3, %v11197_v51 }
 0x3de   : > { %9103 = vmatmul.mubr.msk.f32.gmra.mrb[20].mxu1 %vm389_vm3, %v11201_v54 }
 0x3df   : > { %9105 = vmatprep.mubr.msk.f32.mxu1 %vm389_vm3, %v11205_v11 }
 0x3e2   : > { %9106 = vmatmul.mubr.msk.f32.gmra.mrb[22].mxu1 %vm389_vm3, %v6650_v62 }
 0x3e3   : > { %9110 = vmatprep.mubr.msk.f32.mxu1 %vm389_vm3, %v6350_v40 }
 0x3e6   : > { %9111 = vmatmul.mubr.msk.f32.vlgmr.msra.gmra.mrb[16].mxu1 %vm389_vm3, %v11243_v52 }
 0x3e7   : > { %9123 = vmatpush3.msra.mxu1 %v7941_v61  ;;  %9113 = vmatprep.mubr.msk.f32.mxu1 %vm389_vm3, %v11247_v53 }
 0x3e8   : > { %9136 = vmatprep.subr.mxu1 %v7950_v31 }
 0x3ea   : > { %9114 = vmatmul.mubr.msk.f32.gmra.mrb[18].mxu1 %vm389_vm3, %v11251_v55 }
 0x3eb   : > { %9116 = vmatprep.mubr.msk.f32.mxu1 %vm389_vm3, %v11255_v56 }
 0x3ee   : > { %9117 = vmatmul.mubr.msk.f32.gmra.mrb[20].mxu1 %vm389_vm3, %v11259_v57 }
 0x3ef   : > { %9119 = vmatprep.mubr.msk.f32.mxu1 %vm389_vm3, %v11263_v58 }
 0x3f2   : > { %9120 = vmatmul.mubr.msk.f32.gmra.mrb[22].mxu1 %vm389_vm3, %v6797_v42 }
 0x3f3   : > { %9124 = vmatprep.mubr.msk.f32.mxu1 %vm389_vm3, %v11214_v3 }
 0x3f6   : > { %9125 = vmatmul.mubr.msk.f32.vlgmr.msra.gmra.mrb[16].mxu1 %vm389_vm3, %v11218_v33 }
 0x3f7   : > { %9137 = vmatpush3.msra.mxu1 %v7950_v31  ;;  %9127 = vmatprep.mubr.msk.f32.mxu1 %vm389_vm3, %v11222_v2 }
 0x3f8   : > { %9150 = vmatprep.subr.mxu1 %v7959_v63 }
 0x3fa   : > { %9128 = vmatmul.mubr.msk.f32.gmra.mrb[18].mxu1 %vm389_vm3, %v11226_v17 }
 0x3fb   : > { %9130 = vmatprep.mubr.msk.f32.mxu1 %vm389_vm3, %v11230_v7 }
 0x3fe   : > { %9131 = vmatmul.mubr.msk.f32.gmra.mrb[20].mxu1 %vm389_vm3, %v11234_v39 }
 0x3ff   : > { %9133 = vmatprep.mubr.msk.f32.mxu1 %vm389_vm3, %v6503_v60 }
 0x402   : > { %9134 = vmatmul.mubr.msk.f32.gmra.mrb[22].mxu1 %vm389_vm3, %v6945_v0 }
 0x403   : > { %9138 = vmatprep.mubr.msk.f32.mxu1 %vm389_vm3, %v11183_v38 }
 0x406   : > { %9139 = vmatmul.mubr.msk.f32.vlgmr.msra.gmra.mrb[16].mxu1 %vm389_vm3, %v11188_v49 }
 0x407   : > { %9151 = vmatpush3.msra.mxu1 %v7959_v63  ;;  %9141 = vmatprep.mubr.msk.f32.mxu1 %vm389_vm3, %v11193_v50 }
 0x40a   : > { %9142 = vmatmul.mubr.msk.f32.gmra.mrb[18].mxu1 %vm389_vm3, %v11197_v51 }
 0x40b   : > { %9144 = vmatprep.mubr.msk.f32.mxu1 %vm389_vm3, %v11201_v54 }
 0x40e   : > { %9145 = vmatmul.mubr.msk.f32.gmra.mrb[20].mxu1 %vm389_vm3, %v11205_v11 }
 0x40f   : > { %9147 = vmatprep.mubr.msk.f32.mxu1 %vm389_vm3, %v6650_v62 }
 0x412   : > { %9148 = vmatmul.mubr.msk.f32.gmra.mrb[22].mxu1 %vm389_vm3, %v7092_v6 }
 0x413   : > { %9152 = vmatprep.mubr.msk.f32.mxu1 %vm389_vm3, %v11243_v52 }
 0x416   : > { %9153 = vmatmul.mubr.msk.f32.vlgmr.msra.gmra.mrb[16].mxu1 %vm389_vm3, %v11247_v53 }
 0x417   : > { %9155 = vmatprep.mubr.msk.f32.mxu1 %vm389_vm3, %v11251_v55 }
 0x41a   : > { %9156 = vmatmul.mubr.msk.f32.gmra.mrb[18].mxu1 %vm389_vm3, %v11255_v56 }
 0x41b   : > { %9158 = vmatprep.mubr.msk.f32.mxu1 %vm389_vm3, %v11259_v57 }
 0x41e   : > { %9159 = vmatmul.mubr.msk.f32.gmra.mrb[20].mxu1 %vm389_vm3, %v11263_v58 }
 0x41f   : > { %9161 = vmatprep.mubr.msk.f32.mxu1 %vm389_vm3, %v6797_v42 }
 0x422   : > { %9162 = vmatmul.mubr.msk.f32.gmra.mrb[22].mxu1 %vm389_vm3, %v7239_v8 }
 0x4e9   : > { %v9154_v30 = vpop.f32.mrb[16].mxu1 }
 0x4ea   : > { %v7386_v32 = vadd.f32 %v9154_v30, %v7968_v10  ;;  %v7332_v34 = vpop.f32.mrb[17].mxu1 }
 0x4eb   : > { %v7385_v35 = vadd.f32 %v7968_v10, %v7332_v34 }
 0x4ec   : > { %7394 = vst.msk [vmem:[%s271_s14 + $0x8] sm:$0xff] %vm389_vm3, %v7386_v32 }
 0x4ed   : > { %7393 = vst.msk [vmem:[%s271_s14] sm:$0xff] %vm389_vm3, %v7385_v35  ;;  %v9157_v41 = vpop.f32.mrb[18].mxu1 }
 0x4ee   : > { %v7388_v43 = vadd.f32 %v9157_v41, %v7968_v10  ;;  %v7342_v44 = vpop.f32.mrb[19].mxu1 }
 0x4ef   : > { %v7387_v46 = vadd.f32 %v7968_v10, %v7342_v44 }
 0x4f0   : > { %7396 = vst.msk [vmem:[%s271_s14 + $0x18] sm:$0xff] %vm389_vm3, %v7388_v43 }
 0x4f1   : > { %7395 = vst.msk [vmem:[%s271_s14 + $0x10] sm:$0xff] %vm389_vm3, %v7387_v46  ;;  %v9160_v14 = vpop.f32.mrb[20].mxu1 }
 0x4f2   : > { %v7390_v18 = vadd.f32 %v9160_v14, %v7968_v10  ;;  %v7352_v20 = vpop.f32.mrb[21].mxu1 }
 0x4f3   : > { %v7389_v9 = vadd.f32 %v7968_v10, %v7352_v20 }
 0x4f4   : > { %7398 = vst.msk [vmem:[%s271_s14 + $0x28] sm:$0xff] %vm389_vm3, %v7390_v18 }
 0x4f5   : > { %7397 = vst.msk [vmem:[%s271_s14 + $0x20] sm:$0xff] %vm389_vm3, %v7389_v9  ;;  %v9163_v1 = vpop.f32.mrb[22].mxu1 }
 0x4f6   : > { %v7392_v13 = vadd.f32 %v9163_v1, %v7968_v10  ;;  %v7362_v21 = vpop.f32.mrb[23].mxu1 }
 0x4f7   : > { %v7391_v15 = vadd.f32 %v7968_v10, %v7362_v21 }
 0x4f8   : > { %7400 = vst.msk [vmem:[%s271_s14 + $0x38] sm:$0xff] %vm389_vm3, %v7392_v13 }
 0x4f9   : > { %7399 = vst.msk [vmem:[%s271_s14 + $0x30] sm:$0xff] %vm389_vm3, %v7391_v15 }
 0x4fa   : > { %9603 = shalt.err (!%p9600_p3)
}
 0x4fb   : > { %s9604_s29 = scalar_lea.hbm %s11380_s19, 1024  ;;  %s9608_s13 = scalar_lea.hbm %s11436_s7, 2048 }
 0x4fc   : > { %p9605_p4 = scmp.ne.s32.totalorder %s11380_s19, %s9604_s29  ;;  %p9609_p9 = scmp.lt.u32.totalorder %s11380_s19, %s11436_s7 }
 0x4fd   : > { %p9610_p10 = scmp.lt.u32.totalorder %s9608_s13, %s9604_s29  ;;  %p9612_p12 = scmp.lt.u32.totalorder %s9604_s29, %s11380_s19 }
 0x4fe   : > { %p9606_p7 = pnand %p9605_p4, %p9736_p5 }
 0x4ff   : > { %p9611_p11 = por %p9610_p10, %p9609_p9 }
 0x500   : > { %p9607_p8 = pneg %p9606_p7 }
 0x501   : > { %p9613_p13 = por %p9612_p12, %p9611_p11 }
 0x503   : > { %p9614_p0 = pnand %p9613_p13, %p9607_p8 }
 0x505   : > { %9617 = shalt.err (!%p9614_p0)
}
 0x506   : > { %s9656_s17 = smov 128   ;;  %s9657_s18 = smov 8  }
 0x507   : > { %9548 = dma.vmem_to_hbm [thread:$0]  (%p9736_p5), %s11382_s16, 1024, %s11380_s19, %s11388_s28, %s9656_s17, %s9656_s17, %s9657_s18  }
 0x508 PF: > { %p9554_p1 = scmp.ge.s32.totalorder %s9652_s27, 2  ;;  %s7430_s20 = sand.u32 1, %s9640_s24  }
 0x509   : > { %s7431_s21 = scalar_lea.sflag [#allocation7], %s7430_s20 }
 0x50a   : > { %p9551_p2 = pnand %p9554_p1, %p9740_p6 }
 0x50c   : > { %9635 = dma.done.wait (!%p9551_p2), %s7431_s21, 1024  }
 0x50d   : > { %9637 = vsyncadd (!%p9551_p2), %s7431_s21, 4294966272  ;;  %p17_p3 = scmp.ge.s32.totalorder %s9723_s30, 4   ;;  %s11559_s24 = smov %s9644_s25 }
 0x50e   : > { %s11560_s25 = smov %s9648_s26  ;;  %s11561_s26 = smov %s9734_s10 }
 0x50f   : > { %s11562_s27 = smov %s9723_s30  ;;  %19 = sbr.rel (!%p17_p3) target bundleno = 3 (0x3), region = 151 }
 0x516   :  { %7436 = vsyncpa [#allocation7], 1 }
 0x517   :  { %7438 = vsyncpa [#allocation7 + $0x1], 1 }

</bundles_post_ra>
